<compile_context>
chip_gen: v7x
topology: tpu7x:2x2x1
jax: 0.10.0
libtpu: 0.0.40
codegen_flags: <defaults>
</compile_context>

<pallas_src>
import math
import numpy as np

import jax
import jax.numpy as jnp
from jax import lax
from jax.experimental import pallas as pl
from jax.experimental.pallas import tpu as pltpu

# ----- config (mirrors the LoRCnnConfig fields the module uses) ---------------
BATCH = 2
SEQ = 16                                   # q_len == kv_seq_len == max_position_embeddings
HIDDEN = 32                                # hidden_size
NUM_HEADS = 4                              # num_attention_heads
HEAD_DIM = HIDDEN // NUM_HEADS             # 8
ATTN_DOWN_PROJ_DIM_TOTAL = 16              # config.attn_down_proj_dim
DOWN_DIM = ATTN_DOWN_PROJ_DIM_TOTAL // NUM_HEADS   # per-head low-rank dim = 4
KERNEL_SIZE = 3
NUM_DEEP_CNN_LAYERS = 2
INNER_CHANNEL = 1                          # must be 1 so cnn channels == num_heads
LN_EPS = 1e-5
F32_MIN = float(np.finfo(np.float32).min)

BS = BATCH * SEQ                           # 32 (rows of x / columns of the slab)
ROWS = NUM_HEADS * BATCH * SEQ             # 128 slab rows, order (h, b, q)
COLS = BATCH * SEQ                         # 32  slab cols, order (b', k)


# ============================ fused Pallas kernel ==============================

def _fused_attn_kernel(x_ref, wqk_ref, wv_ref, wo_ref, cos_ref, sin_ref,
                       wdq_ref, wdk_ref,
                       ln1g_ref, ln1b_ref, ln2g_ref, ln2b_ref,
                       scw_ref, keep_ref, amask_ref, tconv_ref, cbias_ref,
                       scb_ref,                       # SMEM scalar
                       out_ref):
    H, hd, Dd, S = NUM_HEADS, HEAD_DIM, DOWN_DIM, SEQ

    x = x_ref[...]                                     # (BS, HIDDEN)
    cos = cos_ref[...]                                 # (BS, HIDDEN)
    sin = sin_ref[...]

    # q / rotate_half(q) / k / rotate_half(k) from ONE fat matmul (rotate_half is
    # folded into the projection weights host-side).
    proj = jnp.dot(x, wqk_ref[...], preferred_element_type=jnp.float32)     # (BS, 4*HIDDEN)
    q_lin = proj[:, 0 * HIDDEN:1 * HIDDEN]
    q_rh = proj[:, 1 * HIDDEN:2 * HIDDEN]
    k_lin = proj[:, 2 * HIDDEN:3 * HIDDEN]
    k_rh = proj[:, 3 * HIDDEN:4 * HIDDEN]
    v = jnp.dot(x, wv_ref[...], preferred_element_type=jnp.float32)         # (BS, HIDDEN)

    # RoPE, full width (all heads at once)
    q_rot = q_lin * cos + q_rh * sin
    k_rot = k_lin * cos + k_rh * sin

    # block-diagonal low-rank down projection, all heads at once
    qd = jnp.dot(q_rot, wdq_ref[...], preferred_element_type=jnp.float32)   # (BS, H*Dd)
    kd = jnp.dot(k_rot, wdk_ref[...], preferred_element_type=jnp.float32)

    # per-head low-rank QK^T, stacked along sublanes -> (ROWS, COLS) slab.
    # Row order (h, b, q); column order (b', k); cross-batch columns stay masked.
    inv_sqrt = 1.0 / math.sqrt(Dd)
    blocks = []
    for h in range(H):
        qd_h = qd[:, h * Dd:(h + 1) * Dd]
        kd_h = kd[:, h * Dd:(h + 1) * Dd]
        blocks.append(jnp.einsum('qc,kc->qk', qd_h, kd_h,
                                 preferred_element_type=jnp.float32) * inv_sqrt)
    aw = jnp.concatenate(blocks, axis=0)               # (128, 32)

    keep = keep_ref[...]                               # same-batch column mask {0,1}
    aw_k = aw * keep

    # attention_predictor_dec_scaler on the MXU: (128,32)@(32,1)
    est = jnp.dot(aw_k, scw_ref[...], preferred_element_type=jnp.float32) + scb_ref[0]

    inv_s = 1.0 / S

    def masked_ln(t, g, b):
        # LayerNorm over the 16 valid (same-batch) columns of each row.
        mu = jnp.sum(t * keep, axis=-1, keepdims=True) * inv_s
        tc = (t - mu) * keep
        var = jnp.sum(tc * tc, axis=-1, keepdims=True) * inv_s
        return tc * lax.rsqrt(var + LN_EPS) * g + b

    # attention_predictor_cnn: LN -> [causal depthwise conv (Toeplitz on MXU) + ReLU] * L -> LN
    w = masked_ln(aw, ln1g_ref[...], ln1b_ref[...])
    for l in range(NUM_DEEP_CNN_LAYERS):
        w = jnp.dot(tconv_ref[l], w, preferred_element_type=jnp.float32) + cbias_ref[l]
        w = jnp.maximum(w, 0.0)                        # ReLU
    w = masked_ln(w, ln2g_ref[...], ln2b_ref[...])

    # additive causal + same-batch mask, then clamp (exactly the reference path)
    w = jnp.maximum(w + amask_ref[...], F32_MIN)

    # softmax scaled by sigmoid(estimated scale); exact division
    m = jnp.max(w, axis=-1, keepdims=True)
    e = jnp.exp(w - m)
    denom = jnp.sum(e, axis=-1, keepdims=True)
    p = e * (jax.nn.sigmoid(est) / denom)              # (128, 32)

    # attention output per head, lane-concat to (BS, HIDDEN), single fused o_proj
    outs = []
    for h in range(H):
        outs.append(jnp.dot(p[h * BS:(h + 1) * BS, :], v[:, h * hd:(h + 1) * hd],
                            preferred_element_type=jnp.float32))            # (BS, hd)
    attn_cat = jnp.concatenate(outs, axis=-1)          # (BS, HIDDEN)
    out_ref[...] = jnp.dot(attn_cat, wo_ref[...], preferred_element_type=jnp.float32)


# ======================= host-side constant preparation =======================

def rope_tables_np(seq, dim, base=10000.0):
    inv_freq = 1.0 / (base ** (np.arange(0, dim, 2, dtype=np.float32) / dim))
    t = np.arange(seq, dtype=np.float32)
    freqs = np.outer(t, inv_freq)                      # (S, dim/2)
    emb = np.concatenate([freqs, freqs], axis=-1)      # (S, dim)
    return np.cos(emb).astype(np.float32), np.sin(emb).astype(np.float32)


def _rotate_half_matrix():
    """R such that x @ R == rotate_half(x) applied per 8-lane head block."""
    R = np.zeros((HIDDEN, HIDDEN), np.float32)
    half = HEAD_DIM // 2
    for h in range(NUM_HEADS):
        base = h * HEAD_DIM
        for j in range(HEAD_DIM):
            if j < half:
                R[base + j + half, base + j] = -1.0    # rot[j] = -x[j+half]
            else:
                R[base + j - half, base + j] = 1.0     # rot[j] =  x[j-half]
    return jnp.asarray(R)


def prepare_kernel_constants(params):
    S, H, hd, Dd, B = SEQ, NUM_HEADS, HEAD_DIM, DOWN_DIM, BATCH
    K, L = KERNEL_SIZE, NUM_DEEP_CNN_LAYERS

    # rotate_half folded into q/k projections; 4 projections fused into one matmul
    R = _rotate_half_matrix()
    wq_rot = params['wq_t'] @ R                        # exact signed column permutation
    wk_rot = params['wk_t'] @ R
    wqk = jnp.concatenate([params['wq_t'], wq_rot, params['wk_t'], wk_rot], axis=1)  # (32,128)

    cos_np, sin_np = rope_tables_np(S, hd)
    cos_bs = jnp.asarray(np.tile(np.tile(cos_np, (1, H)), (B, 1)))   # (B*S, HIDDEN)
    sin_bs = jnp.asarray(np.tile(np.tile(sin_np, (1, H)), (B, 1)))

    # block-diagonal low-rank down projections (same weights for all heads)
    eye_h = jnp.eye(H, dtype=jnp.float32)
    wdq_bd = jnp.kron(eye_h, params['wdq_t'])          # (HIDDEN, H*Dd)
    wdk_bd = jnp.kron(eye_h, params['wdk_t'])

    # LayerNorm affine params tiled over the (b', k) column axis
    def tile_cols(g):
        return jnp.tile(g.reshape(1, S), (1, B))       # (1, 32)

    ln1_g_t, ln1_b_t = tile_cols(params['ln1_g']), tile_cols(params['ln1_b'])
    ln2_g_t, ln2_b_t = tile_cols(params['ln2_g']), tile_cols(params['ln2_b'])

    sc_w_tiled = jnp.tile(params['sc_w_t'], (B, 1))    # (32, 1)

    # same-batch keep mask and additive causal mask on the stacked slab
    rows = np.arange(ROWS)
    cols = np.arange(COLS)
    row_b = (rows // S) % B
    row_q = rows % S
    col_b = cols // S
    col_k = cols % S
    same_batch = row_b[:, None] == col_b[None, :]
    causal = col_k[None, :] <= row_q[:, None]
    keep = jnp.asarray(same_batch.astype(np.float32))
    add_mask = jnp.asarray(np.where(same_batch & causal, 0.0, F32_MIN).astype(np.float32))

    # block-diagonal causal-conv Toeplitz matrices, one per deep-cnn layer
    diag = np.zeros((K, S, S), np.float32)
    for s in range(K):
        for q in range(s, S):
            diag[s, q, q - s] = 1.0
    diag = jnp.asarray(diag)
    t_conv = jnp.zeros((L, ROWS, ROWS), jnp.float32)
    for l in range(L):
        for h in range(H):
            blk = sum(params['conv_w'][l, h, K - 1 - s] * diag[s] for s in range(K))
            for b in range(B):
                r0 = h * B * S + b * S
                t_conv = t_conv.at[l, r0:r0 + S, r0:r0 + S].set(blk)
    conv_bias = jnp.repeat(params['conv_b'], B * S, axis=1).reshape(L, ROWS, 1)

    return dict(wqk=wqk, cos_bs=cos_bs, sin_bs=sin_bs, wdq_bd=wdq_bd, wdk_bd=wdk_bd,
                ln1_g_t=ln1_g_t, ln1_b_t=ln1_b_t, ln2_g_t=ln2_g_t, ln2_b_t=ln2_b_t,
                sc_w_tiled=sc_w_tiled, keep=keep, add_mask=add_mask,
                t_conv=t_conv, conv_bias=conv_bias)


# ================================ wrapper ======================================

def _full_spec(a):
    nd = a.ndim
    return pl.BlockSpec(a.shape, lambda i, _nd=nd: (0,) * _nd)


def lorcnn_attention_forward(hidden_states, params):
    """hidden_states: (B, S, HIDDEN) f32 -> (B, S, HIDDEN) f32."""
    B, S, D = hidden_states.shape
    assert (B, S, D) == (BATCH, SEQ, HIDDEN)
    consts = prepare_kernel_constants(params)
    x2d = hidden_states.reshape(B * S, D)

    vmem_args = [x2d, consts['wqk'], params['wv_t'], params['wo_t'],
                 consts['cos_bs'], consts['sin_bs'],
                 consts['wdq_bd'], consts['wdk_bd'],
                 consts['ln1_g_t'], consts['ln1_b_t'], consts['ln2_g_t'], consts['ln2_b_t'],
                 consts['sc_w_tiled'], consts['keep'], consts['add_mask'],
                 consts['t_conv'], consts['conv_bias']]
    smem_args = [params['sc_b']]

    in_specs = ([_full_spec(a) for a in vmem_args]
                + [pl.BlockSpec(memory_space=pltpu.MemorySpace.SMEM)] * len(smem_args))

    out = pl.pallas_call(
        _fused_attn_kernel,
        out_shape=jax.ShapeDtypeStruct((B * S, D), jnp.float32),
        grid=(1,),
        in_specs=in_specs,
        out_specs=pl.BlockSpec((B * S, D), lambda i: (0, 0)),
        compiler_params=pltpu.CompilerParams(dimension_semantics=("arbitrary",)),
    )(*vmem_args, *smem_args)
    return out.reshape(B, S, D)


# ============================ reference (plain JAX) ============================

def reference_forward(hidden_states, mask, params):
    B, S, _ = hidden_states.shape

    def split_heads(t):
        return t.reshape(B, S, NUM_HEADS, HEAD_DIM).transpose(0, 2, 1, 3)

    q = split_heads(hidden_states @ params['wq_t'])
    k = split_heads(hidden_states @ params['wk_t'])
    v = split_heads(hidden_states @ params['wv_t'])

    cos_np, sin_np = rope_tables_np(S, HEAD_DIM)
    cos = jnp.asarray(cos_np)[None, None]
    sin = jnp.asarray(sin_np)[None, None]

    def rotate_half(x):
        d = x.shape[-1] // 2
        return jnp.concatenate([-x[..., d:], x[..., :d]], axis=-1)

    q = q * cos + rotate_half(q) * sin
    k = k * cos + rotate_half(k) * sin

    qd = q @ params['wdq_t']
    kd = k @ params['wdk_t']

    aw = jnp.einsum('bhqd,bhkd->bhqk', qd, kd) / math.sqrt(DOWN_DIM)
    est = jnp.einsum('bhqk,ko->bhqo', aw, params['sc_w_t']) + params['sc_b'][0]

    def ln(t, g, b):
        mu = t.mean(-1, keepdims=True)
        var = ((t - mu) ** 2).mean(-1, keepdims=True)
        return (t - mu) / jnp.sqrt(var + LN_EPS) * g + b

    x = ln(aw, params['ln1_g'], params['ln1_b'])
    K = KERNEL_SIZE
    for l in range(NUM_DEEP_CNN_LAYERS):
        wl = params['conv_w'][l]                       # (H, K)
        bl = params['conv_b'][l]                       # (H,)
        xp = jnp.pad(x, ((0, 0), (0, 0), (K - 1, 0), (0, 0)))
        acc = jnp.zeros_like(x)
        for t in range(K):
            acc = acc + wl[None, :, t, None, None] * xp[:, :, t:t + S, :]
        x = jax.nn.relu(acc + bl[None, :, None, None])
    x = ln(x, params['ln2_g'], params['ln2_b'])

    x = jnp.maximum(x + mask, F32_MIN)
    p = jax.nn.softmax(x, axis=-1) * jax.nn.sigmoid(est)
    out = jnp.einsum('bhqk,bhkd->bhqd', p, v)
    out = out.transpose(0, 2, 1, 3).reshape(B, S, HIDDEN)
    return out @ params['wo_t']


# ============================ params & main ====================================

def make_params(key):
    ks = jax.random.split(key, 16)
    init = lambda k, shape, s=0.05: jax.random.normal(k, shape, jnp.float32) * s
    return dict(
        # weights stored pre-transposed (in, out): y = x @ w_t  (== torch Linear)
        wq_t=init(ks[0], (HIDDEN, HIDDEN)),
        wk_t=init(ks[1], (HIDDEN, HIDDEN)),
        wv_t=init(ks[2], (HIDDEN, HIDDEN)),
        wo_t=init(ks[3], (HIDDEN, HIDDEN)),
        wdq_t=init(ks[4], (HEAD_DIM, DOWN_DIM)),
        wdk_t=init(ks[5], (HEAD_DIM, DOWN_DIM)),
        conv_w=init(ks[6], (NUM_DEEP_CNN_LAYERS, NUM_HEADS, KERNEL_SIZE), 0.3),
        conv_b=init(ks[7], (NUM_DEEP_CNN_LAYERS, NUM_HEADS), 0.1),
        sc_w_t=init(ks[8], (SEQ, 1)),                  # Linear(max_pos, 1).weight.T
        sc_b=init(ks[9], (1,), 0.1),                   # Linear(max_pos, 1).bias
        ln1_g=1.0 + init(ks[10], (SEQ,), 0.1),
        ln1_b=init(ks[11], (SEQ,), 0.05),
        ln2_g=1.0 + init(ks[12], (SEQ,), 0.1),
        ln2_b=init(ks[13], (SEQ,), 0.05),
    )


if __name__ == "__main__":
    key = jax.random.PRNGKey(0)
    pkey, xkey = jax.random.split(key)
    params = make_params(pkey)

    hidden_states = jax.random.normal(xkey, (BATCH, SEQ, HIDDEN), jnp.float32)

    out = jax.block_until_ready(lorcnn_attention_forward(hidden_states, params))

    # reference uses the standard additive causal mask the PyTorch module expects
    i = jnp.arange(SEQ)[:, None]
    j = jnp.arange(SEQ)[None, :]
    causal = jnp.where(j <= i, 0.0, F32_MIN).astype(jnp.float32)
    mask = jnp.broadcast_to(causal, (BATCH, 1, SEQ, SEQ))
    ref = jax.block_until_ready(reference_forward(hidden_states, mask, params))

    np.testing.assert_allclose(np.asarray(out), np.asarray(ref), rtol=5e-3, atol=1e-3)
    assert out.shape == (BATCH, SEQ, HIDDEN)
    assert bool(jnp.all(jnp.isfinite(out)))
    print("KERNEL_OK")
</pallas_src>

<mosaic_0001>
module attributes {stable_mosaic.version = 11 : i64} {
  func.func @_fused_attn_kernel(%arg0: i32, %arg1: memref<32x32xf32, #tpu.memory_space<vmem>>, %arg2: memref<32x128xf32, #tpu.memory_space<vmem>>, %arg3: memref<32x32xf32, #tpu.memory_space<vmem>>, %arg4: memref<32x32xf32, #tpu.memory_space<vmem>>, %arg5: memref<32x32xf32, #tpu.memory_space<vmem>>, %arg6: memref<32x32xf32, #tpu.memory_space<vmem>>, %arg7: memref<32x16xf32, #tpu.memory_space<vmem>>, %arg8: memref<32x16xf32, #tpu.memory_space<vmem>>, %arg9: memref<1x32xf32, #tpu.memory_space<vmem>>, %arg10: memref<1x32xf32, #tpu.memory_space<vmem>>, %arg11: memref<1x32xf32, #tpu.memory_space<vmem>>, %arg12: memref<1x32xf32, #tpu.memory_space<vmem>>, %arg13: memref<32x1xf32, #tpu.memory_space<vmem>>, %arg14: memref<128x32xf32, #tpu.memory_space<vmem>>, %arg15: memref<128x32xf32, #tpu.memory_space<vmem>>, %arg16: memref<2x128x128xf32, #tpu.memory_space<vmem>>, %arg17: memref<2x128x1xf32, #tpu.memory_space<vmem>>, %arg18: memref<1xf32, #tpu.memory_space<smem>>, %arg19: memref<32x32xf32, #tpu.memory_space<vmem>>) attributes {dimension_semantics = [#tpu.dimension_semantics<arbitrary>], iteration_bounds = array<i64: 1>, scalar_prefetch = 0 : i64, scratch_operands = 0 : i64, tpu.core_type = #tpu.core_type<tc>, window_params = [{pipeline_mode = #tpu.pipeline_mode<synchronous>, transform_indices = @transform_0, window_bounds = array<i64: 32, 32>}, {pipeline_mode = #tpu.pipeline_mode<synchronous>, transform_indices = @transform_1, window_bounds = array<i64: 32, 128>}, {pipeline_mode = #tpu.pipeline_mode<synchronous>, transform_indices = @transform_2, window_bounds = array<i64: 32, 32>}, {pipeline_mode = #tpu.pipeline_mode<synchronous>, transform_indices = @transform_3, window_bounds = array<i64: 32, 32>}, {pipeline_mode = #tpu.pipeline_mode<synchronous>, transform_indices = @transform_4, window_bounds = array<i64: 32, 32>}, {pipeline_mode = #tpu.pipeline_mode<synchronous>, transform_indices = @transform_5, window_bounds = array<i64: 32, 32>}, {pipeline_mode = #tpu.pipeline_mode<synchronous>, transform_indices = @transform_6, window_bounds = array<i64: 32, 16>}, {pipeline_mode = #tpu.pipeline_mode<synchronous>, transform_indices = @transform_7, window_bounds = array<i64: 32, 16>}, {pipeline_mode = #tpu.pipeline_mode<synchronous>, transform_indices = @transform_8, window_bounds = array<i64: 1, 32>}, {pipeline_mode = #tpu.pipeline_mode<synchronous>, transform_indices = @transform_9, window_bounds = array<i64: 1, 32>}, {pipeline_mode = #tpu.pipeline_mode<synchronous>, transform_indices = @transform_10, window_bounds = array<i64: 1, 32>}, {pipeline_mode = #tpu.pipeline_mode<synchronous>, transform_indices = @transform_11, window_bounds = array<i64: 1, 32>}, {pipeline_mode = #tpu.pipeline_mode<synchronous>, transform_indices = @transform_12, window_bounds = array<i64: 32, 1>}, {pipeline_mode = #tpu.pipeline_mode<synchronous>, transform_indices = @transform_13, window_bounds = array<i64: 128, 32>}, {pipeline_mode = #tpu.pipeline_mode<synchronous>, transform_indices = @transform_14, window_bounds = array<i64: 128, 32>}, {pipeline_mode = #tpu.pipeline_mode<synchronous>, transform_indices = @transform_15, window_bounds = array<i64: 2, 128, 128>}, {pipeline_mode = #tpu.pipeline_mode<synchronous>, transform_indices = @transform_16, window_bounds = array<i64: 2, 128, 1>}, {transform_indices = @transform_17, window_bounds = array<i64: 1>}, {pipeline_mode = #tpu.pipeline_mode<synchronous>, transform_indices = @transform_18, window_bounds = array<i64: 32, 32>}]} {
    %c0 = arith.constant 0 : index
    %c0_0 = arith.constant 0 : index
    %0 = vector.load %arg1[%c0, %c0_0] : memref<32x32xf32, #tpu.memory_space<vmem>>, vector<32x32xf32>
    %c0_1 = arith.constant 0 : index
    %c0_2 = arith.constant 0 : index
    %1 = vector.load %arg5[%c0_1, %c0_2] : memref<32x32xf32, #tpu.memory_space<vmem>>, vector<32x32xf32>
    %c0_3 = arith.constant 0 : index
    %c0_4 = arith.constant 0 : index
    %2 = vector.load %arg6[%c0_3, %c0_4] : memref<32x32xf32, #tpu.memory_space<vmem>>, vector<32x32xf32>
    %c0_5 = arith.constant 0 : index
    %c0_6 = arith.constant 0 : index
    %3 = vector.load %arg2[%c0_5, %c0_6] : memref<32x128xf32, #tpu.memory_space<vmem>>, vector<32x128xf32>
    %cst = arith.constant dense<0.000000e+00> : vector<32x128xf32>
    %4 = tpu.matmul %0, %3, %cst {dimension_numbers = #tpu.dot_dimension_numbers<[1], [0], [0], [1], [0, 0, 1, 1], [], []>} : vector<32x32xf32>, vector<32x128xf32>, vector<32x128xf32> -> vector<32x128xf32>
    %5 = vector.extract_strided_slice %4 {offsets = [0, 0], sizes = [32, 32], strides = [1, 1]} : vector<32x128xf32> to vector<32x32xf32>
    %6 = vector.extract_strided_slice %4 {offsets = [0, 32], sizes = [32, 32], strides = [1, 1]} : vector<32x128xf32> to vector<32x32xf32>
    %7 = vector.extract_strided_slice %4 {offsets = [0, 64], sizes = [32, 32], strides = [1, 1]} : vector<32x128xf32> to vector<32x32xf32>
    %8 = vector.extract_strided_slice %4 {offsets = [0, 96], sizes = [32, 32], strides = [1, 1]} : vector<32x128xf32> to vector<32x32xf32>
    %c0_7 = arith.constant 0 : index
    %c0_8 = arith.constant 0 : index
    %9 = vector.load %arg3[%c0_7, %c0_8] : memref<32x32xf32, #tpu.memory_space<vmem>>, vector<32x32xf32>
    %cst_9 = arith.constant dense<0.000000e+00> : vector<32x32xf32>
    %10 = tpu.matmul %0, %9, %cst_9 {dimension_numbers = #tpu.dot_dimension_numbers<[1], [0], [0], [1], [0, 0, 1, 1], [], []>} : vector<32x32xf32>, vector<32x32xf32>, vector<32x32xf32> -> vector<32x32xf32>
    %11 = arith.mulf %5, %1 : vector<32x32xf32>
    %12 = arith.mulf %6, %2 : vector<32x32xf32>
    %13 = arith.addf %11, %12 : vector<32x32xf32>
    %14 = arith.mulf %7, %1 : vector<32x32xf32>
    %15 = arith.mulf %8, %2 : vector<32x32xf32>
    %16 = arith.addf %14, %15 : vector<32x32xf32>
    %c0_10 = arith.constant 0 : index
    %c0_11 = arith.constant 0 : index
    %17 = vector.load %arg7[%c0_10, %c0_11] : memref<32x16xf32, #tpu.memory_space<vmem>>, vector<32x16xf32>
    %cst_12 = arith.constant dense<0.000000e+00> : vector<32x16xf32>
    %18 = tpu.matmul %13, %17, %cst_12 {dimension_numbers = #tpu.dot_dimension_numbers<[1], [0], [0], [1], [0, 0, 1, 1], [], []>} : vector<32x32xf32>, vector<32x16xf32>, vector<32x16xf32> -> vector<32x16xf32>
    %c0_13 = arith.constant 0 : index
    %c0_14 = arith.constant 0 : index
    %19 = vector.load %arg8[%c0_13, %c0_14] : memref<32x16xf32, #tpu.memory_space<vmem>>, vector<32x16xf32>
    %cst_15 = arith.constant dense<0.000000e+00> : vector<32x16xf32>
    %20 = tpu.matmul %16, %19, %cst_15 {dimension_numbers = #tpu.dot_dimension_numbers<[1], [0], [0], [1], [0, 0, 1, 1], [], []>} : vector<32x32xf32>, vector<32x16xf32>, vector<32x16xf32> -> vector<32x16xf32>
    %21 = vector.extract_strided_slice %18 {offsets = [0, 0], sizes = [32, 4], strides = [1, 1]} : vector<32x16xf32> to vector<32x4xf32>
    %22 = vector.extract_strided_slice %20 {offsets = [0, 0], sizes = [32, 4], strides = [1, 1]} : vector<32x16xf32> to vector<32x4xf32>
    "tpu.trace_start"() <{level = 10 : i32, message = "qc,kc->qk"}> : () -> ()
    %cst_16 = arith.constant dense<0.000000e+00> : vector<32x32xf32>
    %23 = tpu.matmul %21, %22, %cst_16 {dimension_numbers = #tpu.dot_dimension_numbers<[1], [1], [0], [0], [0, 0, 1, 0], [], []>} : vector<32x4xf32>, vector<32x4xf32>, vector<32x32xf32> -> vector<32x32xf32>
    "tpu.trace_stop"() : () -> ()
    %cst_17 = arith.constant 5.000000e-01 : f32
    %24 = vector.broadcast %cst_17 : f32 to vector<32x32xf32>
    %25 = arith.mulf %23, %24 : vector<32x32xf32>
    %26 = vector.extract_strided_slice %18 {offsets = [0, 4], sizes = [32, 4], strides = [1, 1]} : vector<32x16xf32> to vector<32x4xf32>
    %27 = vector.extract_strided_slice %20 {offsets = [0, 4], sizes = [32, 4], strides = [1, 1]} : vector<32x16xf32> to vector<32x4xf32>
    "tpu.trace_start"() <{level = 10 : i32, message = "qc,kc->qk"}> : () -> ()
    %cst_18 = arith.constant dense<0.000000e+00> : vector<32x32xf32>
    %28 = tpu.matmul %26, %27, %cst_18 {dimension_numbers = #tpu.dot_dimension_numbers<[1], [1], [0], [0], [0, 0, 1, 0], [], []>} : vector<32x4xf32>, vector<32x4xf32>, vector<32x32xf32> -> vector<32x32xf32>
    "tpu.trace_stop"() : () -> ()
    %cst_19 = arith.constant 5.000000e-01 : f32
    %29 = vector.broadcast %cst_19 : f32 to vector<32x32xf32>
    %30 = arith.mulf %28, %29 : vector<32x32xf32>
    %31 = vector.extract_strided_slice %18 {offsets = [0, 8], sizes = [32, 4], strides = [1, 1]} : vector<32x16xf32> to vector<32x4xf32>
    %32 = vector.extract_strided_slice %20 {offsets = [0, 8], sizes = [32, 4], strides = [1, 1]} : vector<32x16xf32> to vector<32x4xf32>
    "tpu.trace_start"() <{level = 10 : i32, message = "qc,kc->qk"}> : () -> ()
    %cst_20 = arith.constant dense<0.000000e+00> : vector<32x32xf32>
    %33 = tpu.matmul %31, %32, %cst_20 {dimension_numbers = #tpu.dot_dimension_numbers<[1], [1], [0], [0], [0, 0, 1, 0], [], []>} : vector<32x4xf32>, vector<32x4xf32>, vector<32x32xf32> -> vector<32x32xf32>
    "tpu.trace_stop"() : () -> ()
    %cst_21 = arith.constant 5.000000e-01 : f32
    %34 = vector.broadcast %cst_21 : f32 to vector<32x32xf32>
    %35 = arith.mulf %33, %34 : vector<32x32xf32>
    %36 = vector.extract_strided_slice %18 {offsets = [0, 12], sizes = [32, 4], strides = [1, 1]} : vector<32x16xf32> to vector<32x4xf32>
    %37 = vector.extract_strided_slice %20 {offsets = [0, 12], sizes = [32, 4], strides = [1, 1]} : vector<32x16xf32> to vector<32x4xf32>
    "tpu.trace_start"() <{level = 10 : i32, message = "qc,kc->qk"}> : () -> ()
    %cst_22 = arith.constant dense<0.000000e+00> : vector<32x32xf32>
    %38 = tpu.matmul %36, %37, %cst_22 {dimension_numbers = #tpu.dot_dimension_numbers<[1], [1], [0], [0], [0, 0, 1, 0], [], []>} : vector<32x4xf32>, vector<32x4xf32>, vector<32x32xf32> -> vector<32x32xf32>
    "tpu.trace_stop"() : () -> ()
    %cst_23 = arith.constant 5.000000e-01 : f32
    %39 = vector.broadcast %cst_23 : f32 to vector<32x32xf32>
    %40 = arith.mulf %38, %39 : vector<32x32xf32>
    %41 = tpu.concatenate %25, %30, %35, %40 in 0 : vector<32x32xf32>, vector<32x32xf32>, vector<32x32xf32>, vector<32x32xf32> -> vector<128x32xf32>
    %c0_24 = arith.constant 0 : index
    %c0_25 = arith.constant 0 : index
    %42 = vector.load %arg14[%c0_24, %c0_25] : memref<128x32xf32, #tpu.memory_space<vmem>>, vector<128x32xf32>
    %43 = arith.mulf %41, %42 : vector<128x32xf32>
    %c0_26 = arith.constant 0 : index
    %c0_27 = arith.constant 0 : index
    %44 = vector.load %arg13[%c0_26, %c0_27] : memref<32x1xf32, #tpu.memory_space<vmem>>, vector<32x1xf32>
    %cst_28 = arith.constant dense<0.000000e+00> : vector<128x1xf32>
    %45 = tpu.matmul %43, %44, %cst_28 {dimension_numbers = #tpu.dot_dimension_numbers<[1], [0], [0], [1], [0, 0, 1, 1], [], []>} : vector<128x32xf32>, vector<32x1xf32>, vector<128x1xf32> -> vector<128x1xf32>
    %c0_29 = arith.constant 0 : index
    %46 = memref.load %arg18[%c0_29] : memref<1xf32, #tpu.memory_space<smem>>
    %47 = vector.broadcast %46 : f32 to vector<128x1xf32>
    %48 = arith.addf %45, %47 : vector<128x1xf32>
    %c0_30 = arith.constant 0 : index
    %c0_31 = arith.constant 0 : index
    %49 = vector.load %arg9[%c0_30, %c0_31] : memref<1x32xf32, #tpu.memory_space<vmem>>, vector<1x32xf32>
    %c0_32 = arith.constant 0 : index
    %c0_33 = arith.constant 0 : index
    %50 = vector.load %arg10[%c0_32, %c0_33] : memref<1x32xf32, #tpu.memory_space<vmem>>, vector<1x32xf32>
    %51 = arith.mulf %41, %42 : vector<128x32xf32>
    %cst_34 = arith.constant dense<0.000000e+00> : vector<128xf32>
    %52 = vector.multi_reduction <add>, %51, %cst_34 [1] : vector<128x32xf32> to vector<128xf32>
    %53 = vector.shape_cast %52 : vector<128xf32> to vector<128x1xf32>
    %cst_35 = arith.constant 6.250000e-02 : f32
    %54 = vector.broadcast %cst_35 : f32 to vector<128x1xf32>
    %55 = arith.mulf %53, %54 : vector<128x1xf32>
    %56 = vector.broadcast %55 : vector<128x1xf32> to vector<128x32xf32>
    %57 = arith.subf %41, %56 : vector<128x32xf32>
    %58 = arith.mulf %57, %42 : vector<128x32xf32>
    %59 = arith.mulf %58, %58 : vector<128x32xf32>
    %cst_36 = arith.constant dense<0.000000e+00> : vector<128xf32>
    %60 = vector.multi_reduction <add>, %59, %cst_36 [1] : vector<128x32xf32> to vector<128xf32>
    %61 = vector.shape_cast %60 : vector<128xf32> to vector<128x1xf32>
    %cst_37 = arith.constant 6.250000e-02 : f32
    %62 = vector.broadcast %cst_37 : f32 to vector<128x1xf32>
    %63 = arith.mulf %61, %62 : vector<128x1xf32>
    %cst_38 = arith.constant 9.99999974E-6 : f32
    %64 = vector.broadcast %cst_38 : f32 to vector<128x1xf32>
    %65 = arith.addf %63, %64 : vector<128x1xf32>
    %66 = math.rsqrt %65 : vector<128x1xf32>
    %67 = vector.broadcast %66 : vector<128x1xf32> to vector<128x32xf32>
    %68 = arith.mulf %58, %67 : vector<128x32xf32>
    %69 = vector.broadcast %49 : vector<1x32xf32> to vector<128x32xf32>
    %70 = arith.mulf %68, %69 : vector<128x32xf32>
    %71 = vector.broadcast %50 : vector<1x32xf32> to vector<128x32xf32>
    %72 = arith.addf %70, %71 : vector<128x32xf32>
    %c0_39 = arith.constant 0 : index
    %c0_40 = arith.constant 0 : index
    %c0_41 = arith.constant 0 : index
    %73 = vector.load %arg16[%c0_39, %c0_40, %c0_41] : memref<2x128x128xf32, #tpu.memory_space<vmem>>, vector<1x128x128xf32>
    %74 = vector.shape_cast %73 : vector<1x128x128xf32> to vector<128x128xf32>
    %cst_42 = arith.constant dense<0.000000e+00> : vector<128x32xf32>
    %75 = tpu.matmul %74, %72, %cst_42 {dimension_numbers = #tpu.dot_dimension_numbers<[1], [0], [0], [1], [0, 0, 1, 1], [], []>} : vector<128x128xf32>, vector<128x32xf32>, vector<128x32xf32> -> vector<128x32xf32>
    %c0_43 = arith.constant 0 : index
    %c0_44 = arith.constant 0 : index
    %c0_45 = arith.constant 0 : index
    %76 = vector.load %arg17[%c0_43, %c0_44, %c0_45] : memref<2x128x1xf32, #tpu.memory_space<vmem>>, vector<1x128x1xf32>
    %77 = vector.shape_cast %76 : vector<1x128x1xf32> to vector<128x1xf32>
    %78 = vector.broadcast %77 : vector<128x1xf32> to vector<128x32xf32>
    %79 = arith.addf %75, %78 : vector<128x32xf32>
    %cst_46 = arith.constant 0.000000e+00 : f32
    %80 = vector.broadcast %cst_46 : f32 to vector<128x32xf32>
    %81 = arith.maximumf %79, %80 : vector<128x32xf32>
    %c1 = arith.constant 1 : index
    %c0_47 = arith.constant 0 : index
    %c0_48 = arith.constant 0 : index
    %82 = vector.load %arg16[%c1, %c0_47, %c0_48] : memref<2x128x128xf32, #tpu.memory_space<vmem>>, vector<1x128x128xf32>
    %83 = vector.shape_cast %82 : vector<1x128x128xf32> to vector<128x128xf32>
    %cst_49 = arith.constant dense<0.000000e+00> : vector<128x32xf32>
    %84 = tpu.matmul %83, %81, %cst_49 {dimension_numbers = #tpu.dot_dimension_numbers<[1], [0], [0], [1], [0, 0, 1, 1], [], []>} : vector<128x128xf32>, vector<128x32xf32>, vector<128x32xf32> -> vector<128x32xf32>
    %c1_50 = arith.constant 1 : index
    %c0_51 = arith.constant 0 : index
    %c0_52 = arith.constant 0 : index
    %85 = vector.load %arg17[%c1_50, %c0_51, %c0_52] : memref<2x128x1xf32, #tpu.memory_space<vmem>>, vector<1x128x1xf32>
    %86 = vector.shape_cast %85 : vector<1x128x1xf32> to vector<128x1xf32>
    %87 = vector.broadcast %86 : vector<128x1xf32> to vector<128x32xf32>
    %88 = arith.addf %84, %87 : vector<128x32xf32>
    %cst_53 = arith.constant 0.000000e+00 : f32
    %89 = vector.broadcast %cst_53 : f32 to vector<128x32xf32>
    %90 = arith.maximumf %88, %89 : vector<128x32xf32>
    %c0_54 = arith.constant 0 : index
    %c0_55 = arith.constant 0 : index
    %91 = vector.load %arg11[%c0_54, %c0_55] : memref<1x32xf32, #tpu.memory_space<vmem>>, vector<1x32xf32>
    %c0_56 = arith.constant 0 : index
    %c0_57 = arith.constant 0 : index
    %92 = vector.load %arg12[%c0_56, %c0_57] : memref<1x32xf32, #tpu.memory_space<vmem>>, vector<1x32xf32>
    %93 = arith.mulf %90, %42 : vector<128x32xf32>
    %cst_58 = arith.constant dense<0.000000e+00> : vector<128xf32>
    %94 = vector.multi_reduction <add>, %93, %cst_58 [1] : vector<128x32xf32> to vector<128xf32>
    %95 = vector.shape_cast %94 : vector<128xf32> to vector<128x1xf32>
    %cst_59 = arith.constant 6.250000e-02 : f32
    %96 = vector.broadcast %cst_59 : f32 to vector<128x1xf32>
    %97 = arith.mulf %95, %96 : vector<128x1xf32>
    %98 = vector.broadcast %97 : vector<128x1xf32> to vector<128x32xf32>
    %99 = arith.subf %90, %98 : vector<128x32xf32>
    %100 = arith.mulf %99, %42 : vector<128x32xf32>
    %101 = arith.mulf %100, %100 : vector<128x32xf32>
    %cst_60 = arith.constant dense<0.000000e+00> : vector<128xf32>
    %102 = vector.multi_reduction <add>, %101, %cst_60 [1] : vector<128x32xf32> to vector<128xf32>
    %103 = vector.shape_cast %102 : vector<128xf32> to vector<128x1xf32>
    %cst_61 = arith.constant 6.250000e-02 : f32
    %104 = vector.broadcast %cst_61 : f32 to vector<128x1xf32>
    %105 = arith.mulf %103, %104 : vector<128x1xf32>
    %cst_62 = arith.constant 9.99999974E-6 : f32
    %106 = vector.broadcast %cst_62 : f32 to vector<128x1xf32>
    %107 = arith.addf %105, %106 : vector<128x1xf32>
    %108 = math.rsqrt %107 : vector<128x1xf32>
    %109 = vector.broadcast %108 : vector<128x1xf32> to vector<128x32xf32>
    %110 = arith.mulf %100, %109 : vector<128x32xf32>
    %111 = vector.broadcast %91 : vector<1x32xf32> to vector<128x32xf32>
    %112 = arith.mulf %110, %111 : vector<128x32xf32>
    %113 = vector.broadcast %92 : vector<1x32xf32> to vector<128x32xf32>
    %114 = arith.addf %112, %113 : vector<128x32xf32>
    %c0_63 = arith.constant 0 : index
    %c0_64 = arith.constant 0 : index
    %115 = vector.load %arg15[%c0_63, %c0_64] : memref<128x32xf32, #tpu.memory_space<vmem>>, vector<128x32xf32>
    %116 = arith.addf %114, %115 : vector<128x32xf32>
    %cst_65 = arith.constant -3.40282347E+38 : f32
    %117 = vector.broadcast %cst_65 : f32 to vector<128x32xf32>
    %118 = arith.maximumf %116, %117 : vector<128x32xf32>
    %cst_66 = arith.constant dense<0xFF800000> : vector<128xf32>
    %119 = vector.multi_reduction <maximumf>, %118, %cst_66 [1] : vector<128x32xf32> to vector<128xf32>
    %120 = vector.shape_cast %119 : vector<128xf32> to vector<128x1xf32>
    %121 = vector.broadcast %120 : vector<128x1xf32> to vector<128x32xf32>
    %122 = arith.subf %118, %121 : vector<128x32xf32>
    %123 = math.exp %122 : vector<128x32xf32>
    %cst_67 = arith.constant dense<0.000000e+00> : vector<128xf32>
    %124 = vector.multi_reduction <add>, %123, %cst_67 [1] : vector<128x32xf32> to vector<128xf32>
    %125 = vector.shape_cast %124 : vector<128xf32> to vector<128x1xf32>
    %126 = arith.negf %48 : vector<128x1xf32>
    %127 = math.exp %126 : vector<128x1xf32>
    %cst_68 = arith.constant 1.000000e+00 : f32
    %128 = vector.broadcast %cst_68 : f32 to vector<128x1xf32>
    %129 = arith.addf %128, %127 : vector<128x1xf32>
    %130 = arith.divf %128, %129 : vector<128x1xf32>
    %131 = arith.divf %130, %125 : vector<128x1xf32>
    %132 = vector.broadcast %131 : vector<128x1xf32> to vector<128x32xf32>
    %133 = arith.mulf %123, %132 : vector<128x32xf32>
    %134 = vector.extract_strided_slice %133 {offsets = [0, 0], sizes = [32, 32], strides = [1, 1]} : vector<128x32xf32> to vector<32x32xf32>
    %135 = vector.extract_strided_slice %10 {offsets = [0, 0], sizes = [32, 8], strides = [1, 1]} : vector<32x32xf32> to vector<32x8xf32>
    %cst_69 = arith.constant dense<0.000000e+00> : vector<32x8xf32>
    %136 = tpu.matmul %134, %135, %cst_69 {dimension_numbers = #tpu.dot_dimension_numbers<[1], [0], [0], [1], [0, 0, 1, 1], [], []>} : vector<32x32xf32>, vector<32x8xf32>, vector<32x8xf32> -> vector<32x8xf32>
    %137 = vector.extract_strided_slice %133 {offsets = [32, 0], sizes = [32, 32], strides = [1, 1]} : vector<128x32xf32> to vector<32x32xf32>
    %138 = vector.extract_strided_slice %10 {offsets = [0, 8], sizes = [32, 8], strides = [1, 1]} : vector<32x32xf32> to vector<32x8xf32>
    %cst_70 = arith.constant dense<0.000000e+00> : vector<32x8xf32>
    %139 = tpu.matmul %137, %138, %cst_70 {dimension_numbers = #tpu.dot_dimension_numbers<[1], [0], [0], [1], [0, 0, 1, 1], [], []>} : vector<32x32xf32>, vector<32x8xf32>, vector<32x8xf32> -> vector<32x8xf32>
    %140 = vector.extract_strided_slice %133 {offsets = [64, 0], sizes = [32, 32], strides = [1, 1]} : vector<128x32xf32> to vector<32x32xf32>
    %141 = vector.extract_strided_slice %10 {offsets = [0, 16], sizes = [32, 8], strides = [1, 1]} : vector<32x32xf32> to vector<32x8xf32>
    %cst_71 = arith.constant dense<0.000000e+00> : vector<32x8xf32>
    %142 = tpu.matmul %140, %141, %cst_71 {dimension_numbers = #tpu.dot_dimension_numbers<[1], [0], [0], [1], [0, 0, 1, 1], [], []>} : vector<32x32xf32>, vector<32x8xf32>, vector<32x8xf32> -> vector<32x8xf32>
    %143 = vector.extract_strided_slice %133 {offsets = [96, 0], sizes = [32, 32], strides = [1, 1]} : vector<128x32xf32> to vector<32x32xf32>
    %144 = vector.extract_strided_slice %10 {offsets = [0, 24], sizes = [32, 8], strides = [1, 1]} : vector<32x32xf32> to vector<32x8xf32>
    %cst_72 = arith.constant dense<0.000000e+00> : vector<32x8xf32>
    %145 = tpu.matmul %143, %144, %cst_72 {dimension_numbers = #tpu.dot_dimension_numbers<[1], [0], [0], [1], [0, 0, 1, 1], [], []>} : vector<32x32xf32>, vector<32x8xf32>, vector<32x8xf32> -> vector<32x8xf32>
    %146 = tpu.concatenate %136, %139, %142, %145 in 1 : vector<32x8xf32>, vector<32x8xf32>, vector<32x8xf32>, vector<32x8xf32> -> vector<32x32xf32>
    %c0_73 = arith.constant 0 : index
    %c0_74 = arith.constant 0 : index
    %147 = vector.load %arg4[%c0_73, %c0_74] : memref<32x32xf32, #tpu.memory_space<vmem>>, vector<32x32xf32>
    %cst_75 = arith.constant dense<0.000000e+00> : vector<32x32xf32>
    %148 = tpu.matmul %146, %147, %cst_75 {dimension_numbers = #tpu.dot_dimension_numbers<[1], [0], [0], [1], [0, 0, 1, 1], [], []>} : vector<32x32xf32>, vector<32x32xf32>, vector<32x32xf32> -> vector<32x32xf32>
    %c0_76 = arith.constant 0 : index
    %c0_77 = arith.constant 0 : index
    %149 = vector.load %arg19[%c0_76, %c0_77] : memref<32x32xf32, #tpu.memory_space<vmem>>, vector<32x32xf32>
    tpu.vector_store %arg19[%c0_76, %c0_77], %148 {strides = array<i32>} : memref<32x32xf32, #tpu.memory_space<vmem>>, vector<32x32xf32>,
    return
  }
  func.func @transform_0(%arg0: i32) -> (i32, i32) {
    %c0_i32 = arith.constant 0 : i32
    %c0_i32_0 = arith.constant 0 : i32
    %c0_i32_1 = arith.constant 0 : i32
    return %c0_i32, %c0_i32_0 : i32, i32
  }
  func.func @transform_1(%arg0: i32) -> (i32, i32) {
    %c0_i32 = arith.constant 0 : i32
    %c0_i32_0 = arith.constant 0 : i32
    %c0_i32_1 = arith.constant 0 : i32
    return %c0_i32, %c0_i32_0 : i32, i32
  }
  func.func @transform_2(%arg0: i32) -> (i32, i32) {
    %c0_i32 = arith.constant 0 : i32
    %c0_i32_0 = arith.constant 0 : i32
    %c0_i32_1 = arith.constant 0 : i32
    return %c0_i32, %c0_i32_0 : i32, i32
  }
  func.func @transform_3(%arg0: i32) -> (i32, i32) {
    %c0_i32 = arith.constant 0 : i32
    %c0_i32_0 = arith.constant 0 : i32
    %c0_i32_1 = arith.constant 0 : i32
    return %c0_i32, %c0_i32_0 : i32, i32
  }
  func.func @transform_4(%arg0: i32) -> (i32, i32) {
    %c0_i32 = arith.constant 0 : i32
    %c0_i32_0 = arith.constant 0 : i32
    %c0_i32_1 = arith.constant 0 : i32
    return %c0_i32, %c0_i32_0 : i32, i32
  }
  func.func @transform_5(%arg0: i32) -> (i32, i32) {
    %c0_i32 = arith.constant 0 : i32
    %c0_i32_0 = arith.constant 0 : i32
    %c0_i32_1 = arith.constant 0 : i32
    return %c0_i32, %c0_i32_0 : i32, i32
  }
  func.func @transform_6(%arg0: i32) -> (i32, i32) {
    %c0_i32 = arith.constant 0 : i32
    %c0_i32_0 = arith.constant 0 : i32
    %c0_i32_1 = arith.constant 0 : i32
    return %c0_i32, %c0_i32_0 : i32, i32
  }
  func.func @transform_7(%arg0: i32) -> (i32, i32) {
    %c0_i32 = arith.constant 0 : i32
    %c0_i32_0 = arith.constant 0 : i32
    %c0_i32_1 = arith.constant 0 : i32
    return %c0_i32, %c0_i32_0 : i32, i32
  }
  func.func @transform_8(%arg0: i32) -> (i32, i32) {
    %c0_i32 = arith.constant 0 : i32
    %c0_i32_0 = arith.constant 0 : i32
    %c0_i32_1 = arith.constant 0 : i32
    return %c0_i32, %c0_i32_0 : i32, i32
  }
  func.func @transform_9(%arg0: i32) -> (i32, i32) {
    %c0_i32 = arith.constant 0 : i32
    %c0_i32_0 = arith.constant 0 : i32
    %c0_i32_1 = arith.constant 0 : i32
    return %c0_i32, %c0_i32_0 : i32, i32
  }
  func.func @transform_10(%arg0: i32) -> (i32, i32) {
    %c0_i32 = arith.constant 0 : i32
    %c0_i32_0 = arith.constant 0 : i32
    %c0_i32_1 = arith.constant 0 : i32
    return %c0_i32, %c0_i32_0 : i32, i32
  }
  func.func @transform_11(%arg0: i32) -> (i32, i32) {
    %c0_i32 = arith.constant 0 : i32
    %c0_i32_0 = arith.constant 0 : i32
    %c0_i32_1 = arith.constant 0 : i32
    return %c0_i32, %c0_i32_0 : i32, i32
  }
  func.func @transform_12(%arg0: i32) -> (i32, i32) {
    %c0_i32 = arith.constant 0 : i32
    %c0_i32_0 = arith.constant 0 : i32
    %c0_i32_1 = arith.constant 0 : i32
    return %c0_i32, %c0_i32_0 : i32, i32
  }
  func.func @transform_13(%arg0: i32) -> (i32, i32) {
    %c0_i32 = arith.constant 0 : i32
    %c0_i32_0 = arith.constant 0 : i32
    %c0_i32_1 = arith.constant 0 : i32
    return %c0_i32, %c0_i32_0 : i32, i32
  }
  func.func @transform_14(%arg0: i32) -> (i32, i32) {
    %c0_i32 = arith.constant 0 : i32
    %c0_i32_0 = arith.constant 0 : i32
    %c0_i32_1 = arith.constant 0 : i32
    return %c0_i32, %c0_i32_0 : i32, i32
  }
  func.func @transform_15(%arg0: i32) -> (i32, i32, i32) {
    %c0_i32 = arith.constant 0 : i32
    %c0_i32_0 = arith.constant 0 : i32
    %c0_i32_1 = arith.constant 0 : i32
    %c0_i32_2 = arith.constant 0 : i32
    return %c0_i32, %c0_i32_0, %c0_i32_1 : i32, i32, i32
  }
  func.func @transform_16(%arg0: i32) -> (i32, i32, i32) {
    %c0_i32 = arith.constant 0 : i32
    %c0_i32_0 = arith.constant 0 : i32
    %c0_i32_1 = arith.constant 0 : i32
    %c0_i32_2 = arith.constant 0 : i32
    return %c0_i32, %c0_i32_0, %c0_i32_1 : i32, i32, i32
  }
  func.func @transform_17(%arg0: i32) -> i32 {
    %c0_i32 = arith.constant 0 : i32
    %c0_i32_0 = arith.constant 0 : i32
    return %c0_i32 : i32
  }
  func.func @transform_18(%arg0: i32) -> (i32, i32) {
    %c0_i32 = arith.constant 0 : i32
    %c0_i32_0 = arith.constant 0 : i32
    %c0_i32_1 = arith.constant 0 : i32
    return %c0_i32, %c0_i32_0 : i32, i32
  }
}

</mosaic_0001>

<bundles_post_ra>
// kernel: tpu_custom_call.1
= control target key start
LH: loop header
LB: loop body
LE: loop exit
PB: predicated region body
PF: predicated region fallthrough
CT: control target
= control target key end

     0   :  { %s6238_s0 = inlined_call_operand.vmem [shape: f32[32,32], index: 0, kind: input, shape index: {}]   ;;  %s6239_s1 = inlined_call_operand.vmem [shape: f32[32,128], index: 1, kind: input, shape index: {}]   ;;  %s6240_s2 = inlined_call_operand.vmem [shape: f32[32,32], index: 2, kind: input, shape index: {}]   ;;  %s6241_s3 = inlined_call_operand.vmem [shape: f32[32,32], index: 3, kind: input, shape index: {}]   ;;  %s6242_s4 = inlined_call_operand.vmem [shape: f32[32,32], index: 4, kind: input, shape index: {}]   ;;  %s6243_s5 = inlined_call_operand.vmem [shape: f32[32,32], index: 5, kind: input, shape index: {}]   ;;  %s6244_s6 = inlined_call_operand.vmem [shape: f32[32,16], index: 6, kind: input, shape index: {}]   ;;  %s6245_s7 = inlined_call_operand.vmem [shape: f32[32,16], index: 7, kind: input, shape index: {}]   ;;  %s6246_s8 = inlined_call_operand.vmem [shape: f32[1,32], index: 8, kind: input, shape index: {}]   ;;  %s6247_s9 = inlined_call_operand.vmem [shape: f32[1,32], index: 9, kind: input, shape index: {}]   ;;  %s6248_s10 = inlined_call_operand.vmem [shape: f32[1,32], index: 10, kind: input, shape index: {}]   ;;  %s6249_s11 = inlined_call_operand.vmem [shape: f32[1,32], index: 11, kind: input, shape index: {}]   ;;  %s6250_s12 = inlined_call_operand.vmem [shape: f32[32,1], index: 12, kind: input, shape index: {}]   ;;  %s6251_s13 = inlined_call_operand.vmem [shape: f32[128,32], index: 13, kind: input, shape index: {}]   ;;  %s6252_s14 = inlined_call_operand.vmem [shape: f32[128,32], index: 14, kind: input, shape index: {}]   ;;  %s6253_s15 = inlined_call_operand.vmem [shape: f32[2,128,128], index: 15, kind: input, shape index: {}]   ;;  %s6254_s16 = inlined_call_operand.vmem [shape: f32[2,128,1], index: 16, kind: input, shape index: {}]   ;;  %s6255_s17 = inlined_call_operand.<no memory space> [shape: f32[1], index: 17, kind: input, shape index: {}]   ;;  %s6256_s18 = inlined_call_operand.hbm [shape: f32[32,32], index: 18, kind: output, shape index: {}]  }
   0x1   :  { %6274 = sst [smem:[#allocation7_spill]] %s6238_s0 }
   0x2   :  { %6275 = sst [smem:[#allocation8_spill]] %s6239_s1 }
   0x3   :  { %6276 = sst [smem:[#allocation9_spill]] %s6240_s2 }
   0x4   :  { %s6277_s29 = sld [smem:[#allocation8_spill]]  ;;  %vm77_vm0 = vcmask 261120   ;;  %s6278_s23 = sld [smem:[#allocation7_spill]]  ;;  %v4692_v7 = vld [vmem:[%s6243_s5 + $0x10] sm:$0xff]  ;;  %v69_v8 = vld [vmem:[%s6243_s5] sm:$0xff]  ;;  %v72_v9 = vld [vmem:[%s6243_s5 + $0x18] sm:$0xff] }
   0x5   :  { %s4564_s26 = smov 96  }
   0x6   :  { %332 = vrot.lane.b32.xlu1 %v4692_v7, %s4564_s26  ;;  %328 = vrot.lane.b32.xlu0 %v69_v8, %s4564_s26 }
   0xa   :  { %v73_v0 = vld [vmem:[%s6277_s29] sm:$0xff]  ;;  %v74_v1 = vld [vmem:[%s6277_s29 + $0x8] sm:$0xff]  ;;  %v75_v2 = vld [vmem:[%s6277_s29 + $0x10] sm:$0xff] }
   0xb   :  { %v4064_v3 = vpack.c.bf16 %v74_v1, %v73_v0  ;;  %v76_v4 = vld [vmem:[%s6277_s29 + $0x18] sm:$0xff]  ;;  %v61_v5 = vld [vmem:[%s6278_s23] sm:$0xff] }
   0xc   :  { %v4068_v6 = vpack.c.bf16 %v76_v4, %v75_v2  ;;  %3746 = vmatprep.mubr.msk.f32.mxu0 %vm77_vm0, %v61_v5  ;;  %3760 = vmatprep.mubr.msk.f32.mxu1 %vm77_vm0, %v61_v5 }
   0xd   :  { %4065 = vmatprep.subr.bf16.mxu0 %v4064_v3 }
   0xe   :  { %4067 = vmatpush3.bf16.msra.mxu0 %v4064_v3 }
   0xf   :  { %24 = vsyncpa [#allocation4], 0  ;;  %4069 = vmatprep.subr.bf16.mxu0 %v4068_v6  ;;  %v70_v10 = vld [vmem:[%s6243_s5 + $0x8] sm:$0xff]  ;;  %334 = vrot.lane.b32.xlu1 %v72_v9, %s4564_s26  ;;  %v63_v13 = vld [vmem:[%s6278_s23 + $0x10] sm:$0xff]  ;;  %s4565_s27 = smov 64   ;;  %s6279_s21 = sld [smem:[#allocation9_spill]] }
  0x10   :  { %v62_v11 = vld [vmem:[%s6278_s23 + $0x8] sm:$0xff]  ;;  %330 = vrot.lane.b32.xlu0 %v70_v10, %s4564_s26  ;;  %v4723_v14 = vld [vmem:[%s6242_s4] sm:$0xff]  ;;  %v64_v15 = vld [vmem:[%s6278_s23 + $0x18] sm:$0xff]  ;;  %s4566_s0 = smov 32   ;;  %vm574_vm1 = vcmask 31744   ;;  %s4575_s20 = smov 24  }
  0x11   :  { %v4715_v12 = vld [vmem:[%s6242_s4 + $0x8] sm:$0xff]  ;;  %v67_v23 = vld [vmem:[%s6242_s4 + $0x10] sm:$0xff]  ;;  %v68_v25 = vld [vmem:[%s6242_s4 + $0x18] sm:$0xff]  ;;  %vm3278_vm3 = vcmask 64512   ;;  %vm3283_vm4 = vcmask 130048   ;;  %vm3288_vm5 = vcmask 195584  }
  0x12   :  { %4071 = vmatpush3.bf16.msra.mxu0 %v4068_v6  ;;  %v465_v38 = vld [vmem:[%s6245_s7] sm:$0xff]  ;;  %v466_v39 = vld [vmem:[%s6245_s7 + $0x8] sm:$0xff]  ;;  %v467_v41 = vld [vmem:[%s6245_s7 + $0x10] sm:$0xff] }
  0x13   :  { %314 = vrot.lane.b32.xlu1 %v4715_v12, %s4565_s27  ;;  %v4088_v40 = vpack.c.bf16 %v466_v39, %v465_v38  ;;  %v468_v42 = vld [vmem:[%s6245_s7 + $0x18] sm:$0xff]  ;;  %v364_v44 = vld [vmem:[%s6244_s6] sm:$0xff]  ;;  %v365_v45 = vld [vmem:[%s6244_s6 + $0x8] sm:$0xff] }
  0x14   :  { %312 = vrot.lane.b32.xlu0 %v4723_v14, %s4565_s27  ;;  %v4092_v43 = vpack.c.bf16 %v468_v42, %v467_v41  ;;  %v4080_v47 = vpack.c.bf16 %v365_v45, %v364_v44  ;;  %v366_v50 = vld [vmem:[%s6244_s6 + $0x10] sm:$0xff]  ;;  %v367_v51 = vld [vmem:[%s6244_s6 + $0x18] sm:$0xff]  ;;  %vm4845_vm2 = vmpackc.low %vm574_vm1, %vm574_vm1  ;;  %s4567_s6 = smov 124  }
  0x15   :  { %3747 = vmatmul.mubr.msk.f32.vlgmr.msra.gmra.mrb[0].mxu0 %vm77_vm0, %v62_v11  ;;  %v175_v31 = vld [vmem:[%s6279_s21] sm:$0xff]  ;;  %v176_v32 = vld [vmem:[%s6279_s21 + $0x8] sm:$0xff]  ;;  %v177_v33 = vld [vmem:[%s6279_s21 + $0x10] sm:$0xff]  ;;  %v4084_v54 = vpack.c.bf16 %v367_v51, %v366_v50 }
  0x16   :  { %3749 = vmatprep.mubr.msk.f32.mxu0 %vm77_vm0, %v63_v13  ;;  %v4072_v35 = vpack.c.bf16 %v176_v32, %v175_v31  ;;  %v178_v36 = vld [vmem:[%s6279_s21 + $0x18] sm:$0xff]  ;;  %4081 = vmatprep.subr.bf16.mxu0 %v4080_v47 }
  0x17   :  { %v4076_v37 = vpack.c.bf16 %v178_v36, %v177_v33  ;;  %4083 = vmatpush3.bf16.msra.mxu0 %v4080_v47 }
  0x18   :  { %4073 = vmatprep.subr.bf16.mxu1 %v4072_v35  ;;  %4085 = vmatprep.subr.bf16.mxu0 %v4084_v54 }
  0x19   :  { %3750 = vmatmul.mubr.msk.f32.gmra.mrb[2].mxu0 %vm77_vm0, %v64_v15  ;;  %4075 = vmatpush3.bf16.msra.mxu1 %v4072_v35 }
  0x1a   :  { %4077 = vmatprep.subr.bf16.mxu1 %v4076_v37 }
  0x1b   :  { %4087 = vmatpush3.bf16.msra.mxu0 %v4084_v54 }
  0x1d   :  { %4079 = vmatpush3.bf16.msra.mxu1 %v4076_v37 }
  0x1e   :  { %4089 = vmatprep.subr.bf16.mxu1 %v4088_v40 }
  0x20   :  { %3761 = vmatmul.mubr.msk.f32.vlgmr.msra.gmra.mrb[0].mxu1 %vm77_vm0, %v62_v11 }
  0x21   :  { %4091 = vmatpush3.bf16.msra.mxu1 %v4088_v40  ;;  %3763 = vmatprep.mubr.msk.f32.mxu1 %vm77_vm0, %v63_v13 }
  0x22   :  { %4093 = vmatprep.subr.bf16.mxu1 %v4092_v43 }
  0x24   :  { %3764 = vmatmul.mubr.msk.f32.gmra.mrb[2].mxu1 %vm77_vm0, %v64_v15 }
  0x25   :  { %4095 = vmatpush3.bf16.msra.mxu1 %v4092_v43 }
  0x78   :  { %v329_v16 = vpop.permute.xlu0 %328  ;;  %v333_v17 = vpop.permute.xlu1 %332 }
  0x81   :  { %v335_v28 = vpop.permute.xlu1 %334 }
  0x82   :  { %v331_v18 = vpop.permute.xlu0 %330 }
  0x85   :  { %v315_v46 = vpop.permute.xlu1 %314 }
  0x86   :  { %v313_v48 = vpop.permute.xlu0 %312 }
  0xe8   :  { %v4735_v19 = vpop.f32.mrb[0].mxu0 }
  0xe9   :  { %v4737_v20 = vpop.f32.mrb[1].mxu0  ;;  %v341_v21 = vmul.f32 %v4735_v19, %v331_v18  ;;  %v325_v49 = vmul.f32 %v4735_v19, %v315_v46 }
  0xea   :  { %v340_v22 = vmul.f32 %v329_v16, %v4737_v20  ;;  %v324_v53 = vmul.f32 %v313_v48, %v4737_v20 }
  0xeb   :  { %350 = vrot.lane.b32.xlu1 %v341_v21, %s4564_s26 }
  0xec   :  { %348 = vrot.lane.b32.xlu0 %v340_v22, %s4564_s26  ;;  %v4746_v24 = vpop.f32.mrb[2].mxu0 }
  0xed   :  { %v4751_v26 = vpop.f32.mrb[3].mxu0  ;;  %v4754_v27 = vmul.f32 %v4746_v24, %v68_v25  ;;  %v343_v30 = vmul.f32 %v4746_v24, %v335_v28 }
  0xee   :  { %v4757_v29 = vmul.f32 %v4751_v26, %v67_v23  ;;  %v342_v34 = vmul.f32 %v333_v17, %v4751_v26 }
  0xef   :  { %318 = vrot.lane.b32.xlu1 %v68_v25, %s4565_s27  ;;  %v264_v25 = vmul.f32 %v4737_v20, %v4723_v14 }
  0xf0   :  { %316 = vrot.lane.b32.xlu0 %v67_v23, %s4565_s27 }
  0xf3   :  { %354 = vrot.lane.b32.xlu1 %v343_v30, %s4564_s26 }
  0xf4   :  { %352 = vrot.lane.b32.xlu0 %v342_v34, %s4564_s26 }
  0xf7   :  { %274 = vrot.lane.b32.xlu1 %v70_v10, %s4566_s0  ;;  %v3762_v10 = vpop.f32.mrb[0].mxu1 }
  0xf8   :  { %272 = vrot.lane.b32.xlu0 %v69_v8, %s4566_s0  ;;  %v245_v11 = vpop.f32.mrb[1].mxu1 }
  0xf9   :  { %v4821_v13 = vpack.i.bf16 %v3762_v10, %v245_v11  ;;  %v3765_v16 = vpop.f32.mrb[2].mxu1  ;;  %v4839_v14 = vpack.c.bf16 %v3762_v10, %v245_v11 }
  0xfa   :  { %v255_v18 = vpop.f32.mrb[3].mxu1 }
  0xfb   :  { %278 = vrot.lane.b32.xlu1 %v72_v9, %s4566_s0  ;;  %v4825_v21 = vpack.i.bf16 %v3765_v16, %v255_v18 }
  0xfc   :  { %276 = vrot.lane.b32.xlu0 %v4692_v7, %s4566_s0 }
 0x15d   :  { %v351_v52 = vpop.permute.xlu1 %350 }
 0x15e   :  { %v361_v55 = vadd.f32 %v351_v52, %v325_v49  ;;  %v349_v56 = vpop.permute.xlu0 %348 }
 0x15f   :  { %v360_v57 = vadd.f32 %v349_v56, %v324_v53 }
 0x160   :  { %475 = vrot.lane.b32.xlu1 %v361_v55, %s4565_s27 }
 0x161   :  { %v319_v58 = vpop.permute.xlu1 %318  ;;  %473 = vrot.lane.b32.xlu0 %v360_v57, %s4565_s27 }
 0x162   :  { %v317_v59 = vpop.permute.xlu0 %316  ;;  %v327_v60 = vmul.f32 %v4746_v24, %v319_v58 }
 0x163   :  { %v326_v61 = vmul.f32 %v317_v59, %v4751_v26 }
 0x165   :  { %v355_v62 = vpop.permute.xlu1 %354 }
 0x166   :  { %v363_v63 = vadd.f32 %v355_v62, %v327_v60  ;;  %v353_v0 = vpop.permute.xlu0 %352 }
 0x167   :  { %v362_v1 = vadd.f32 %v353_v0, %v326_v61 }
 0x168   :  { %479 = vrot.lane.b32.xlu1 %v363_v63, %s4565_s27 }
 0x169   :  { %v275_v2 = vpop.permute.xlu1 %274  ;;  %477 = vrot.lane.b32.xlu0 %v362_v1, %s4565_s27  ;;  %s4569_s27 = smov 116  }
 0x16a   :  { %v285_v3 = vmul.f32 %v4735_v19, %v275_v2  ;;  %v273_v4 = vpop.permute.xlu0 %272 }
 0x16b   :  { %v284_v5 = vmul.f32 %v273_v4, %v4737_v20  ;;  %v1084_v4 = vld [vmem:[%s6250_s12 + $0x8] sm:$0xff] }
 0x16c   :  { %294 = vrot.lane.b32.xlu1 %v285_v3, %s4564_s26  ;;  %v1083_v3 = vld [vmem:[%s6250_s12] sm:$0xff] }
 0x16d   :  { %v279_v6 = vpop.permute.xlu1 %278  ;;  %292 = vrot.lane.b32.xlu0 %v284_v5, %s4564_s26 }
 0x16e   :  { %v287_v7 = vmul.f32 %v4746_v24, %v279_v6  ;;  %v277_v8 = vpop.permute.xlu0 %276 }
 0x16f   :  { %v286_v9 = vmul.f32 %v277_v8, %v4751_v26  ;;  %v265_v26 = vmul.f32 %v4735_v19, %v4715_v12  ;;  %v4841_v12 = vpack.c.bf16 %v3765_v16, %v255_v18  ;;  %v4144_v8 = vpack.c.bf16 %v1084_v4, %v1083_v3  ;;  %v1085_v16 = vld [vmem:[%s6250_s12 + $0x10] sm:$0xff]  ;;  %v5003_v3 = vld [vmem:[%s6251_s13 + $0x48] sm:$0xff] }
 0x170   :  { %298 = vrot.lane.b32.xlu1 %v287_v7, %s4564_s26 }
 0x171   :  { %296 = vrot.lane.b32.xlu0 %v286_v9, %s4564_s26  ;;  %s4568_s26 = smov 120  }
 0x1d2   :  { %v476_v17 = vpop.permute.xlu1 %475 }
 0x1d3   :  { %v474_v15 = vpop.permute.xlu0 %473 }
 0x1d4   :  { %3788 = vmatprep.mubr.msk.f32.mxu1 %vm77_vm0, %v474_v15 }
 0x1d5   :  { %3789 = vmatmul.mubr.msk.f32.vlgmr.msra.gmra.mrb[4].mxu1 %vm77_vm0, %v476_v17  ;;  %v1086_v17 = vld [vmem:[%s6250_s12 + $0x18] sm:$0xff] }
 0x1da   :  { %v480_v22 = vpop.permute.xlu1 %479 }
 0x1db   :  { %v478_v23 = vpop.permute.xlu0 %477 }
 0x1dc   :  { %3791 = vmatprep.mubr.msk.f32.mxu1 %vm77_vm0, %v478_v23 }
 0x1dd   :  { %3792 = vmatmul.mubr.msk.f32.gmra.mrb[6].mxu1 %vm77_vm0, %v480_v22 }
 0x1de   :  { %v295_v24 = vpop.permute.xlu1 %294 }
 0x1df   :  { %v293_v28 = vpop.permute.xlu0 %292  ;;  %v305_v31 = vadd.f32 %v295_v24, %v265_v26  ;;  %v4148_v24 = vpack.c.bf16 %v1086_v17, %v1085_v16 }
 0x1e0   :  { %v304_v30 = vadd.f32 %v293_v28, %v264_v25 }
 0x1e2   :  { %v299_v32 = vpop.permute.xlu1 %298  ;;  %3774 = vmatprep.mubr.msk.f32.mxu0 %vm77_vm0, %v304_v30 }
 0x1e3   :  { %3775 = vmatmul.mubr.msk.f32.vlgmr.msra.gmra.mrb[4].mxu0 %vm77_vm0, %v305_v31  ;;  %v297_v33 = vpop.permute.xlu0 %296  ;;  %v307_v35 = vadd.f32 %v299_v32, %v4754_v27  ;;  %v4918_v32 = vld [vmem:[%s6251_s13 + $0x8] sm:$0xff] }
 0x1e4   :  { %v306_v34 = vadd.f32 %v297_v33, %v4757_v29 }
 0x1e6   :  { %3777 = vmatprep.mubr.msk.f32.mxu0 %vm77_vm0, %v306_v34 }
 0x1e7   :  { %3778 = vmatmul.mubr.msk.f32.gmra.mrb[6].mxu0 %vm77_vm0, %v307_v35  ;;  %v4925_v35 = vld [vmem:[%s6251_s13] sm:$0xff] }
 0x2a8   :  { %v3790_v19 = vpop.f32.mrb[4].mxu1 }
 0x2a9   :  { %v555_v20 = vpop.f32.mrb[5].mxu1 }
 0x2aa   :  { %v4096_v29 = vpack.c.bf16 %v3790_v19, %v555_v20  ;;  %v4270_v37 = vpack.i.bf16 %v3790_v19, %v555_v20 }
 0x2ac   :  { %4098 = vmatprep.subr.msk.bf16.mxu0 %vm4845_vm2, %v4096_v29  ;;  %4271 = vrot.lane.b32.xlu0 %v4270_v37, %s4567_s6 }
 0x2ad   :  { %4101 = vmatpush3.bf16.xpose.msk.msra.mxu0 %vm4845_vm2, %v4096_v29 }
 0x2b0   :  { %4276 = vrot.lane.b32.xlu0 %v4270_v37, %s4568_s26  ;;  %v3793_v27 = vpop.f32.mrb[6].mxu1 }
 0x2b1   :  { %v565_v38 = vpop.f32.mrb[7].mxu1 }
 0x2b2   :  { %v4102_v39 = vpack.c.bf16 %v3793_v27, %v565_v38  ;;  %v4285_v40 = vpack.i.bf16 %v3793_v27, %v565_v38 }
 0x2b4   :  { %4281 = vrot.lane.b32.xlu0 %v4270_v37, %s4569_s27  ;;  %4286 = vrot.lane.b32.xlu1 %v4285_v40, %s4567_s6  ;;  %v4936_v37 = vld [vmem:[%s6251_s13 + $0x18] sm:$0xff] }
 0x2b5   :  { %4104 = vmatprep.subr.msk.bf16.mxu0 %vm4845_vm2, %v4102_v39 }
 0x2b6   :  { %4107 = vmatpush3.bf16.xpose.msk.msra.mxu0 %vm4845_vm2, %v4102_v39  ;;  %v3776_v41 = vpop.f32.mrb[4].mxu0  ;;  %v4943_v39 = vld [vmem:[%s6251_s13 + $0x10] sm:$0xff] }
 0x2b7   :  { %v446_v42 = vpop.f32.mrb[5].mxu0 }
 0x2b8   :  { %690 = vrot.lane.b32.xlu0 %v3776_v41, %s4567_s6  ;;  %688 = vrot.lane.b32.xlu1 %v446_v42, %s4567_s6 }
 0x2b9   :  { %3802 = vmatprep.mubr.msk.f32.mxu0 %vm574_vm1, %v446_v42 }
 0x2ba   :  { %v3779_v43 = vpop.f32.mrb[6].mxu0 }
 0x2bb   :  { %v456_v44 = vpop.f32.mrb[7].mxu0 }
 0x2bc   :  { %4291 = vrot.lane.b32.xlu1 %v4285_v40, %s4568_s26  ;;  %694 = vrot.lane.b32.xlu0 %v3779_v43, %s4567_s6 }
 0x2bd   :  { %3803 = vmatmul.mubr.msk.f32.vlgmr.msra.gmra.mrb[8].mxu0 %vm574_vm1, %v3776_v41 }
 0x2be   :  { %3805 = vmatprep.mubr.msk.f32.mxu0 %vm574_vm1, %v456_v44 }
 0x2c0   :  { %809 = vrot.lane.b32.xlu0 %v446_v42, %s4568_s26  ;;  %692 = vrot.lane.b32.xlu1 %v456_v44, %s4567_s6  ;;  %s4572_s6 = smov 104  }
 0x2c1   :  { %3806 = vmatmul.mubr.msk.f32.gmra.mrb[10].mxu0 %vm574_vm1, %v3779_v43 }
 0x2c4   :  { %813 = vrot.lane.b32.xlu0 %v456_v44, %s4568_s26  ;;  %4296 = vrot.lane.b32.xlu1 %v4285_v40, %s4569_s27 }
 0x2c8   :  { %930 = vrot.lane.b32.xlu0 %v446_v42, %s4569_s27  ;;  %811 = vrot.lane.b32.xlu1 %v3776_v41, %s4568_s26 }
 0x2cc   :  { %934 = vrot.lane.b32.xlu0 %v456_v44, %s4569_s27  ;;  %815 = vrot.lane.b32.xlu1 %v3779_v43, %s4568_s26 }
 0x2d0   :  { %932 = vrot.lane.b32.xlu1 %v3776_v41, %s4569_s27 }
 0x2d4   :  { %936 = vrot.lane.b32.xlu1 %v3779_v43, %s4569_s27 }
 0x31e   :  { %v4272_v45 = vpop.permute.xlu0 %4271 }
 0x31f   :  { %v4274_v46 = vunpack.i.h.bf16 %v4272_v45  ;;  %v4273_v47 = vunpack.i.l.bf16 %v4272_v45 }
 0x321   :  { %v4108_v48 = vpack.c.bf16 %v4274_v46, %v4273_v47 }
 0x322   :  { %v4277_v49 = vpop.permute.xlu0 %4276 }
 0x323   :  { %v4279_v50 = vunpack.i.h.bf16 %v4277_v49  ;;  %v4278_v51 = vunpack.i.l.bf16 %v4277_v49  ;;  %4110 = vmatprep.subr.msk.bf16.mxu1 %vm4845_vm2, %v4108_v48 }
 0x324   :  { %4113 = vmatpush3.bf16.xpose.msk.msra.mxu1 %vm4845_vm2, %v4108_v48  ;;  %v4962_v48 = vld [vmem:[%s6251_s13 + $0x28] sm:$0xff] }
 0x325   :  { %v4120_v52 = vpack.c.bf16 %v4279_v50, %v4278_v51  ;;  %v4969_v51 = vld [vmem:[%s6251_s13 + $0x20] sm:$0xff] }
 0x326   :  { %v4287_v53 = vpop.permute.xlu1 %4286  ;;  %v4282_v54 = vpop.permute.xlu0 %4281 }
 0x327   :  { %v4289_v55 = vunpack.i.h.bf16 %v4287_v53  ;;  %v4288_v56 = vunpack.i.l.bf16 %v4287_v53  ;;  %v4284_v57 = vunpack.i.h.bf16 %v4282_v54  ;;  %v4283_v58 = vunpack.i.l.bf16 %v4282_v54  ;;  %4122 = vmatprep.subr.msk.bf16.mxu0 %vm4845_vm2, %v4120_v52 }
 0x328   :  { %4125 = vmatpush3.bf16.xpose.msk.msra.mxu0 %vm4845_vm2, %v4120_v52 }
 0x329   :  { %v4114_v59 = vpack.c.bf16 %v4289_v55, %v4288_v56  ;;  %v4132_v62 = vpack.c.bf16 %v4284_v57, %v4283_v58  ;;  %v4980_v56 = vld [vmem:[%s6251_s13 + $0x38] sm:$0xff] }
 0x32a   :  { %v689_v60 = vpop.permute.xlu1 %688  ;;  %v691_v61 = vpop.permute.xlu0 %690 }
 0x32b   :  { %4116 = vmatprep.subr.msk.bf16.mxu1 %vm4845_vm2, %v4114_v59  ;;  %3816 = vmatprep.mubr.msk.f32.mxu1 %vm574_vm1, %v689_v60 }
 0x32c   :  { %4119 = vmatpush3.bf16.xpose.msk.msra.mxu1 %vm4845_vm2, %v4114_v59  ;;  %v4987_v59 = vld [vmem:[%s6251_s13 + $0x30] sm:$0xff] }
 0x32d   :  { %4134 = vmatprep.subr.msk.bf16.mxu1 %vm4845_vm2, %v4132_v62 }
 0x32e   :  { %v4292_v63 = vpop.permute.xlu1 %4291  ;;  %v695_v0 = vpop.permute.xlu0 %694 }
 0x32f   :  { %v4294_v1 = vunpack.i.h.bf16 %v4292_v63  ;;  %v4293_v2 = vunpack.i.l.bf16 %v4292_v63 }
 0x331   :  { %v4126_v5 = vpack.c.bf16 %v4294_v1, %v4293_v2 }
 0x332   :  { %v810_v6 = vpop.permute.xlu0 %809  ;;  %v693_v7 = vpop.permute.xlu1 %692 }
 0x333   :  { %3817 = vmatmul.mubr.msk.f32.vlgmr.msra.gmra.mrb[8].mxu1 %vm574_vm1, %v691_v61  ;;  %4128 = vmatprep.subr.msk.bf16.mxu0 %vm4845_vm2, %v4126_v5 }
 0x334   :  { %3830 = vmatprep.mubr.msk.f32.mxu0 %vm574_vm1, %v810_v6  ;;  %3819 = vmatprep.mubr.msk.f32.mxu1 %vm574_vm1, %v693_v7  ;;  %v5010_v6 = vld [vmem:[%s6251_s13 + $0x40] sm:$0xff] }
 0x335   :  { %4131 = vmatpush3.bf16.xpose.msk.msra.mxu0 %vm4845_vm2, %v4126_v5  ;;  %4137 = vmatpush3.bf16.xpose.msk.msra.mxu1 %vm4845_vm2, %v4132_v62 }
 0x336   :  { %v814_v9 = vpop.permute.xlu0 %813  ;;  %v4297_v10 = vpop.permute.xlu1 %4296  ;;  %4145 = vmatprep.subr.bf16.mxu0 %v4144_v8 }
 0x337   :  { %v4299_v11 = vunpack.i.h.bf16 %v4297_v10  ;;  %v4298_v15 = vunpack.i.l.bf16 %v4297_v10  ;;  %3820 = vmatmul.mubr.msk.f32.gmra.mrb[10].mxu1 %vm574_vm1, %v695_v0 }
 0x339   :  { %v4138_v18 = vpack.c.bf16 %v4299_v11, %v4298_v15  ;;  %v5024_v15 = vld [vmem:[%s6251_s13 + $0x58] sm:$0xff] }
 0x33a   :  { %v931_v22 = vpop.permute.xlu0 %930  ;;  %v812_v23 = vpop.permute.xlu1 %811 }
 0x33b   :  { %4140 = vmatprep.subr.msk.bf16.mxu1 %vm4845_vm2, %v4138_v18  ;;  %3844 = vmatprep.mubr.msk.f32.mxu1 %vm574_vm1, %v931_v22 }
 0x33c   :  { %3831 = vmatmul.mubr.msk.f32.vlgmr.msra.gmra.mrb[12].mxu0 %vm574_vm1, %v812_v23 }
 0x33d   :  { %3833 = vmatprep.mubr.msk.f32.mxu0 %vm574_vm1, %v814_v9  ;;  %4143 = vmatpush3.bf16.xpose.msk.msra.mxu1 %vm4845_vm2, %v4138_v18  ;;  %v5031_v18 = vld [vmem:[%s6251_s13 + $0x50] sm:$0xff] }
 0x33e   :  { %v816_v25 = vpop.permute.xlu1 %815  ;;  %4147 = vmatpush3.bf16.msra.mxu0 %v4144_v8  ;;  %v935_v28 = vpop.permute.xlu0 %934 }
 0x33f   :  { %4149 = vmatprep.subr.bf16.mxu0 %v4148_v24 }
 0x340   :  { %3834 = vmatmul.mubr.msk.f32.gmra.mrb[14].mxu0 %vm574_vm1, %v816_v25 }
 0x342   :  { %v933_v26 = vpop.permute.xlu1 %932  ;;  %4151 = vmatpush3.bf16.msra.mxu0 %v4148_v24 }
 0x344   :  { %3845 = vmatmul.mubr.msk.f32.vlgmr.msra.gmra.mrb[12].mxu1 %vm574_vm1, %v933_v26 }
 0x345   :  { %3847 = vmatprep.mubr.msk.f32.mxu1 %vm574_vm1, %v935_v28 }
 0x346   :  { %v937_v30 = vpop.permute.xlu1 %936 }
 0x348   :  { %3848 = vmatmul.mubr.msk.f32.gmra.mrb[14].mxu1 %vm574_vm1, %v937_v30  ;;  %v5046_v30 = vld [vmem:[%s6251_s13 + $0x68] sm:$0xff] }
 0x390   :  { %v3804_v31 = vpop.f32.mrb[8].mxu0 }
 0x391   :  { %v4920_v33 = vmul.f32 0.5, %v3804_v31  ;;  %v665_v34 = vpop.f32.mrb[9].mxu0 }
 0x392   :  { %v4927_v19 = vmul.f32 0.5, %v665_v34 }
 0x393   :  { %v1068_v20 = vmul.f32 %v4918_v32, %v4920_v33 }
 0x394   :  { %v1067_v36 = vmul.f32 %v4925_v35, %v4927_v19  ;;  %v3807_v29 = vpop.f32.mrb[10].mxu0 }
 0x395   :  { %v4938_v27 = vmul.f32 0.5, %v3807_v29  ;;  %v675_v38 = vpop.f32.mrb[11].mxu0  ;;  %v1287_v40 = vsel %vm77_vm0, %v1068_v20, 0.0 }
 0x396   :  { %v4946_v41 = vmul.f32 0.5, %v675_v38  ;;  %1288 = vadd.xlane.f32.xlu1 %v1287_v40  ;;  %3858 = vmatprep.mubr.msk.f32.mxu0 %vm77_vm0, %v1067_v36  ;;  %v1284_v42 = vsel %vm77_vm0, %v1067_v36, 0.0 }
 0x397   :  { %1285 = vadd.xlane.f32.xlu0 %v1284_v42  ;;  %3859 = vmatmul.mubr.msk.f32.vlgmr.msra.gmra.mrb[16].mxu0 %vm77_vm0, %v1068_v20  ;;  %v1070_v43 = vmul.f32 %v4936_v37, %v4938_v27  ;;  %v5053_v20 = vld [vmem:[%s6251_s13 + $0x60] sm:$0xff] }
 0x398   :  { %v1069_v44 = vmul.f32 %v4943_v39, %v4946_v41 }
 0x399   :  { %v1293_v45 = vsel %vm77_vm0, %v1070_v43, 0.0 }
 0x39a   :  { %3861 = vmatprep.mubr.msk.f32.mxu0 %vm77_vm0, %v1069_v44  ;;  %v1290_v46 = vsel %vm77_vm0, %v1069_v44, 0.0  ;;  %v5068_v44 = vld [vmem:[%s6251_s13 + $0x78] sm:$0xff] }
 0x39b   :  { %1294 = vadd.xlane.f32.xlu0 %v1293_v45  ;;  %3862 = vmatmul.mubr.msk.f32.gmra.mrb[18].mxu0 %vm77_vm0, %v1070_v43 }
 0x39f   :  { %1291 = vadd.xlane.f32.xlu0 %v1290_v46 }
 0x406   :  { %v3818_v47 = vpop.f32.mrb[8].mxu1 }
 0x407   :  { %v4964_v49 = vmul.f32 0.5, %v3818_v47  ;;  %v786_v50 = vpop.f32.mrb[9].mxu1  ;;  %v5075_v47 = vld [vmem:[%s6251_s13 + $0x70] sm:$0xff] }
 0x408   :  { %v4971_v52 = vmul.f32 0.5, %v786_v50 }
 0x409   :  { %v1072_v53 = vmul.f32 %v4962_v48, %v4964_v49 }
 0x40a   :  { %v1071_v54 = vmul.f32 %v4969_v51, %v4971_v52  ;;  %v3821_v55 = vpop.f32.mrb[10].mxu1 }
 0x40b   :  { %v4982_v57 = vmul.f32 0.5, %v3821_v55  ;;  %v796_v58 = vpop.f32.mrb[11].mxu1  ;;  %v1299_v60 = vsel %vm77_vm0, %v1072_v53, 0.0 }
 0x40c   :  { %v4990_v61 = vmul.f32 0.5, %v796_v58  ;;  %1300 = vadd.xlane.f32.xlu0 %v1299_v60  ;;  %3864 = vmatprep.mubr.msk.f32.mxu0 %vm77_vm0, %v1071_v54  ;;  %v1296_v62 = vsel %vm77_vm0, %v1071_v54, 0.0 }
 0x40d   :  { %1297 = vadd.xlane.f32.xlu1 %v1296_v62  ;;  %3865 = vmatmul.mubr.msk.f32.gmra.mrb[20].mxu0 %vm77_vm0, %v1072_v53  ;;  %v1074_v63 = vmul.f32 %v4980_v56, %v4982_v57 }
 0x40e   :  { %v1073_v0 = vmul.f32 %v4987_v59, %v4990_v61 }
 0x40f   :  { %v3832_v1 = vpop.f32.mrb[12].mxu0  ;;  %v1305_v2 = vsel %vm77_vm0, %v1074_v63, 0.0 }
 0x410   :  { %v5005_v4 = vmul.f32 0.5, %v3832_v1  ;;  %v907_v5 = vpop.f32.mrb[13].mxu0  ;;  %1306 = vadd.xlane.f32.xlu0 %v1305_v2  ;;  %3867 = vmatprep.mubr.msk.f32.mxu0 %vm77_vm0, %v1073_v0  ;;  %v1302_v7 = vsel %vm77_vm0, %v1073_v0, 0.0 }
 0x411   :  { %v5014_v8 = vmul.f32 0.5, %v907_v5  ;;  %1303 = vadd.xlane.f32.xlu1 %v1302_v7  ;;  %3868 = vmatmul.mubr.msk.f32.gmra.mrb[22].mxu0 %vm77_vm0, %v1074_v63 }
 0x412   :  { %v1076_v9 = vmul.f32 %v5003_v3, %v5005_v4 }
 0x413   :  { %v1075_v10 = vmul.f32 %v5010_v6, %v5014_v8  ;;  %v3835_v11 = vpop.f32.mrb[14].mxu0 }
 0x414   :  { %v5026_v16 = vmul.f32 0.5, %v3835_v11  ;;  %v917_v17 = vpop.f32.mrb[15].mxu0  ;;  %v1311_v22 = vsel %vm77_vm0, %v1076_v9, 0.0 }
 0x415   :  { %v5034_v23 = vmul.f32 0.5, %v917_v17  ;;  %1312 = vadd.xlane.f32.xlu0 %v1311_v22  ;;  %3870 = vmatprep.mubr.msk.f32.mxu0 %vm77_vm0, %v1075_v10  ;;  %v1308_v24 = vsel %vm77_vm0, %v1075_v10, 0.0 }
 0x416   :  { %1309 = vadd.xlane.f32.xlu1 %v1308_v24  ;;  %3871 = vmatmul.mubr.msk.f32.gmra.mrb[24].mxu0 %vm77_vm0, %v1076_v9  ;;  %v1078_v25 = vmul.f32 %v5024_v15, %v5026_v16 }
 0x417   :  { %v1077_v26 = vmul.f32 %v5031_v18, %v5034_v23  ;;  %v3846_v28 = vpop.f32.mrb[12].mxu1 }
 0x418   :  { %v5048_v31 = vmul.f32 0.5, %v3846_v28  ;;  %v1028_v34 = vpop.f32.mrb[13].mxu1  ;;  %v1317_v36 = vsel %vm77_vm0, %v1078_v25, 0.0 }
 0x419   :  { %v5056_v29 = vmul.f32 0.5, %v1028_v34  ;;  %1318 = vadd.xlane.f32.xlu0 %v1317_v36  ;;  %3873 = vmatprep.mubr.msk.f32.mxu0 %vm77_vm0, %v1077_v26  ;;  %v1314_v38 = vsel %vm77_vm0, %v1077_v26, 0.0 }
 0x41a   :  { %1315 = vadd.xlane.f32.xlu1 %v1314_v38  ;;  %3874 = vmatmul.mubr.msk.f32.gmra.mrb[26].mxu0 %vm77_vm0, %v1078_v25  ;;  %v1080_v40 = vmul.f32 %v5046_v30, %v5048_v31 }
 0x41b   :  { %v1079_v42 = vmul.f32 %v5053_v20, %v5056_v29  ;;  %v3849_v43 = vpop.f32.mrb[14].mxu1 }
 0x41c   :  { %v5070_v45 = vmul.f32 0.5, %v3849_v43  ;;  %v1038_v46 = vpop.f32.mrb[15].mxu1  ;;  %v1323_v50 = vsel %vm77_vm0, %v1080_v40, 0.0 }
 0x41d   :  { %v5078_v53 = vmul.f32 0.5, %v1038_v46  ;;  %1324 = vadd.xlane.f32.xlu0 %v1323_v50  ;;  %3876 = vmatprep.mubr.msk.f32.mxu0 %vm77_vm0, %v1079_v42  ;;  %v1320_v54 = vsel %vm77_vm0, %v1079_v42, 0.0 }
 0x41e   :  { %1321 = vadd.xlane.f32.xlu1 %v1320_v54  ;;  %3877 = vmatmul.mubr.msk.f32.gmra.mrb[28].mxu0 %vm77_vm0, %v1080_v40  ;;  %v1082_v55 = vmul.f32 %v5068_v44, %v5070_v45 }
 0x41f   :  { %v1081_v58 = vmul.f32 %v5075_v47, %v5078_v53 }
 0x420   :  { %v1329_v60 = vsel %vm77_vm0, %v1082_v55, 0.0 }
 0x421   :  { %1330 = vadd.xlane.f32.xlu0 %v1329_v60  ;;  %3879 = vmatprep.mubr.msk.f32.mxu0 %vm77_vm0, %v1081_v58  ;;  %v1326_v62 = vsel %vm77_vm0, %v1081_v58, 0.0 }
 0x422   :  { %1327 = vadd.xlane.f32.xlu1 %v1326_v62  ;;  %3880 = vmatmul.mubr.msk.f32.gmra.mrb[30].mxu0 %vm77_vm0, %v1082_v55 }
 0x423   :  { %v1289_v63 = vpop.xlane.xlu1 %1288 }
 0x424   :  { %v1333_v0 = vmul.f32 0.0625, %v1289_v63  ;;  %v1286_v1 = vpop.xlane.xlu0 %1285 }
 0x425   :  { %v1332_v2 = vmul.f32 0.0625, %v1286_v1 }
 0x426   :  { %v1349_v5 = vsub.f32 %v4920_v33, %v1333_v0 }
 0x427   :  { %v1348_v7 = vsub.f32 %v4927_v19, %v1332_v2 }
 0x428   :  { %v1295_v9 = vpop.xlane.xlu0 %1294  ;;  %v5094_v10 = vmul.f32 %v1349_v5, %v4918_v32 }
 0x429   :  { %v1335_v11 = vmul.f32 0.0625, %v1295_v9  ;;  %v5097_v17 = vmul.f32 %v1348_v7, %v4925_v35 }
 0x42a   :  { %v1381_v22 = vmul.f32 %v5094_v10, %v5094_v10 }
 0x42b   :  { %v1351_v24 = vsub.f32 %v4938_v27, %v1335_v11  ;;  %v1380_v25 = vmul.f32 %v5097_v17, %v5097_v17 }
 0x42c   :  { %v1292_v26 = vpop.xlane.xlu0 %1291  ;;  %v1399_v33 = vsel %vm77_vm0, %v1381_v22, 0.0 }
 0x42d   :  { %v1334_v19 = vmul.f32 0.0625, %v1292_v26  ;;  %1400 = vadd.xlane.f32.xlu0 %v1399_v33  ;;  %v1396_v32 = vsel %vm77_vm0, %v1380_v25, 0.0  ;;  %v5107_v28 = vmul.f32 %v1351_v24, %v4936_v37 }
 0x42e   :  { %1397 = vadd.xlane.f32.xlu1 %v1396_v32 }
 0x42f   :  { %v1350_v35 = vsub.f32 %v4946_v41, %v1334_v19  ;;  %v1383_v34 = vmul.f32 %v5107_v28, %v5107_v28 }
 0x431   :  { %v1405_v27 = vsel %vm77_vm0, %v1383_v34, 0.0  ;;  %v5114_v36 = vmul.f32 %v1350_v35, %v4943_v39 }
 0x432   :  { %1406 = vadd.xlane.f32.xlu0 %v1405_v27 }
 0x433   :  { %v1382_v38 = vmul.f32 %v5114_v36, %v5114_v36 }
 0x435   :  { %v1402_v40 = vsel %vm77_vm0, %v1382_v38, 0.0 }
 0x436   :  { %1403 = vadd.xlane.f32.xlu1 %v1402_v40 }
 0x46a   :  { %v5119_v37 = vpop.f32.mrb[16].mxu0 }
 0x46b   :  { %v5121_v42 = vpop.f32.mrb[17].mxu0 }
 0x46e   :  { %v5123_v41 = vpop.f32.mrb[18].mxu0 }
 0x46f   :  { %v5125_v43 = vpop.f32.mrb[19].mxu0 }
 0x499   :  { %v1301_v46 = vpop.xlane.xlu0 %1300 }
 0x49a   :  { %v1337_v50 = vmul.f32 0.0625, %v1301_v46  ;;  %v1298_v54 = vpop.xlane.xlu1 %1297 }
 0x49b   :  { %v1336_v39 = vmul.f32 0.0625, %v1298_v54 }
 0x49c   :  { %v1353_v55 = vsub.f32 %v4964_v49, %v1337_v50 }
 0x49d   :  { %v1352_v58 = vsub.f32 %v4971_v52, %v1336_v39  ;;  %v1307_v60 = vpop.xlane.xlu0 %1306 }
 0x49e   :  { %v1339_v62 = vmul.f32 0.0625, %v1307_v60  ;;  %v1304_v63 = vpop.xlane.xlu1 %1303  ;;  %v5130_v0 = vmul.f32 %v1353_v55, %v4962_v48 }
 0x49f   :  { %v1338_v1 = vmul.f32 0.0625, %v1304_v63  ;;  %v5133_v2 = vmul.f32 %v1352_v58, %v4969_v51 }
 0x4a0   :  { %v1355_v5 = vsub.f32 %v4982_v57, %v1339_v62  ;;  %v1385_v7 = vmul.f32 %v5130_v0, %v5130_v0 }
 0x4a1   :  { %v1354_v9 = vsub.f32 %v4990_v61, %v1338_v1  ;;  %v1384_v49 = vmul.f32 %v5133_v2, %v5133_v2 }
 0x4a2   :  { %v1313_v52 = vpop.xlane.xlu0 %1312  ;;  %v1411_v11 = vsel %vm77_vm0, %v1385_v7, 0.0  ;;  %v5143_v48 = vmul.f32 %v1355_v5, %v4980_v56 }
 0x4a3   :  { %v1341_v22 = vmul.f32 0.0625, %v1313_v52  ;;  %v1310_v24 = vpop.xlane.xlu1 %1309  ;;  %1412 = vadd.xlane.f32.xlu0 %v1411_v11  ;;  %v1408_v51 = vsel %vm77_vm0, %v1384_v49, 0.0  ;;  %v5147_v57 = vmul.f32 %v1354_v9, %v4987_v59 }
 0x4a4   :  { %v1340_v25 = vmul.f32 0.0625, %v1310_v24  ;;  %1409 = vadd.xlane.f32.xlu1 %v1408_v51  ;;  %v1387_v61 = vmul.f32 %v5143_v48, %v5143_v48 }
 0x4a5   :  { %v1357_v26 = vsub.f32 %v5005_v4, %v1341_v22  ;;  %v1386_v33 = vmul.f32 %v5147_v57, %v5147_v57 }
 0x4a6   :  { %v1356_v56 = vsub.f32 %v5014_v8, %v1340_v25  ;;  %v1319_v19 = vpop.xlane.xlu0 %1318  ;;  %v1417_v32 = vsel %vm77_vm0, %v1387_v61, 0.0 }
 0x4a7   :  { %v1343_v35 = vmul.f32 0.0625, %v1319_v19  ;;  %v1316_v34 = vpop.xlane.xlu1 %1315  ;;  %1418 = vadd.xlane.f32.xlu0 %v1417_v32  ;;  %v1414_v59 = vsel %vm77_vm0, %v1386_v33, 0.0  ;;  %v5158_v27 = vmul.f32 %v1357_v26, %v5003_v3 }
 0x4a8   :  { %v1342_v38 = vmul.f32 0.0625, %v1316_v34  ;;  %1415 = vadd.xlane.f32.xlu1 %v1414_v59  ;;  %v5161_v4 = vmul.f32 %v1356_v56, %v5010_v6 }
 0x4a9   :  { %v1359_v40 = vsub.f32 %v5026_v16, %v1343_v35  ;;  %v1389_v8 = vmul.f32 %v5158_v27, %v5158_v27 }
 0x4aa   :  { %v1358_v46 = vsub.f32 %v5034_v23, %v1342_v38  ;;  %v1325_v50 = vpop.xlane.xlu0 %1324  ;;  %v1388_v54 = vmul.f32 %v5161_v4, %v5161_v4 }
 0x4ab   :  { %v1345_v39 = vmul.f32 0.0625, %v1325_v50  ;;  %v1322_v55 = vpop.xlane.xlu1 %1321  ;;  %v1423_v3 = vsel %vm77_vm0, %v1389_v8, 0.0  ;;  %v5171_v58 = vmul.f32 %v1359_v40, %v5024_v15  ;;  %v5214_v50 = vld [vmem:[%s6246_s8] ss:$0 sm:$0xff] }
 0x4ac   :  { %v1344_v6 = vmul.f32 0.0625, %v1322_v55  ;;  %1424 = vadd.xlane.f32.xlu0 %v1423_v3  ;;  %v1420_v16 = vsel %vm77_vm0, %v1388_v54, 0.0  ;;  %v5175_v60 = vmul.f32 %v1358_v46, %v5031_v18  ;;  %v5220_v55 = vld [vmem:[%s6247_s9] ss:$0 sm:$0xff]  ;;  %s4574_s9 = smov 16  }
 0x4ad   :  { %v1361_v23 = vsub.f32 %v5048_v31, %v1345_v39  ;;  %1421 = vadd.xlane.f32.xlu1 %v1420_v16  ;;  %v1391_v62 = vmul.f32 %v5171_v58, %v5171_v58 }
 0x4ae   :  { %v1360_v63 = vsub.f32 %v5056_v29, %v1344_v6  ;;  %v1331_v1 = vpop.xlane.xlu0 %1330  ;;  %v1390_v15 = vmul.f32 %v5175_v60, %v5175_v60 }
 0x4af   :  { %v1347_v5 = vmul.f32 0.0625, %v1331_v1  ;;  %v1328_v7 = vpop.xlane.xlu1 %1327  ;;  %v1429_v9 = vsel %vm77_vm0, %v1391_v62, 0.0  ;;  %v5185_v49 = vmul.f32 %v1361_v23, %v5046_v30 }
 0x4b0   :  { %v1346_v18 = vmul.f32 0.0625, %v1328_v7  ;;  %1430 = vadd.xlane.f32.xlu0 %v1429_v9  ;;  %v1426_v31 = vsel %vm77_vm0, %v1390_v15, 0.0  ;;  %v5189_v52 = vmul.f32 %v1360_v63, %v5053_v20 }
 0x4b1   :  { %v1363_v29 = vsub.f32 %v5070_v45, %v1347_v5  ;;  %1427 = vadd.xlane.f32.xlu1 %v1426_v31  ;;  %v1393_v11 = vmul.f32 %v5185_v49, %v5185_v49  ;;  %v4570_v31 = vmov 0  }
 0x4b2   :  { %v1362_v22 = vsub.f32 %v5078_v53, %v1346_v18  ;;  %v1392_v24 = vmul.f32 %v5189_v52, %v5189_v52  ;;  %4300 = vset.pattern.permute.xlu1 %v4570_v31  ;;  %4301 = vset.pattern.permute.xlu0 %v4570_v31  ;;  %v3507_v31 = vld [vmem:[%s6254_s16 + $0xd8] sm:$0xff] }
 0x4b3   :  { %v1435_v30 = vsel %vm77_vm0, %v1393_v11, 0.0  ;;  %v5199_v51 = vmul.f32 %v1363_v29, %v5068_v44 }
 0x4b4   :  { %1436 = vadd.xlane.f32.xlu0 %v1435_v30  ;;  %v1432_v20 = vsel %vm77_vm0, %v1392_v24, 0.0  ;;  %v5203_v25 = vmul.f32 %v1362_v22, %v5075_v47  ;;  %v1552_v22 = vld [vmem:[%s6253_s15] sm:$0xff]  ;;  %v1571_v30 = vld [vmem:[%s6254_s16 + $0x18] sm:$0xff] }
 0x4b5   :  { %1433 = vadd.xlane.f32.xlu1 %v1432_v20  ;;  %v1395_v45 = vmul.f32 %v5199_v51, %v5199_v51  ;;  %3914 = vmatprep.mubr.f32.mxu1 %v1552_v22  ;;  %v3510_v22 = vld [vmem:[%s6254_s16 + $0xf0] sm:$0xff] }
 0x4b6   :  { %v1394_v53 = vmul.f32 %v5203_v25, %v5203_v25 }
 0x4b7   :  { %v1441_v61 = vsel %vm77_vm0, %v1395_v45, 0.0 }
 0x4b8   :  { %1442 = vadd.xlane.f32.xlu0 %v1441_v61  ;;  %v1438_v26 = vsel %vm77_vm0, %v1394_v53, 0.0  ;;  %v1572_v53 = vld [vmem:[%s6254_s16 + $0x20] sm:$0xff] }
 0x4b9   :  { %1439 = vadd.xlane.f32.xlu1 %v1438_v26 }
 0x4ba   :  { %v1401_v44 = vpop.xlane.xlu0 %1400 }
 0x4bb   :  { %v1445_v33 = vmul.f32 0.0625, %v1401_v44  ;;  %v1398_v56 = vpop.xlane.xlu1 %1397  ;;  %v1573_v44 = vld [vmem:[%s6254_s16 + $0x28] sm:$0xff] }
 0x4bc   :  { %v1444_v19 = vmul.f32 0.0625, %v1398_v56 }
 0x4bd   :  { %v1461_v32 = vadd.f32 1e-05, %v1445_v33 }
 0x4be   :  { %v1460_v47 = vadd.f32 1e-05, %v1444_v19  ;;  %v1574_v19 = vld [vmem:[%s6254_s16 + $0x30] sm:$0xff] }
 0x4bf   :  { %4332 = vrsqrt.f32 %v1461_v32  ;;  %v1407_v35 = vpop.xlane.xlu0 %1406 }
 0x4c0   :  { %4334 = vrsqrt.f32 %v1460_v47  ;;  %v1447_v34 = vmul.f32 0.0625, %v1407_v35  ;;  %v1575_v35 = vld [vmem:[%s6254_s16 + $0x38] sm:$0xff] }
 0x4c2   :  { %v1463_v59 = vadd.f32 1e-05, %v1447_v34 }
 0x4c3   :  { %v1404_v38 = vpop.xlane.xlu1 %1403 }
 0x4c4   :  { %4336 = vrsqrt.f32 %v1463_v59  ;;  %v1446_v40 = vmul.f32 0.0625, %v1404_v38  ;;  %v1576_v38 = vld [vmem:[%s6254_s16 + $0x40] sm:$0xff] }
 0x4c6   :  { %v1462_v8 = vadd.f32 1e-05, %v1446_v40  ;;  %v1577_v40 = vld [vmem:[%s6254_s16 + $0x48] sm:$0xff] }
 0x4c8   :  { %4338 = vrsqrt.f32 %v1462_v8  ;;  %v1579_v8 = vld [vmem:[%s6254_s16 + $0x58] sm:$0xff] }
 0x4c9   :  { %v4333_v46 = vpop.eup %4332 }
 0x4ca   :  { %v4335_v54 = vpop.eup %4334  ;;  %v1493_v39 = vmul.f32 %v4333_v46, %v5094_v10  ;;  %v1569_v46 = vld [vmem:[%s6254_s16 + $0x8] sm:$0xff] }
 0x4cb   :  { %v1492_v3 = vmul.f32 %v4335_v54, %v5097_v17  ;;  %v1581_v54 = vld [vmem:[%s6254_s16 + $0x68] sm:$0xff] }
 0x4cc   :  { %v1515_v6 = vmul.f32 %v5214_v50, %v1493_v39  ;;  %v1578_v39 = vld [vmem:[%s6254_s16 + $0x50] sm:$0xff] }
 0x4cd   :  { %v1514_v16 = vmul.f32 %v5214_v50, %v1492_v3  ;;  %v1583_v3 = vld [vmem:[%s6254_s16 + $0x78] sm:$0xff] }
 0x4ce   :  { %v4337_v23 = vpop.eup %4336  ;;  %v1537_v62 = vadd.f32 %v5220_v55, %v1515_v6  ;;  %1591 = vperm.xlu0 %4301, %v1569_v46   ;;  %v1580_v6 = vld [vmem:[%s6254_s16 + $0x60] sm:$0xff] }
 0x4cf   :  { %v1536_v63 = vadd.f32 %v5220_v55, %v1514_v16  ;;  %v1495_v1 = vmul.f32 %v4337_v23, %v5107_v28  ;;  %v1568_v28 = vld [vmem:[%s6254_s16] sm:$0xff]  ;;  %v3497_v16 = vld [vmem:[%s6254_s16 + $0x88] sm:$0xff]  ;;  %v1582_v23 = vld [vmem:[%s6254_s16 + $0x70] sm:$0xff] }
 0x4d0   :  { %1586 = vperm.xlu1 %4300, %v1568_v28   ;;  %v3511_v28 = vld [vmem:[%s6254_s16 + $0xf8] sm:$0xff] }
 0x4d1   :  { %v4152_v15 = vpack.c.bf16 %v1537_v62, %v1536_v63  ;;  %v1517_v7 = vmul.f32 %v5214_v50, %v1495_v1  ;;  %v3501_v62 = vld [vmem:[%s6254_s16 + $0xa8] sm:$0xff]  ;;  %v3496_v63 = vld [vmem:[%s6254_s16 + $0x80] sm:$0xff]  ;;  %v3499_v1 = vld [vmem:[%s6254_s16 + $0x98] sm:$0xff] }
 0x4d2   :  { %v4339_v10 = vpop.eup %4338  ;;  %1636 = vperm.xlu0 %4301, %v1578_v39  }
 0x4d3   :  { %4153 = vmatprep.subr.bf16.mxu1 %v4152_v15  ;;  %v1494_v5 = vmul.f32 %v4339_v10, %v5114_v36  ;;  %v1539_v18 = vadd.f32 %v5220_v55, %v1517_v7  ;;  %v1570_v36 = vld [vmem:[%s6254_s16 + $0x10] sm:$0xff]  ;;  %v3503_v10 = vld [vmem:[%s6254_s16 + $0xb8] sm:$0xff]  ;;  %v3505_v7 = vld [vmem:[%s6254_s16 + $0xc8] sm:$0xff] }
 0x4d4   :  { %4155 = vmatpush3.bf16.msra.mxu1 %v4152_v15  ;;  %1596 = vperm.xlu1 %4300, %v1570_v36   ;;  %v3500_v15 = vld [vmem:[%s6254_s16 + $0xa0] sm:$0xff]  ;;  %v3506_v36 = vld [vmem:[%s6254_s16 + $0xd0] sm:$0xff] }
 0x4d5   :  { %v1516_v17 = vmul.f32 %v5214_v50, %v1494_v5  ;;  %v3498_v5 = vld [vmem:[%s6254_s16 + $0x90] sm:$0xff] }
 0x4d6   :  { %1646 = vperm.xlu0 %4301, %v1580_v6  }
 0x4d7   :  { %v1538_v9 = vadd.f32 %v5220_v55, %v1516_v17  ;;  %v3502_v17 = vld [vmem:[%s6254_s16 + $0xb0] sm:$0xff] }
 0x4d8   :  { %1601 = vperm.xlu1 %4300, %v1571_v30  }
 0x4d9   :  { %v4156_v29 = vpack.c.bf16 %v1539_v18, %v1538_v9  ;;  %v3509_v9 = vld [vmem:[%s6254_s16 + $0xe8] sm:$0xff]  ;;  %v3504_v18 = vld [vmem:[%s6254_s16 + $0xc0] sm:$0xff] }
 0x4da   :  { %1656 = vperm.xlu0 %4301, %v1582_v23  }
 0x4db   :  { %4157 = vmatprep.subr.bf16.mxu1 %v4156_v29 }
 0x4dc   :  { %4159 = vmatpush3.bf16.msra.mxu1 %v4156_v29  ;;  %1606 = vperm.xlu1 %4300, %v1572_v53   ;;  %v3508_v29 = vld [vmem:[%s6254_s16 + $0xe0] sm:$0xff] }
 0x4de   :  { %1861 = vperm.xlu0 %4301, %v3496_v63  }
 0x4e0   :  { %v5239_v11 = vpop.f32.mrb[20].mxu0  ;;  %1611 = vperm.xlu1 %4300, %v1573_v44  }
 0x4e1   :  { %v5244_v24 = vpop.f32.mrb[21].mxu0 }
 0x4e2   :  { %1881 = vperm.xlu0 %4301, %v3500_v15  }
 0x4e4   :  { %v5249_v20 = vpop.f32.mrb[22].mxu0  ;;  %1616 = vperm.xlu1 %4300, %v1574_v19  }
 0x4e5   :  { %v5251_v45 = vpop.f32.mrb[23].mxu0 }
 0x4e6   :  { %1871 = vperm.xlu0 %4301, %v3498_v5  }
 0x4e8   :  { %1621 = vperm.xlu1 %4300, %v1575_v35  }
 0x4e9   :  { %v5256_v61 = vpop.f32.mrb[24].mxu0 }
 0x4ea   :  { %v5258_v26 = vpop.f32.mrb[25].mxu0  ;;  %1891 = vperm.xlu0 %4301, %v3502_v17  }
 0x4ec   :  { %1626 = vperm.xlu1 %4300, %v1576_v38  }
 0x4ed   :  { %v5263_v33 = vpop.f32.mrb[26].mxu0 }
 0x4ee   :  { %v5265_v56 = vpop.f32.mrb[27].mxu0  ;;  %1901 = vperm.xlu0 %4301, %v3504_v18  }
 0x4f0   :  { %1631 = vperm.xlu1 %4300, %v1577_v40  }
 0x4f1   :  { %v5270_v32 = vpop.f32.mrb[28].mxu0 }
 0x4f2   :  { %v5272_v47 = vpop.f32.mrb[29].mxu0  ;;  %1921 = vperm.xlu0 %4301, %v3508_v29  }
 0x4f4   :  { %1641 = vperm.xlu1 %4300, %v1579_v8  }
 0x4f5   :  { %v5277_v34 = vpop.f32.mrb[30].mxu0 }
 0x4f6   :  { %6282 = vst [vmem:[#allocation6_spill] sm:$0xff] %v5277_v34  ;;  %v5279_v59 = vpop.f32.mrb[31].mxu0  ;;  %1911 = vperm.xlu0 %4301, %v3506_v36  }
 0x4f8   :  { %1651 = vperm.xlu1 %4300, %v1581_v54  }
 0x4fa   :  { %1931 = vperm.xlu0 %4301, %v3510_v22  }
 0x4fc   :  { %1661 = vperm.xlu1 %4300, %v1583_v3  }
 0x500   :  { %1866 = vperm.xlu1 %4300, %v3497_v16  }
 0x504   :  { %1886 = vperm.xlu1 %4300, %v3501_v62  }
 0x508   :  { %1876 = vperm.xlu1 %4300, %v3499_v1  }
 0x50c   :  { %1896 = vperm.xlu1 %4300, %v3503_v10  }
 0x510   :  { %1906 = vperm.xlu1 %4300, %v3505_v7  }
 0x514   :  { %1926 = vperm.xlu1 %4300, %v3509_v9  }
 0x518   :  { %1916 = vperm.xlu1 %4300, %v3507_v31  }
 0x51c   :  { %1936 = vperm.xlu1 %4300, %v3511_v28  }
 0x530   :  { %v1413_v30 = vpop.xlane.xlu0 %1412 }
 0x531   :  { %v1449_v53 = vmul.f32 0.0625, %v1413_v30  ;;  %v1410_v44 = vpop.xlane.xlu1 %1409 }
 0x532   :  { %v1448_v19 = vmul.f32 0.0625, %v1410_v44 }
 0x533   :  { %v1465_v35 = vadd.f32 1e-05, %v1449_v53 }
 0x534   :  { %v1464_v38 = vadd.f32 1e-05, %v1448_v19  ;;  %v1419_v40 = vpop.xlane.xlu0 %1418 }
 0x535   :  { %4340 = vrsqrt.f32 %v1465_v35  ;;  %v1451_v8 = vmul.f32 0.0625, %v1419_v40  ;;  %v1416_v46 = vpop.xlane.xlu1 %1415 }
 0x536   :  { %4342 = vrsqrt.f32 %v1464_v38  ;;  %v1450_v54 = vmul.f32 0.0625, %v1416_v46 }
 0x537   :  { %v1467_v39 = vadd.f32 1e-05, %v1451_v8 }
 0x538   :  { %v1466_v3 = vadd.f32 1e-05, %v1450_v54 }
 0x539   :  { %4344 = vrsqrt.f32 %v1467_v39  ;;  %v1425_v6 = vpop.xlane.xlu0 %1424 }
 0x53a   :  { %4346 = vrsqrt.f32 %v1466_v3  ;;  %v1453_v16 = vmul.f32 0.0625, %v1425_v6  ;;  %v1422_v23 = vpop.xlane.xlu1 %1421 }
 0x53b   :  { %v1452_v62 = vmul.f32 0.0625, %v1422_v23 }
 0x53c   :  { %v1469_v63 = vadd.f32 1e-05, %v1453_v16 }
 0x53d   :  { %v1468_v1 = vadd.f32 1e-05, %v1452_v62  ;;  %v1431_v15 = vpop.xlane.xlu0 %1430 }
 0x53e   :  { %4348 = vrsqrt.f32 %v1469_v63  ;;  %v1455_v10 = vmul.f32 0.0625, %v1431_v15  ;;  %v1428_v5 = vpop.xlane.xlu1 %1427 }
 0x53f   :  { %v4341_v7 = vpop.eup %4340  ;;  %4350 = vrsqrt.f32 %v1468_v1  ;;  %v1454_v17 = vmul.f32 0.0625, %v1428_v5 }
 0x540   :  { %v4343_v9 = vpop.eup %4342  ;;  %v1471_v18 = vadd.f32 1e-05, %v1455_v10  ;;  %v1497_v31 = vmul.f32 %v4341_v7, %v5130_v0 }
 0x541   :  { %v1470_v29 = vadd.f32 1e-05, %v1454_v17  ;;  %v1437_v28 = vpop.xlane.xlu0 %1436  ;;  %v1496_v36 = vmul.f32 %v4343_v9, %v5133_v2 }
 0x542   :  { %4352 = vrsqrt.f32 %v1471_v18  ;;  %v1457_v22 = vmul.f32 0.0625, %v1437_v28  ;;  %v1434_v30 = vpop.xlane.xlu1 %1433  ;;  %v1519_v53 = vmul.f32 %v5214_v50, %v1497_v31 }
 0x543   :  { %v4345_v44 = vpop.eup %4344  ;;  %4354 = vrsqrt.f32 %v1470_v29  ;;  %v1456_v19 = vmul.f32 0.0625, %v1434_v30  ;;  %v1518_v35 = vmul.f32 %v5214_v50, %v1496_v36 }
 0x544   :  { %v4347_v38 = vpop.eup %4346  ;;  %v1473_v40 = vadd.f32 1e-05, %v1457_v22  ;;  %v1541_v8 = vadd.f32 %v5220_v55, %v1519_v53  ;;  %v1499_v0 = vmul.f32 %v4345_v44, %v5143_v48 }
 0x545   :  { %v1472_v46 = vadd.f32 1e-05, %v1456_v19  ;;  %v1443_v54 = vpop.xlane.xlu0 %1442  ;;  %v1540_v2 = vadd.f32 %v5220_v55, %v1518_v35  ;;  %v1498_v39 = vmul.f32 %v4347_v38, %v5147_v57 }
 0x546   :  { %4356 = vrsqrt.f32 %v1473_v40  ;;  %v1459_v3 = vmul.f32 0.0625, %v1443_v54  ;;  %v1440_v6 = vpop.xlane.xlu1 %1439  ;;  %v1521_v16 = vmul.f32 %v5214_v50, %v1499_v0 }
 0x547   :  { %4358 = vrsqrt.f32 %v1472_v46  ;;  %v1458_v23 = vmul.f32 0.0625, %v1440_v6  ;;  %v4160_v62 = vpack.c.bf16 %v1541_v8, %v1540_v2  ;;  %v1520_v63 = vmul.f32 %v5214_v50, %v1498_v39 }
 0x548   :  { %v4349_v1 = vpop.eup %4348  ;;  %v1475_v15 = vadd.f32 1e-05, %v1459_v3  ;;  %v1543_v48 = vadd.f32 %v5220_v55, %v1521_v16 }
 0x549   :  { %v4351_v10 = vpop.eup %4350  ;;  %v1474_v5 = vadd.f32 1e-05, %v1458_v23  ;;  %4161 = vmatprep.subr.bf16.mxu1 %v4160_v62  ;;  %v1542_v7 = vadd.f32 %v5220_v55, %v1520_v63  ;;  %v1501_v57 = vmul.f32 %v4349_v1, %v5158_v27 }
 0x54a   :  { %4360 = vrsqrt.f32 %v1475_v15  ;;  %4163 = vmatpush3.bf16.msra.mxu1 %v4160_v62  ;;  %v1500_v17 = vmul.f32 %v4351_v10, %v5161_v4  ;;  %v1557_v15 = vld [vmem:[%s6253_s15 + $0x28] sm:$0xff]  ;;  %v1560_v10 = vld [vmem:[%s6253_s15 + $0x40] sm:$0xff] }
 0x54b   :  { %4362 = vrsqrt.f32 %v1474_v5  ;;  %v4164_v9 = vpack.c.bf16 %v1543_v48, %v1542_v7  ;;  %v1523_v18 = vmul.f32 %v5214_v50, %v1501_v57  ;;  %v1559_v48 = vld [vmem:[%s6253_s15 + $0x38] sm:$0xff]  ;;  %v1562_v5 = vld [vmem:[%s6253_s15 + $0x50] sm:$0xff]  ;;  %v1564_v57 = vld [vmem:[%s6253_s15 + $0x60] sm:$0xff] }
 0x54c   :  { %v4353_v31 = vpop.eup %4352  ;;  %v1522_v29 = vmul.f32 %v5214_v50, %v1500_v17  ;;  %v1563_v7 = vld [vmem:[%s6253_s15 + $0x58] sm:$0xff]  ;;  %v1565_v17 = vld [vmem:[%s6253_s15 + $0x68] sm:$0xff] }
 0x54d   :  { %v4355_v28 = vpop.eup %4354  ;;  %4165 = vmatprep.subr.bf16.mxu1 %v4164_v9  ;;  %v1545_v36 = vadd.f32 %v5220_v55, %v1523_v18  ;;  %v1503_v22 = vmul.f32 %v4353_v31, %v5171_v58  ;;  %v1567_v18 = vld [vmem:[%s6253_s15 + $0x78] sm:$0xff]  ;;  %v3480_v31 = vld [vmem:[%s6253_s15 + $0x80] sm:$0xff] }
 0x54e   :  { %4167 = vmatpush3.bf16.msra.mxu1 %v4164_v9  ;;  %v1544_v27 = vadd.f32 %v5220_v55, %v1522_v29  ;;  %v1502_v30 = vmul.f32 %v4355_v28, %v5175_v60  ;;  %v1566_v9 = vld [vmem:[%s6253_s15 + $0x70] sm:$0xff]  ;;  %3970 = vmatprep.mubr.f32.mxu0 %v3480_v31 }
 0x54f   :  { %v1525_v4 = vmul.f32 %v5214_v50, %v1503_v22  ;;  %v1587_v29 = vpop.permute.xlu1 %1586 }
 0x550   :  { %v4357_v53 = vpop.eup %4356  ;;  %v4168_v44 = vpack.c.bf16 %v1545_v36, %v1544_v27  ;;  %v1524_v19 = vmul.f32 %v5214_v50, %v1502_v30 }
 0x551   :  { %v4359_v35 = vpop.eup %4358  ;;  %v1547_v38 = vadd.f32 %v5220_v55, %v1525_v4  ;;  %v1505_v40 = vmul.f32 %v4357_v53, %v5185_v49  ;;  %v1592_v53 = vpop.permute.xlu0 %1591 }
 0x552   :  { %4169 = vmatprep.subr.bf16.mxu1 %v4168_v44  ;;  %v1546_v8 = vadd.f32 %v5220_v55, %v1524_v19  ;;  %v1504_v58 = vmul.f32 %v4359_v35, %v5189_v52 }
 0x553   :  { %4171 = vmatpush3.bf16.msra.mxu1 %v4168_v44  ;;  %v1527_v0 = vmul.f32 %v5214_v50, %v1505_v40  ;;  %v1597_v28 = vpop.permute.xlu1 %1596 }
 0x554   :  { %v4361_v60 = vpop.eup %4360  ;;  %v4172_v46 = vpack.c.bf16 %v1547_v38, %v1546_v8  ;;  %v1526_v54 = vmul.f32 %v5214_v50, %v1504_v58 }
 0x555   :  { %v4363_v2 = vpop.eup %4362  ;;  %v1549_v39 = vadd.f32 %v5220_v55, %v1527_v0  ;;  %v1507_v3 = vmul.f32 %v4361_v60, %v5199_v51  ;;  %v1553_v51 = vld [vmem:[%s6253_s15 + $0x8] sm:$0xff] }
 0x556   :  { %4173 = vmatprep.subr.bf16.mxu1 %v4172_v46  ;;  %v1548_v49 = vadd.f32 %v5220_v55, %v1526_v54  ;;  %v1506_v6 = vmul.f32 %v4363_v2, %v5203_v25  ;;  %v1554_v25 = vld [vmem:[%s6253_s15 + $0x10] sm:$0xff] }
 0x557   :  { %4175 = vmatpush3.bf16.msra.mxu1 %v4172_v46  ;;  %v1529_v52 = vmul.f32 %v5214_v50, %v1507_v3  ;;  %v1602_v36 = vpop.permute.xlu1 %1601 }
 0x558   :  { %v4176_v16 = vpack.c.bf16 %v1549_v39, %v1548_v49  ;;  %v1528_v23 = vmul.f32 %v5214_v50, %v1506_v6  ;;  %v1555_v50 = vld [vmem:[%s6253_s15 + $0x18] sm:$0xff] }
 0x559   :  { %v1551_v62 = vadd.f32 %v5220_v55, %v1529_v52 }
 0x55a   :  { %4177 = vmatprep.subr.bf16.mxu1 %v4176_v16  ;;  %v1550_v63 = vadd.f32 %v5220_v55, %v1528_v23  ;;  %v1556_v55 = vld [vmem:[%s6253_s15 + $0x20] sm:$0xff] }
 0x55b   :  { %4179 = vmatpush3.bf16.msra.mxu1 %v4176_v16  ;;  %v1607_v22 = vpop.permute.xlu1 %1606 }
 0x55c   :  { %v4180_v1 = vpack.c.bf16 %v1551_v62, %v1550_v63 }
 0x55e   :  { %4181 = vmatprep.subr.bf16.mxu1 %v4180_v1 }
 0x55f   :  { %4183 = vmatpush3.bf16.msra.mxu1 %v4180_v1  ;;  %v1612_v27 = vpop.permute.xlu1 %1611 }
 0x560   :  { %4217 = vmatprep.subr.bf16.mxu1 %v4839_v14 }
 0x562   :  { %3915 = vmatmul.mubr.f32.vlgmr.msra.gmra.mrb[16].mxu1 %v1553_v51 }
 0x563   :  { %4219 = vmatpush3.bf16.msra.mxu1 %v4839_v14  ;;  %3917 = vmatprep.mubr.f32.mxu1 %v1554_v25  ;;  %v1558_v14 = vld [vmem:[%s6253_s15 + $0x30] sm:$0xff]  ;;  %v1617_v30 = vpop.permute.xlu1 %1616 }
 0x564   :  { %4221 = vmatprep.subr.bf16.mxu1 %v4841_v12 }
 0x566   :  { %3918 = vmatmul.mubr.f32.gmra.mrb[18].mxu1 %v1555_v50 }
 0x567   :  { %4223 = vmatpush3.bf16.msra.mxu1 %v4841_v12  ;;  %3920 = vmatprep.mubr.f32.mxu1 %v1556_v55  ;;  %v1561_v12 = vld [vmem:[%s6253_s15 + $0x48] sm:$0xff]  ;;  %v1622_v4 = vpop.permute.xlu1 %1621 }
 0x56a   :  { %3921 = vmatmul.mubr.f32.gmra.mrb[20].mxu1 %v1557_v15 }
 0x56b   :  { %3923 = vmatprep.mubr.f32.mxu1 %v1558_v14  ;;  %v1627_v8 = vpop.permute.xlu1 %1626 }
 0x56e   :  { %3924 = vmatmul.mubr.f32.gmra.mrb[22].mxu1 %v1559_v48 }
 0x56f   :  { %3926 = vmatprep.mubr.f32.mxu1 %v1560_v10  ;;  %v1632_v16 = vpop.permute.xlu1 %1631 }
 0x572   :  { %3927 = vmatmul.mubr.f32.gmra.mrb[24].mxu1 %v1561_v12 }
 0x573   :  { %3929 = vmatprep.mubr.f32.mxu1 %v1562_v5  ;;  %v1642_v48 = vpop.permute.xlu1 %1641  ;;  %v1637_v5 = vpop.permute.xlu0 %1636 }
 0x576   :  { %3930 = vmatmul.mubr.f32.gmra.mrb[26].mxu1 %v1563_v7 }
 0x577   :  { %3932 = vmatprep.mubr.f32.mxu1 %v1564_v57 }
 0x57a   :  { %3933 = vmatmul.mubr.f32.gmra.mrb[28].mxu1 %v1565_v17 }
 0x57b   :  { %3935 = vmatprep.mubr.f32.mxu1 %v1566_v9 }
 0x57e   :  { %3936 = vmatmul.mubr.f32.gmra.mrb[30].mxu1 %v1567_v18 }
 0x635   :  { %v3916_v44 = vpop.f32.mrb[16].mxu1 }
 0x636   :  { %v1736_v19 = vadd.f32 %v3916_v44, %v1592_v53  ;;  %v1730_v35 = vpop.f32.mrb[17].mxu1 }
 0x637   :  { %v1731_v38 = vadd.f32 %v1730_v35, %v1587_v29 }
 0x638   :  { %v1810_v40 = vmax.f32 %v1736_v19, 0.0 }
 0x639   :  { %v1809_v58 = vmax.f32 %v1731_v38, 0.0  ;;  %v3919_v0 = vpop.f32.mrb[18].mxu1 }
 0x63a   :  { %v1746_v60 = vadd.f32 %v3919_v0, %v1602_v36  ;;  %v1740_v46 = vpop.f32.mrb[19].mxu1 }
 0x63b   :  { %v4184_v54 = vpack.c.bf16 %v1810_v40, %v1809_v58  ;;  %v1741_v2 = vadd.f32 %v1740_v46, %v1597_v28 }
 0x63c   :  { %v1812_v39 = vmax.f32 %v1746_v60, 0.0 }
 0x63d   :  { %v1811_v3 = vmax.f32 %v1741_v2, 0.0  ;;  %v3922_v49 = vpop.f32.mrb[20].mxu1  ;;  %4185 = vmatprep.subr.bf16.mxu0 %v4184_v54 }
 0x63e   :  { %v1756_v6 = vadd.f32 %v3922_v49, %v1612_v27  ;;  %v1750_v52 = vpop.f32.mrb[21].mxu1  ;;  %4187 = vmatpush3.bf16.msra.mxu0 %v4184_v54 }
 0x63f   :  { %v4188_v23 = vpack.c.bf16 %v1812_v39, %v1811_v3  ;;  %v1751_v62 = vadd.f32 %v1750_v52, %v1607_v22  ;;  %v1652_v22 = vpop.permute.xlu1 %1651 }
 0x640   :  { %v1814_v63 = vmax.f32 %v1756_v6, 0.0 }
 0x641   :  { %v1813_v1 = vmax.f32 %v1751_v62, 0.0  ;;  %v3925_v51 = vpop.f32.mrb[22].mxu1  ;;  %4189 = vmatprep.subr.bf16.mxu0 %v4188_v23  ;;  %v3482_v62 = vld [vmem:[%s6253_s15 + $0x90] sm:$0xff] }
 0x642   :  { %v1766_v25 = vadd.f32 %v3925_v51, %v1622_v4  ;;  %v1760_v50 = vpop.f32.mrb[23].mxu1  ;;  %4191 = vmatpush3.bf16.msra.mxu0 %v4188_v23  ;;  %v1647_v4 = vpop.permute.xlu0 %1646  ;;  %v3481_v23 = vld [vmem:[%s6253_s15 + $0x88] sm:$0xff] }
 0x643   :  { %v4192_v55 = vpack.c.bf16 %v1814_v63, %v1813_v1  ;;  %v1761_v15 = vadd.f32 %v1760_v50, %v1617_v30  ;;  %v1662_v0 = vpop.permute.xlu1 %1661  ;;  %v3483_v63 = vld [vmem:[%s6253_s15 + $0x98] sm:$0xff]  ;;  %v3484_v1 = vld [vmem:[%s6253_s15 + $0xa0] sm:$0xff]  ;;  %v3485_v51 = vld [vmem:[%s6253_s15 + $0xa8] sm:$0xff] }
 0x644   :  { %v1816_v14 = vmax.f32 %v1766_v25, 0.0  ;;  %v3486_v25 = vld [vmem:[%s6253_s15 + $0xb0] sm:$0xff]  ;;  %v3487_v50 = vld [vmem:[%s6253_s15 + $0xb8] sm:$0xff] }
 0x645   :  { %v1815_v10 = vmax.f32 %v1761_v15, 0.0  ;;  %v3928_v12 = vpop.f32.mrb[24].mxu1  ;;  %4193 = vmatprep.subr.bf16.mxu0 %v4192_v55  ;;  %v3489_v15 = vld [vmem:[%s6253_s15 + $0xc8] sm:$0xff] }
 0x646   :  { %v1776_v7 = vadd.f32 %v3928_v12, %v1632_v16  ;;  %v1770_v57 = vpop.f32.mrb[25].mxu1  ;;  %4195 = vmatpush3.bf16.msra.mxu0 %v4192_v55  ;;  %v1657_v54 = vpop.permute.xlu0 %1656  ;;  %v3488_v55 = vld [vmem:[%s6253_s15 + $0xc0] sm:$0xff]  ;;  %v3493_v12 = vld [vmem:[%s6253_s15 + $0xe8] sm:$0xff] }
 0x647   :  { %v4196_v17 = vpack.c.bf16 %v1816_v14, %v1815_v10  ;;  %v1771_v9 = vadd.f32 %v1770_v57, %v1627_v8  ;;  %v3490_v14 = vld [vmem:[%s6253_s15 + $0xd0] sm:$0xff]  ;;  %v3492_v10 = vld [vmem:[%s6253_s15 + $0xe0] sm:$0xff]  ;;  %v1867_v57 = vpop.permute.xlu1 %1866 }
 0x648   :  { %v1818_v18 = vmax.f32 %v1776_v7, 0.0  ;;  %v3495_v7 = vld [vmem:[%s6253_s15 + $0xf8] sm:$0xff] }
 0x649   :  { %v1817_v31 = vmax.f32 %v1771_v9, 0.0  ;;  %v3931_v29 = vpop.f32.mrb[26].mxu1  ;;  %4197 = vmatprep.subr.bf16.mxu0 %v4196_v17 }
 0x64a   :  { %v1786_v28 = vadd.f32 %v3931_v29, %v1642_v48  ;;  %v1780_v36 = vpop.f32.mrb[27].mxu1  ;;  %4199 = vmatpush3.bf16.msra.mxu0 %v4196_v17  ;;  %v3491_v48 = vld [vmem:[%s6253_s15 + $0xd8] sm:$0xff]  ;;  %v1862_v17 = vpop.permute.xlu0 %1861 }
 0x64b   :  { %v4200_v27 = vpack.c.bf16 %v1818_v18, %v1817_v31  ;;  %v1781_v30 = vadd.f32 %v1780_v36, %v1637_v5  ;;  %v3494_v5 = vld [vmem:[%s6253_s15 + $0xf0] sm:$0xff]  ;;  %v1887_v9 = vpop.permute.xlu1 %1886 }
 0x64c   :  { %v1820_v53 = vmax.f32 %v1786_v28, 0.0 }
 0x64d   :  { %v1819_v44 = vmax.f32 %v1781_v30, 0.0  ;;  %v3934_v19 = vpop.f32.mrb[28].mxu1  ;;  %4201 = vmatprep.subr.bf16.mxu0 %v4200_v27 }
 0x64e   :  { %v1796_v35 = vadd.f32 %v3934_v19, %v1652_v22  ;;  %v1790_v38 = vpop.f32.mrb[29].mxu1  ;;  %4203 = vmatpush3.bf16.msra.mxu0 %v4200_v27  ;;  %v1882_v18 = vpop.permute.xlu0 %1881 }
 0x64f   :  { %v4204_v40 = vpack.c.bf16 %v1820_v53, %v1819_v44  ;;  %v1791_v8 = vadd.f32 %v1790_v38, %v1647_v4  ;;  %v1877_v31 = vpop.permute.xlu1 %1876 }
 0x650   :  { %v1822_v58 = vmax.f32 %v1796_v35, 0.0  ;;  %v5498_v35 = vld [vmem:[%s6251_s13 + $0x8] sm:$0xff] }
 0x651   :  { %v1821_v60 = vmax.f32 %v1791_v8, 0.0  ;;  %v3937_v46 = vpop.f32.mrb[30].mxu1  ;;  %4205 = vmatprep.subr.bf16.mxu0 %v4204_v40 }
 0x652   :  { %v1806_v2 = vadd.f32 %v3937_v46, %v1662_v0  ;;  %v1800_v39 = vpop.f32.mrb[31].mxu1  ;;  %4207 = vmatpush3.bf16.msra.mxu0 %v4204_v40  ;;  %v1872_v29 = vpop.permute.xlu0 %1871 }
 0x653   :  { %v4208_v3 = vpack.c.bf16 %v1822_v58, %v1821_v60  ;;  %v1801_v49 = vadd.f32 %v1800_v39, %v1657_v54  ;;  %v1897_v27 = vpop.permute.xlu1 %1896  ;;  %v5508_v58 = vld [vmem:[%s6251_s13] sm:$0xff] }
 0x654   :  { %v1824_v6 = vmax.f32 %v1806_v2, 0.0 }
 0x655   :  { %v1823_v52 = vmax.f32 %v1801_v49, 0.0  ;;  %4209 = vmatprep.subr.bf16.mxu0 %v4208_v3 }
 0x656   :  { %4211 = vmatpush3.bf16.msra.mxu0 %v4208_v3  ;;  %v1892_v4 = vpop.permute.xlu0 %1891 }
 0x657   :  { %v4212_v16 = vpack.c.bf16 %v1824_v6, %v1823_v52  ;;  %v1907_v2 = vpop.permute.xlu1 %1906  ;;  %v5522_v52 = vld [vmem:[%s6251_s13 + $0x18] sm:$0xff] }
 0x659   :  { %4213 = vmatprep.subr.bf16.mxu0 %v4212_v16 }
 0x65a   :  { %4215 = vmatpush3.bf16.msra.mxu0 %v4212_v16  ;;  %v1902_v6 = vpop.permute.xlu0 %1901 }
 0x65d   :  { %3971 = vmatmul.mubr.f32.vlgmr.msra.gmra.mrb[32].mxu0 %v3481_v23 }
 0x65e   :  { %3973 = vmatprep.mubr.f32.mxu0 %v3482_v62 }
 0x661   :  { %3974 = vmatmul.mubr.f32.gmra.mrb[34].mxu0 %v3483_v63  ;;  %v5532_v63 = vld [vmem:[%s6251_s13 + $0x10] sm:$0xff] }
 0x662   :  { %3976 = vmatprep.mubr.f32.mxu0 %v3484_v1 }
 0x665   :  { %3977 = vmatmul.mubr.f32.gmra.mrb[36].mxu0 %v3485_v51 }
 0x666   :  { %3979 = vmatprep.mubr.f32.mxu0 %v3486_v25 }
 0x669   :  { %3980 = vmatmul.mubr.f32.gmra.mrb[38].mxu0 %v3487_v50 }
 0x66a   :  { %3982 = vmatprep.mubr.f32.mxu0 %v3488_v55 }
 0x66d   :  { %3983 = vmatmul.mubr.f32.gmra.mrb[40].mxu0 %v3489_v15 }
 0x66e   :  { %3985 = vmatprep.mubr.f32.mxu0 %v3490_v14 }
 0x671   :  { %3986 = vmatmul.mubr.f32.gmra.mrb[42].mxu0 %v3491_v48  ;;  %v5546_v48 = vld [vmem:[%s6251_s13 + $0x28] sm:$0xff] }
 0x672   :  { %3988 = vmatprep.mubr.f32.mxu0 %v3492_v10 }
 0x675   :  { %3989 = vmatmul.mubr.f32.gmra.mrb[44].mxu0 %v3493_v12 }
 0x676   :  { %3991 = vmatprep.mubr.f32.mxu0 %v3494_v5 }
 0x679   :  { %3992 = vmatmul.mubr.f32.gmra.mrb[46].mxu0 %v3495_v7  ;;  %v1927_v7 = vpop.permute.xlu1 %1926 }
 0x730   :  { %v3972_v28 = vpop.f32.mrb[32].mxu0 }
 0x731   :  { %v5489_v36 = vadd.f32 %v3972_v28, %v1867_v57  ;;  %v2005_v22 = vpop.f32.mrb[33].mxu0 }
 0x732   :  { %v5491_v30 = vadd.f32 %v2005_v22, %v1862_v17  ;;  %v1922_v17 = vpop.permute.xlu0 %1921 }
 0x733   :  { %v2085_v53 = vmax.f32 %v5489_v36, 0.0 }
 0x734   :  { %v2084_v44 = vmax.f32 %v5491_v30, 0.0  ;;  %v3975_v19 = vpop.f32.mrb[34].mxu0 }
 0x735   :  { %v2103_v38 = vmul.f32 %v5498_v35, %v2085_v53  ;;  %v5503_v40 = vadd.f32 %v3975_v19, %v1877_v31  ;;  %v2015_v8 = vpop.f32.mrb[35].mxu0  ;;  %v5571_v19 = vld [vmem:[%s6251_s13 + $0x30] sm:$0xff] }
 0x736   :  { %v2102_v0 = vmul.f32 %v5508_v58, %v2084_v44  ;;  %v5513_v60 = vadd.f32 %v2015_v8, %v1872_v29 }
 0x737   :  { %v6271_v46 = vmax.f32 %v5503_v40, 0.0  ;;  %v2121_v54 = vsel %vm77_vm0, %v2103_v38, 0.0 }
 0x738   :  { %v6272_v39 = vmax.f32 %v5513_v60, 0.0  ;;  %2122 = vadd.xlane.f32.xlu1 %v2121_v54  ;;  %v3978_v3 = vpop.f32.mrb[36].mxu0  ;;  %v2118_v49 = vsel %vm77_vm0, %v2102_v0, 0.0  ;;  %v1917_v54 = vpop.permute.xlu1 %1916 }
 0x739   :  { %v2105_v16 = vmul.f32 %v5522_v52, %v6271_v46  ;;  %v5527_v23 = vadd.f32 %v3978_v3, %v1887_v9  ;;  %v2025_v62 = vpop.f32.mrb[37].mxu0  ;;  %2119 = vadd.xlane.f32.xlu0 %v2118_v49  ;;  %v5558_v9 = vld [vmem:[%s6251_s13 + $0x20] sm:$0xff] }
 0x73a   :  { %v2104_v1 = vmul.f32 %v5532_v63, %v6272_v39  ;;  %v5537_v51 = vadd.f32 %v2025_v62, %v1882_v18 }
 0x73b   :  { %v6270_v25 = vmax.f32 %v5527_v23, 0.0  ;;  %v2127_v50 = vsel %vm77_vm0, %v2105_v16, 0.0 }
 0x73c   :  { %v6265_v55 = vmax.f32 %v5537_v51, 0.0  ;;  %v3981_v15 = vpop.f32.mrb[38].mxu0  ;;  %v2124_v14 = vsel %vm77_vm0, %v2104_v1, 0.0  ;;  %v1912_v1 = vpop.permute.xlu0 %1911 }
 0x73d   :  { %v2107_v10 = vmul.f32 %v5546_v48, %v6270_v25  ;;  %v5551_v12 = vadd.f32 %v3981_v15, %v1897_v27  ;;  %v2035_v5 = vpop.f32.mrb[39].mxu0  ;;  %2125 = vadd.xlane.f32.xlu1 %v2124_v14  ;;  %2128 = vadd.xlane.f32.xlu0 %v2127_v50  ;;  %v5595_v14 = vld [vmem:[%s6251_s13 + $0x40] sm:$0xff] }
 0x73e   :  { %v5553_v57 = vadd.f32 %v2035_v5, %v1892_v4  ;;  %v2106_v18 = vmul.f32 %v5558_v9, %v6265_v55 }
 0x73f   :  { %v2133_v31 = vsel %vm77_vm0, %v2107_v10, 0.0  ;;  %v6261_v29 = vmax.f32 %v5551_v12, 0.0 }
 0x740   :  { %v6266_v28 = vmax.f32 %v5553_v57, 0.0  ;;  %v3984_v22 = vpop.f32.mrb[40].mxu0  ;;  %v2130_v0 = vsel %vm77_vm0, %v2106_v18, 0.0 }
 0x741   :  { %v5566_v27 = vadd.f32 %v3984_v22, %v1907_v2  ;;  %v2045_v4 = vpop.f32.mrb[41].mxu0  ;;  %2134 = vadd.xlane.f32.xlu0 %v2133_v31  ;;  %v5582_v2 = vld [vmem:[%s6251_s13 + $0x38] sm:$0xff]  ;;  %v5606_v31 = vld [vmem:[%s6251_s13 + $0x48] sm:$0xff] }
 0x742   :  { %v2108_v38 = vmul.f32 %v5571_v19, %v6266_v28  ;;  %v5576_v8 = vadd.f32 %v2045_v4, %v1902_v6  ;;  %v2109_v3 = vmul.f32 %v5582_v2, %v6261_v29 }
 0x743   :  { %v6260_v49 = vmax.f32 %v5566_v27, 0.0 }
 0x744   :  { %v6263_v16 = vmax.f32 %v5576_v8, 0.0  ;;  %v3987_v62 = vpop.f32.mrb[42].mxu0  ;;  %v2136_v6 = vsel %vm77_vm0, %v2108_v38, 0.0 }
 0x745   :  { %v5590_v50 = vadd.f32 %v3987_v62, %v1917_v54  ;;  %v2055_v15 = vpop.f32.mrb[43].mxu0  ;;  %2137 = vadd.xlane.f32.xlu1 %v2136_v6  ;;  %2131 = vadd.xlane.f32.xlu0 %v2130_v0  ;;  %v2111_v22 = vmul.f32 %v5606_v31, %v6260_v49  ;;  %v2139_v54 = vsel %vm77_vm0, %v2109_v3, 0.0  ;;  %v5629_v3 = vld [vmem:[%s6251_s13 + $0x58] sm:$0xff] }
 0x746   :  { %v2110_v10 = vmul.f32 %v5595_v14, %v6263_v16  ;;  %v5600_v5 = vadd.f32 %v2055_v15, %v1912_v1  ;;  %v5619_v1 = vld [vmem:[%s6251_s13 + $0x50] sm:$0xff] }
 0x747   :  { %v6264_v18 = vmax.f32 %v5590_v50, 0.0 }
 0x748   :  { %v6262_v4 = vmax.f32 %v5600_v5, 0.0  ;;  %v3990_v38 = vpop.f32.mrb[44].mxu0  ;;  %v2142_v0 = vsel %vm77_vm0, %v2110_v10, 0.0  ;;  %v1937_v10 = vpop.permute.xlu1 %1936 }
 0x749   :  { %v5614_v62 = vadd.f32 %v3990_v38, %v1927_v7  ;;  %v2065_v6 = vpop.f32.mrb[45].mxu0  ;;  %2143 = vadd.xlane.f32.xlu1 %v2142_v0  ;;  %2140 = vadd.xlane.f32.xlu0 %v2139_v54  ;;  %v2113_v7 = vmul.f32 %v5629_v3, %v6264_v18  ;;  %v5643_v18 = vld [vmem:[%s6251_s13 + $0x60] sm:$0xff] }
 0x74a   :  { %v2112_v15 = vmul.f32 %v5619_v1, %v6262_v4  ;;  %v5624_v49 = vadd.f32 %v2065_v6, %v1922_v17  ;;  %v2145_v17 = vsel %vm77_vm0, %v2111_v22, 0.0  ;;  %v1932_v6 = vpop.permute.xlu0 %1931  ;;  %v5654_v22 = vld [vmem:[%s6251_s13 + $0x68] sm:$0xff] }
 0x74b   :  { %v6267_v38 = vmax.f32 %v5614_v62, 0.0 }
 0x74c   :  { %v6268_v0 = vmax.f32 %v5624_v49, 0.0  ;;  %v3993_v54 = vpop.f32.mrb[46].mxu0  ;;  %v2148_v29 = vsel %vm77_vm0, %v2112_v15, 0.0  ;;  %v2151_v15 = vsel %vm77_vm0, %v2113_v7, 0.0 }
 0x74d   :  { %v5638_v4 = vadd.f32 %v3993_v54, %v1937_v10  ;;  %v2075_v16 = vpop.f32.mrb[47].mxu0  ;;  %2149 = vadd.xlane.f32.xlu1 %v2148_v29  ;;  %2146 = vadd.xlane.f32.xlu0 %v2145_v17  ;;  %v2115_v29 = vmul.f32 %v5654_v22, %v6267_v38 }
 0x74e   :  { %v2114_v55 = vmul.f32 %v5643_v18, %v6268_v0  ;;  %v5648_v28 = vadd.f32 %v2075_v16, %v1932_v6  ;;  %v5665_v16 = vld [vmem:[%s6251_s13 + $0x70] sm:$0xff]  ;;  %v5673_v6 = vld [vmem:[%s6251_s13 + $0x78] sm:$0xff] }
 0x74f   :  { %v6273_v10 = vmax.f32 %v5638_v4, 0.0 }
 0x750   :  { %v6269_v54 = vmax.f32 %v5648_v28, 0.0  ;;  %v2154_v17 = vsel %vm77_vm0, %v2114_v55, 0.0 }
 0x751   :  { %2155 = vadd.xlane.f32.xlu1 %v2154_v17  ;;  %2152 = vadd.xlane.f32.xlu0 %v2151_v15  ;;  %v2117_v55 = vmul.f32 %v5673_v6, %v6273_v10  ;;  %v2157_v17 = vsel %vm77_vm0, %v2115_v29, 0.0 }
 0x752   :  { %v2116_v7 = vmul.f32 %v5665_v16, %v6269_v54 }
 0x753   :  { %v2163_v38 = vsel %vm77_vm0, %v2117_v55, 0.0 }
 0x754   :  { %v2160_v15 = vsel %vm77_vm0, %v2116_v7, 0.0 }
 0x755   :  { %2161 = vadd.xlane.f32.xlu1 %v2160_v15  ;;  %2158 = vadd.xlane.f32.xlu0 %v2157_v17 }
 0x759   :  { %2164 = vadd.xlane.f32.xlu0 %v2163_v38 }
 0x7c5   :  { %v2123_v0 = vpop.xlane.xlu1 %2122 }
 0x7c6   :  { %v2167_v54 = vmul.f32 0.0625, %v2123_v0  ;;  %v2120_v25 = vpop.xlane.xlu0 %2119 }
 0x7c7   :  { %v2166_v46 = vmul.f32 0.0625, %v2120_v25  ;;  %v6283_v25 = vmax.f32 %v5513_v60, 0.0 }
 0x7c8   :  { %v2183_v39 = vsub.f32 %v2085_v53, %v2167_v54  ;;  %v6284_v53 = vmax.f32 %v5503_v40, 0.0  ;;  %v6285_v40 = vmax.f32 %v5527_v23, 0.0  ;;  %v6286_v23 = vmax.f32 %v5553_v57, 0.0 }
 0x7c9   :  { %v2182_v34 = vsub.f32 %v2084_v44, %v2166_v46 }
 0x7ca   :  { %v5686_v10 = vmul.f32 %v5498_v35, %v2183_v39  ;;  %v2126_v7 = vpop.xlane.xlu1 %2125  ;;  %v2129_v29 = vpop.xlane.xlu0 %2128 }
 0x7cb   :  { %v5689_v15 = vmul.f32 %v5508_v58, %v2182_v34  ;;  %v2168_v55 = vmul.f32 0.0625, %v2126_v7  ;;  %v2169_v38 = vmul.f32 0.0625, %v2129_v29 }
 0x7cc   :  { %v2215_v0 = vmul.f32 %v5686_v10, %v5686_v10 }
 0x7cd   :  { %v2184_v36 = vsub.f32 %v6283_v25, %v2168_v55  ;;  %v2185_v30 = vsub.f32 %v6284_v53, %v2169_v38  ;;  %v2214_v44 = vmul.f32 %v5689_v15, %v5689_v15  ;;  %v6287_v53 = vmax.f32 %v5537_v51, 0.0 }
 0x7ce   :  { %v2135_v35 = vpop.xlane.xlu0 %2134  ;;  %v2233_v46 = vsel %vm77_vm0, %v2215_v0, 0.0 }
 0x7cf   :  { %v5701_v34 = vmul.f32 %v5532_v63, %v2184_v36  ;;  %v5704_v58 = vmul.f32 %v5522_v52, %v2185_v30  ;;  %v2171_v39 = vmul.f32 0.0625, %v2135_v35  ;;  %2234 = vadd.xlane.f32.xlu0 %v2233_v46  ;;  %v2230_v60 = vsel %vm77_vm0, %v2214_v44, 0.0 }
 0x7d0   :  { %2231 = vadd.xlane.f32.xlu1 %v2230_v60 }
 0x7d1   :  { %v2187_v54 = vsub.f32 %v6285_v40, %v2171_v39  ;;  %v2216_v17 = vmul.f32 %v5701_v34, %v5701_v34  ;;  %v2217_v7 = vmul.f32 %v5704_v58, %v5704_v58 }
 0x7d2   :  { %v2138_v29 = vpop.xlane.xlu1 %2137  ;;  %v2132_v63 = vpop.xlane.xlu0 %2131 }
 0x7d3   :  { %v5714_v55 = vmul.f32 %v5546_v48, %v2187_v54  ;;  %v2172_v52 = vmul.f32 0.0625, %v2138_v29  ;;  %v2170_v38 = vmul.f32 0.0625, %v2132_v63  ;;  %v2236_v0 = vsel %vm77_vm0, %v2216_v17, 0.0 }
 0x7d4   :  { %2237 = vadd.xlane.f32.xlu1 %v2236_v0  ;;  %v2239_v25 = vsel %vm77_vm0, %v2217_v7, 0.0  ;;  %v6288_v54 = vmax.f32 %v5576_v8, 0.0  ;;  %v6289_v17 = vmax.f32 %v5551_v12, 0.0 }
 0x7d5   :  { %v2188_v36 = vsub.f32 %v6286_v23, %v2172_v52  ;;  %v2186_v30 = vsub.f32 %v6287_v53, %v2170_v38  ;;  %2240 = vadd.xlane.f32.xlu0 %v2239_v25  ;;  %v2219_v44 = vmul.f32 %v5714_v55, %v5714_v55  ;;  %v6290_v25 = vmax.f32 %v5600_v5, 0.0 }
 0x7d6   :  { %v2144_v35 = vpop.xlane.xlu1 %2143  ;;  %v2141_v48 = vpop.xlane.xlu0 %2140 }
 0x7d7   :  { %v5725_v46 = vmul.f32 %v5558_v9, %v2186_v30  ;;  %v2174_v39 = vmul.f32 0.0625, %v2144_v35  ;;  %v2173_v60 = vmul.f32 0.0625, %v2141_v48  ;;  %v5728_v40 = vmul.f32 %v5571_v19, %v2188_v36 }
 0x7d8   :  { %v2245_v57 = vsel %vm77_vm0, %v2219_v44, 0.0  ;;  %v6291_v36 = vmax.f32 %v5566_v27, 0.0 }
 0x7d9   :  { %v2190_v51 = vsub.f32 %v6288_v54, %v2174_v39  ;;  %v2189_v7 = vsub.f32 %v6289_v17, %v2173_v60  ;;  %2246 = vadd.xlane.f32.xlu0 %v2245_v57  ;;  %v2218_v29 = vmul.f32 %v5725_v46, %v5725_v46  ;;  %v2220_v12 = vmul.f32 %v5728_v40, %v5728_v40 }
 0x7da   :  { %v2150_v63 = vpop.xlane.xlu1 %2149  ;;  %v2147_v9 = vpop.xlane.xlu0 %2146  ;;  %v6292_v57 = vmax.f32 %v5624_v49, 0.0 }
 0x7db   :  { %v5738_v52 = vmul.f32 %v5582_v2, %v2189_v7  ;;  %v2176_v38 = vmul.f32 0.0625, %v2150_v63  ;;  %v2175_v19 = vmul.f32 0.0625, %v2147_v9  ;;  %v5741_v0 = vmul.f32 %v5595_v14, %v2190_v51 }
 0x7dc   :  { %v2242_v8 = vsel %vm77_vm0, %v2218_v29, 0.0  ;;  %v2248_v5 = vsel %vm77_vm0, %v2220_v12, 0.0  ;;  %v6293_v51 = vmax.f32 %v5590_v50, 0.0 }
 0x7dd   :  { %v2192_v23 = vsub.f32 %v6290_v25, %v2176_v38  ;;  %v2191_v53 = vsub.f32 %v6291_v36, %v2175_v19  ;;  %2243 = vadd.xlane.f32.xlu1 %v2242_v8  ;;  %v2221_v2 = vmul.f32 %v5738_v52, %v5738_v52  ;;  %v2222_v27 = vmul.f32 %v5741_v0, %v5741_v0 }
 0x7de   :  { %v2156_v30 = vpop.xlane.xlu1 %2155  ;;  %v2153_v44 = vpop.xlane.xlu0 %2152  ;;  %v6294_v8 = vmax.f32 %v5648_v28, 0.0  ;;  %v6295_v25 = vmax.f32 %v5614_v62, 0.0 }
 0x7df   :  { %v5753_v14 = vmul.f32 %v5606_v31, %v2191_v53  ;;  %v2178_v35 = vmul.f32 0.0625, %v2156_v30  ;;  %v2177_v48 = vmul.f32 0.0625, %v2153_v44  ;;  %v5756_v39 = vmul.f32 %v5619_v1, %v2192_v23 }
 0x7e0   :  { %v2251_v60 = vsel %vm77_vm0, %v2221_v2, 0.0  ;;  %v2254_v49 = vsel %vm77_vm0, %v2222_v27, 0.0  ;;  %v6296_v44 = vmax.f32 %v5638_v4, 0.0 }
 0x7e1   :  { %v2194_v54 = vsub.f32 %v6292_v57, %v2178_v35  ;;  %v2193_v17 = vsub.f32 %v6293_v51, %v2177_v48  ;;  %2249 = vadd.xlane.f32.xlu1 %v2248_v5  ;;  %2252 = vadd.xlane.f32.xlu0 %v2251_v60  ;;  %v2223_v31 = vmul.f32 %v5753_v14, %v5753_v14 }
 0x7e2   :  { %v2162_v1 = vpop.xlane.xlu1 %2161  ;;  %v2159_v7 = vpop.xlane.xlu0 %2158  ;;  %v2224_v19 = vmul.f32 %v5756_v39, %v5756_v39 }
 0x7e3   :  { %v5769_v29 = vmul.f32 %v5629_v3, %v2193_v17  ;;  %v2180_v63 = vmul.f32 0.0625, %v2162_v1  ;;  %v2179_v9 = vmul.f32 0.0625, %v2159_v7  ;;  %v5772_v38 = vmul.f32 %v5643_v18, %v2194_v54 }
 0x7e4   :  { %v2257_v50 = vsel %vm77_vm0, %v2223_v31, 0.0  ;;  %v2260_v28 = vsel %vm77_vm0, %v2224_v19, 0.0 }
 0x7e5   :  { %v2196_v12 = vsub.f32 %v6294_v8, %v2180_v63  ;;  %v2195_v23 = vsub.f32 %v6295_v25, %v2179_v9  ;;  %2255 = vadd.xlane.f32.xlu1 %v2254_v49  ;;  %2258 = vadd.xlane.f32.xlu0 %v2257_v50  ;;  %v2225_v3 = vmul.f32 %v5769_v29, %v5769_v29 }
 0x7e6   :  { %v2165_v18 = vpop.xlane.xlu0 %2164  ;;  %v2226_v62 = vmul.f32 %v5772_v38, %v5772_v38 }
 0x7e7   :  { %v5785_v36 = vmul.f32 %v5654_v22, %v2195_v23  ;;  %v2181_v53 = vmul.f32 0.0625, %v2165_v18  ;;  %v2263_v2 = vsel %vm77_vm0, %v2225_v3, 0.0  ;;  %v5789_v30 = vmul.f32 %v5665_v16, %v2196_v12 }
 0x7e8   :  { %v2266_v16 = vsel %vm77_vm0, %v2226_v62, 0.0 }
 0x7e9   :  { %v2197_v35 = vsub.f32 %v6296_v44, %v2181_v53  ;;  %2261 = vadd.xlane.f32.xlu1 %v2260_v28  ;;  %2264 = vadd.xlane.f32.xlu0 %v2263_v2  ;;  %v2227_v22 = vmul.f32 %v5785_v36, %v5785_v36  ;;  %v2228_v60 = vmul.f32 %v5789_v30, %v5789_v30  ;;  %v5812_v53 = vld [vmem:[%s6248_s10] ss:$0 sm:$0xff] }
 0x7ea   :  { %v5818_v44 = vld [vmem:[%s6249_s11] ss:$0 sm:$0xff] }
 0x7eb   :  { %v5799_v48 = vmul.f32 %v5673_v6, %v2197_v35  ;;  %v2269_v5 = vsel %vm77_vm0, %v2227_v22, 0.0  ;;  %v2272_v57 = vsel %vm77_vm0, %v2228_v60, 0.0 }
 0x7ed   :  { %2267 = vadd.xlane.f32.xlu1 %v2266_v16  ;;  %2270 = vadd.xlane.f32.xlu0 %v2269_v5  ;;  %v2229_v4 = vmul.f32 %v5799_v48, %v5799_v48 }
 0x7ef   :  { %v2275_v27 = vsel %vm77_vm0, %v2229_v4, 0.0 }
 0x7f1   :  { %2273 = vadd.xlane.f32.xlu1 %v2272_v57  ;;  %2276 = vadd.xlane.f32.xlu0 %v2275_v27  ;;  %v2387_v27 = vld [vmem:[%s6252_s14 + $0x8] sm:$0xff] }
 0x85c   :  { %v2235_v6 = vpop.xlane.xlu0 %2234 }
 0x85d   :  { %v2279_v54 = vmul.f32 0.0625, %v2235_v6  ;;  %v2232_v51 = vpop.xlane.xlu1 %2231 }
 0x85e   :  { %v2278_v17 = vmul.f32 0.0625, %v2232_v51 }
 0x85f   :  { %v2295_v31 = vadd.f32 1e-05, %v2279_v54 }
 0x860   :  { %v2294_v1 = vadd.f32 1e-05, %v2278_v17 }
 0x861   :  { %4364 = vrsqrt.f32 %v2295_v31  ;;  %v2238_v7 = vpop.xlane.xlu1 %2237 }
 0x862   :  { %4366 = vrsqrt.f32 %v2294_v1  ;;  %v2280_v63 = vmul.f32 0.0625, %v2238_v7  ;;  %v2241_v9 = vpop.xlane.xlu0 %2240 }
 0x863   :  { %v2281_v49 = vmul.f32 0.0625, %v2241_v9 }
 0x864   :  { %v2296_v50 = vadd.f32 1e-05, %v2280_v63 }
 0x865   :  { %v2297_v19 = vadd.f32 1e-05, %v2281_v49 }
 0x866   :  { %4368 = vrsqrt.f32 %v2296_v50  ;;  %v2247_v8 = vpop.xlane.xlu0 %2246 }
 0x867   :  { %4370 = vrsqrt.f32 %v2297_v19  ;;  %v2283_v12 = vmul.f32 0.0625, %v2247_v8 }
 0x869   :  { %v2299_v25 = vadd.f32 1e-05, %v2283_v12 }
 0x86a   :  { %v2244_v23 = vpop.xlane.xlu1 %2243 }
 0x86b   :  { %v4365_v3 = vpop.eup %4364  ;;  %4372 = vrsqrt.f32 %v2299_v25  ;;  %v2282_v18 = vmul.f32 0.0625, %v2244_v23 }
 0x86c   :  { %v4367_v2 = vpop.eup %4366  ;;  %v2327_v28 = vmul.f32 %v4365_v3, %v5686_v10 }
 0x86d   :  { %v2298_v62 = vadd.f32 1e-05, %v2282_v18  ;;  %v2326_v35 = vmul.f32 %v4367_v2, %v5689_v15  ;;  %v2386_v15 = vld [vmem:[%s6252_s14] sm:$0xff] }
 0x86e   :  { %v2250_v22 = vpop.xlane.xlu1 %2249  ;;  %v2253_v5 = vpop.xlane.xlu0 %2252  ;;  %v2349_v16 = vmul.f32 %v5812_v53, %v2327_v28 }
 0x86f   :  { %4374 = vrsqrt.f32 %v2298_v62  ;;  %v2284_v60 = vmul.f32 0.0625, %v2250_v22  ;;  %v2285_v4 = vmul.f32 0.0625, %v2253_v5  ;;  %v2348_v10 = vmul.f32 %v5812_v53, %v2326_v35 }
 0x870   :  { %v4369_v57 = vpop.eup %4368  ;;  %v2371_v6 = vadd.f32 %v5818_v44, %v2349_v16 }
 0x871   :  { %v4371_v54 = vpop.eup %4370  ;;  %v2300_v51 = vadd.f32 1e-05, %v2284_v60  ;;  %v2301_v17 = vadd.f32 1e-05, %v2285_v4  ;;  %v2370_v31 = vadd.f32 %v5818_v44, %v2348_v10  ;;  %v2328_v1 = vmul.f32 %v4369_v57, %v5701_v34  ;;  %v2388_v34 = vld [vmem:[%s6252_s14 + $0x10] sm:$0xff] }
 0x872   :  { %v2256_v7 = vpop.xlane.xlu1 %2255  ;;  %v2259_v63 = vpop.xlane.xlu0 %2258  ;;  %v5832_v9 = vadd.f32 %v2387_v27, %v2371_v6  ;;  %v2329_v49 = vmul.f32 %v4371_v54, %v5704_v58  ;;  %v2389_v58 = vld [vmem:[%s6252_s14 + $0x18] sm:$0xff] }
 0x873   :  { %4376 = vrsqrt.f32 %v2300_v51  ;;  %v2286_v50 = vmul.f32 0.0625, %v2256_v7  ;;  %v2287_v19 = vmul.f32 0.0625, %v2259_v63  ;;  %v5835_v8 = vadd.f32 %v2386_v15, %v2370_v31 }
 0x874   :  { %4378 = vrsqrt.f32 %v2301_v17  ;;  %v2419_v12 = vmax.f32 %v5832_v9, -3.4028235e+38  ;;  %v2350_v25 = vmul.f32 %v5812_v53, %v2328_v1  ;;  %v2351_v23 = vmul.f32 %v5812_v53, %v2329_v49 }
 0x875   :  { %v4373_v3 = vpop.eup %4372  ;;  %v2302_v18 = vadd.f32 1e-05, %v2286_v50  ;;  %v2303_v2 = vadd.f32 1e-05, %v2287_v19  ;;  %v2418_v28 = vmax.f32 %v5835_v8, -3.4028235e+38 }
 0x876   :  { %v2262_v62 = vpop.xlane.xlu1 %2261  ;;  %v2265_v35 = vpop.xlane.xlu0 %2264  ;;  %v2437_v22 = vsel %vm77_vm0, %v2419_v12, -inf  ;;  %v2372_v5 = vadd.f32 %v5818_v44, %v2350_v25  ;;  %v2373_v16 = vadd.f32 %v5818_v44, %v2351_v23  ;;  %v2331_v60 = vmul.f32 %v4373_v3, %v5714_v55  ;;  %v2391_v55 = vld [vmem:[%s6252_s14 + $0x28] sm:$0xff] }
 0x877   :  { %4380 = vrsqrt.f32 %v2302_v18  ;;  %v2288_v4 = vmul.f32 0.0625, %v2262_v62  ;;  %v2289_v27 = vmul.f32 0.0625, %v2265_v35  ;;  %2438 = vmax.xlane.f32.xlu0 %v2437_v22  ;;  %v2434_v10 = vsel %vm77_vm0, %v2418_v28, -inf }
 0x878   :  { %4382 = vrsqrt.f32 %v2303_v2  ;;  %2435 = vmax.xlane.f32.xlu1 %v2434_v10  ;;  %v5856_v57 = vadd.f32 %v2388_v34, %v2372_v5  ;;  %v5858_v6 = vadd.f32 %v2389_v58, %v2373_v16  ;;  %v2353_v15 = vmul.f32 %v5812_v53, %v2331_v60  ;;  %v2390_v16 = vld [vmem:[%s6252_s14 + $0x20] sm:$0xff] }
 0x879   :  { %v4375_v54 = vpop.eup %4374  ;;  %v2304_v51 = vadd.f32 1e-05, %v2288_v4  ;;  %v2305_v17 = vadd.f32 1e-05, %v2289_v27 }
 0x87a   :  { %v2268_v31 = vpop.xlane.xlu1 %2267  ;;  %v2271_v1 = vpop.xlane.xlu0 %2270  ;;  %v2420_v7 = vmax.f32 %v5856_v57, -3.4028235e+38  ;;  %v2421_v63 = vmax.f32 %v5858_v6, -3.4028235e+38  ;;  %v2375_v49 = vadd.f32 %v5818_v44, %v2353_v15  ;;  %v2330_v50 = vmul.f32 %v4375_v54, %v5725_v46 }
 0x87b   :  { %4384 = vrsqrt.f32 %v2304_v51  ;;  %v2290_v19 = vmul.f32 0.0625, %v2268_v31  ;;  %v2291_v25 = vmul.f32 0.0625, %v2271_v1 }
 0x87c   :  { %4386 = vrsqrt.f32 %v2305_v17  ;;  %v2440_v34 = vsel %vm77_vm0, %v2420_v7, -inf  ;;  %v2443_v23 = vsel %vm77_vm0, %v2421_v63, -inf  ;;  %v5874_v58 = vadd.f32 %v2391_v55, %v2375_v49 }
 0x87d   :  { %v4377_v3 = vpop.eup %4376  ;;  %v2306_v18 = vadd.f32 1e-05, %v2290_v19  ;;  %v2307_v2 = vadd.f32 1e-05, %v2291_v25  ;;  %2441 = vmax.xlane.f32.xlu1 %v2440_v34  ;;  %2444 = vmax.xlane.f32.xlu0 %v2443_v23  ;;  %v2352_v46 = vmul.f32 %v5812_v53, %v2330_v50  ;;  %v2393_v34 = vld [vmem:[%s6252_s14 + $0x38] sm:$0xff] }
 0x87e   :  { %v4379_v62 = vpop.eup %4378  ;;  %v2274_v35 = vpop.xlane.xlu1 %2273  ;;  %v2423_v5 = vmax.f32 %v5874_v58, -3.4028235e+38  ;;  %v2332_v60 = vmul.f32 %v4377_v3, %v5728_v40  ;;  %v2392_v40 = vld [vmem:[%s6252_s14 + $0x30] sm:$0xff] }
 0x87f   :  { %v2277_v22 = vpop.xlane.xlu0 %2276  ;;  %4388 = vrsqrt.f32 %v2306_v18  ;;  %v2292_v4 = vmul.f32 0.0625, %v2274_v35  ;;  %v2374_v10 = vadd.f32 %v5818_v44, %v2352_v46  ;;  %v2333_v51 = vmul.f32 %v4379_v62, %v5738_v52  ;;  %v2394_v62 = vld [vmem:[%s6252_s14 + $0x40] sm:$0xff] }
 0x880   :  { %v2293_v27 = vmul.f32 0.0625, %v2277_v22  ;;  %4390 = vrsqrt.f32 %v2307_v2  ;;  %v2449_v15 = vsel %vm77_vm0, %v2423_v5, -inf  ;;  %v2354_v54 = vmul.f32 %v5812_v53, %v2332_v60 }
 0x881   :  { %v4381_v17 = vpop.eup %4380  ;;  %v2308_v55 = vadd.f32 1e-05, %v2292_v4  ;;  %2450 = vmax.xlane.f32.xlu0 %v2449_v15  ;;  %v5888_v1 = vadd.f32 %v2390_v16, %v2374_v10  ;;  %v2355_v19 = vmul.f32 %v5812_v53, %v2333_v51  ;;  %v2395_v4 = vld [vmem:[%s6252_s14 + $0x48] sm:$0xff] }
 0x882   :  { %v2309_v31 = vadd.f32 1e-05, %v2293_v27  ;;  %v4383_v49 = vpop.eup %4382  ;;  %v2376_v50 = vadd.f32 %v5818_v44, %v2354_v54  ;;  %v2334_v25 = vmul.f32 %v4381_v17, %v5741_v0 }
 0x883   :  { %4392 = vrsqrt.f32 %v2308_v55  ;;  %v2422_v52 = vmax.f32 %v5888_v1, -3.4028235e+38  ;;  %v2335_v23 = vmul.f32 %v4383_v49, %v5753_v14  ;;  %v2377_v18 = vadd.f32 %v5818_v44, %v2355_v19 }
 0x884   :  { %4394 = vrsqrt.f32 %v2309_v31  ;;  %v5901_v3 = vadd.f32 %v2392_v40, %v2376_v50  ;;  %v2356_v2 = vmul.f32 %v5812_v53, %v2334_v25 }
 0x885   :  { %v4385_v46 = vpop.eup %4384  ;;  %v2446_v0 = vsel %vm77_vm0, %v2422_v52, -inf  ;;  %v2357_v35 = vmul.f32 %v5812_v53, %v2335_v23  ;;  %v5913_v16 = vadd.f32 %v2393_v34, %v2377_v18  ;;  %v2397_v34 = vld [vmem:[%s6252_s14 + $0x58] sm:$0xff] }
 0x886   :  { %v4387_v22 = vpop.eup %4386  ;;  %2447 = vmax.xlane.f32.xlu1 %v2446_v0  ;;  %v2424_v14 = vmax.f32 %v5901_v3, -3.4028235e+38  ;;  %v2378_v60 = vadd.f32 %v5818_v44, %v2356_v2  ;;  %v2336_v27 = vmul.f32 %v4385_v46, %v5756_v39  ;;  %v2396_v39 = vld [vmem:[%s6252_s14 + $0x50] sm:$0xff] }
 0x887   :  { %v2379_v10 = vadd.f32 %v5818_v44, %v2357_v35  ;;  %v2337_v15 = vmul.f32 %v4387_v22, %v5769_v29  ;;  %v2425_v51 = vmax.f32 %v5913_v16, -3.4028235e+38 }
 0x888   :  { %v2452_v54 = vsel %vm77_vm0, %v2424_v14, -inf  ;;  %v5926_v17 = vadd.f32 %v2394_v62, %v2378_v60  ;;  %v2358_v55 = vmul.f32 %v5812_v53, %v2336_v27 }
 0x889   :  { %v4389_v31 = vpop.eup %4388  ;;  %v5929_v40 = vadd.f32 %v2395_v4, %v2379_v10  ;;  %v2359_v49 = vmul.f32 %v5812_v53, %v2337_v15  ;;  %v2455_v50 = vsel %vm77_vm0, %v2425_v51, -inf  ;;  %v2398_v4 = vld [vmem:[%s6252_s14 + $0x60] sm:$0xff] }
 0x88a   :  { %v4391_v29 = vpop.eup %4390  ;;  %2453 = vmax.xlane.f32.xlu1 %v2452_v54  ;;  %v2426_v19 = vmax.f32 %v5926_v17, -3.4028235e+38  ;;  %v2380_v25 = vadd.f32 %v5818_v44, %v2358_v55  ;;  %v2338_v23 = vmul.f32 %v4389_v31, %v5772_v38  ;;  %2456 = vmax.xlane.f32.xlu0 %v2455_v50  ;;  %v2399_v54 = vld [vmem:[%s6252_s14 + $0x68] sm:$0xff] }
 0x88b   :  { %v2427_v18 = vmax.f32 %v5929_v40, -3.4028235e+38  ;;  %v2381_v2 = vadd.f32 %v5818_v44, %v2359_v49  ;;  %v2339_v46 = vmul.f32 %v4391_v29, %v5785_v36 }
 0x88c   :  { %v2458_v0 = vsel %vm77_vm0, %v2426_v19, -inf  ;;  %v5950_v62 = vadd.f32 %v2396_v39, %v2380_v25  ;;  %v2360_v35 = vmul.f32 %v5812_v53, %v2338_v23  ;;  %v2400_v23 = vld [vmem:[%s6252_s14 + $0x70] sm:$0xff] }
 0x88d   :  { %v4393_v22 = vpop.eup %4392  ;;  %v2461_v38 = vsel %vm77_vm0, %v2427_v18, -inf  ;;  %v5956_v60 = vadd.f32 %v2397_v34, %v2381_v2  ;;  %v2361_v36 = vmul.f32 %v5812_v53, %v2339_v46 }
 0x88e   :  { %v4395_v27 = vpop.eup %4394  ;;  %2459 = vmax.xlane.f32.xlu1 %v2458_v0  ;;  %v2428_v10 = vmax.f32 %v5950_v62, -3.4028235e+38  ;;  %v2382_v15 = vadd.f32 %v5818_v44, %v2360_v35  ;;  %v2340_v55 = vmul.f32 %v4393_v22, %v5789_v30  ;;  %2462 = vmax.xlane.f32.xlu0 %v2461_v38  ;;  %v2401_v0 = vld [vmem:[%s6252_s14 + $0x78] sm:$0xff]  ;;  %s4571_s14 = smov 112  }
 0x88f   :  { %v2429_v31 = vmax.f32 %v5956_v60, -3.4028235e+38  ;;  %v2383_v39 = vadd.f32 %v5818_v44, %v2361_v36  ;;  %v2341_v49 = vmul.f32 %v4395_v27, %v5799_v48 }
 0x890   :  { %v2464_v29 = vsel %vm77_vm0, %v2428_v10, -inf  ;;  %v5974_v50 = vadd.f32 %v2398_v4, %v2382_v15  ;;  %v2362_v25 = vmul.f32 %v5812_v53, %v2340_v55 }
 0x891   :  { %v2467_v34 = vsel %vm77_vm0, %v2429_v31, -inf  ;;  %v5980_v30 = vadd.f32 %v2399_v54, %v2383_v39  ;;  %v2363_v48 = vmul.f32 %v5812_v53, %v2341_v49 }
 0x892   :  { %2465 = vmax.xlane.f32.xlu1 %v2464_v29  ;;  %v2430_v2 = vmax.f32 %v5974_v50, -3.4028235e+38  ;;  %v2384_v46 = vadd.f32 %v5818_v44, %v2362_v25  ;;  %2468 = vmax.xlane.f32.xlu0 %v2467_v34 }
 0x893   :  { %v2431_v35 = vmax.f32 %v5980_v30, -3.4028235e+38  ;;  %v2385_v22 = vadd.f32 %v5818_v44, %v2363_v48 }
 0x894   :  { %v2470_v38 = vsel %vm77_vm0, %v2430_v2, -inf  ;;  %v5996_v4 = vadd.f32 %v2400_v23, %v2384_v46 }
 0x895   :  { %v2473_v53 = vsel %vm77_vm0, %v2431_v35, -inf  ;;  %v6001_v36 = vadd.f32 %v2401_v0, %v2385_v22 }
 0x896   :  { %2471 = vmax.xlane.f32.xlu1 %v2470_v38  ;;  %v2432_v27 = vmax.f32 %v5996_v4, -3.4028235e+38  ;;  %2474 = vmax.xlane.f32.xlu0 %v2473_v53 }
 0x897   :  { %v2433_v15 = vmax.f32 %v6001_v36, -3.4028235e+38 }
 0x898   :  { %v2476_v44 = vsel %vm77_vm0, %v2432_v27, -inf }
 0x899   :  { %v2479_v54 = vsel %vm77_vm0, %v2433_v15, -inf }
 0x89a   :  { %2477 = vmax.xlane.f32.xlu1 %v2476_v44  ;;  %2480 = vmax.xlane.f32.xlu0 %v2479_v54 }
 0x904   :  { %v2439_v55 = vpop.xlane.xlu0 %2438 }
 0x905   :  { %v2483_v39 = vsub.f32 %v2419_v12, %v2439_v55  ;;  %v2436_v49 = vpop.xlane.xlu1 %2435 }
 0x906   :  { %v2482_v29 = vsub.f32 %v2418_v28, %v2436_v49 }
 0x907   :  { %v2500_v25 = vmul.f32 1.442695, %v2483_v39 }
 0x908   :  { %v2498_v34 = vmul.f32 1.442695, %v2482_v29 }
 0x909   :  { %4396 = vpow2.f32 %v2500_v25 }
 0x90a   :  { %4398 = vpow2.f32 %v2498_v34  ;;  %v2442_v23 = vpop.xlane.xlu1 %2441  ;;  %v2445_v48 = vpop.xlane.xlu0 %2444 }
 0x90b   :  { %v2484_v46 = vsub.f32 %v2420_v7, %v2442_v23  ;;  %v2485_v0 = vsub.f32 %v2421_v63, %v2445_v48 }
 0x90d   :  { %v2502_v22 = vmul.f32 1.442695, %v2484_v46  ;;  %v2504_v38 = vmul.f32 1.442695, %v2485_v0 }
 0x90e   :  { %v2451_v9 = vpop.xlane.xlu0 %2450 }
 0x90f   :  { %4400 = vpow2.f32 %v2502_v22  ;;  %v2487_v8 = vsub.f32 %v2423_v5, %v2451_v9 }
 0x910   :  { %4402 = vpow2.f32 %v2504_v38 }
 0x911   :  { %v2508_v12 = vmul.f32 1.442695, %v2487_v8 }
 0x913   :  { %v6021_v28 = vpop.eup %4396  ;;  %4404 = vpow2.f32 %v2508_v12  ;;  %v2448_v53 = vpop.xlane.xlu1 %2447 }
 0x914   :  { %v6023_v44 = vpop.eup %4398  ;;  %v2486_v57 = vsub.f32 %v2422_v52, %v2448_v53  ;;  %v2533_v6 = vsel %vm77_vm0, %v6021_v28, 0.0 }
 0x915   :  { %2534 = vadd.xlane.f32.xlu0 %v2533_v6  ;;  %v2530_v7 = vsel %vm77_vm0, %v6023_v44, 0.0 }
 0x916   :  { %v2506_v63 = vmul.f32 1.442695, %v2486_v57  ;;  %2531 = vadd.xlane.f32.xlu1 %v2530_v7 }
 0x917   :  { %v2454_v58 = vpop.xlane.xlu1 %2453  ;;  %v2457_v54 = vpop.xlane.xlu0 %2456 }
 0x918   :  { %4406 = vpow2.f32 %v2506_v63  ;;  %v2488_v5 = vsub.f32 %v2424_v14, %v2454_v58  ;;  %v2489_v1 = vsub.f32 %v2425_v51, %v2457_v54 }
 0x919   :  { %v6033_v55 = vpop.eup %4400 }
 0x91a   :  { %v6037_v52 = vpop.eup %4402  ;;  %v2510_v39 = vmul.f32 1.442695, %v2488_v5  ;;  %v2536_v49 = vsel %vm77_vm0, %v6033_v55, 0.0  ;;  %v2512_v29 = vmul.f32 1.442695, %v2489_v1 }
 0x91b   :  { %v2460_v25 = vpop.xlane.xlu1 %2459  ;;  %2537 = vadd.xlane.f32.xlu1 %v2536_v49  ;;  %v2539_v34 = vsel %vm77_vm0, %v6037_v52, 0.0  ;;  %v2463_v14 = vpop.xlane.xlu0 %2462 }
 0x91c   :  { %4408 = vpow2.f32 %v2510_v39  ;;  %v2490_v3 = vsub.f32 %v2426_v19, %v2460_v25  ;;  %2540 = vadd.xlane.f32.xlu0 %v2539_v34  ;;  %v2491_v51 = vsub.f32 %v2427_v18, %v2463_v14 }
 0x91d   :  { %v6045_v16 = vpop.eup %4404  ;;  %4410 = vpow2.f32 %v2512_v29 }
 0x91e   :  { %v2514_v23 = vmul.f32 1.442695, %v2490_v3  ;;  %v2545_v48 = vsel %vm77_vm0, %v6045_v16, 0.0  ;;  %v2516_v46 = vmul.f32 1.442695, %v2491_v51 }
 0x91f   :  { %v2466_v0 = vpop.xlane.xlu1 %2465  ;;  %v2469_v17 = vpop.xlane.xlu0 %2468 }
 0x920   :  { %4412 = vpow2.f32 %v2514_v23  ;;  %v2492_v22 = vsub.f32 %v2428_v10, %v2466_v0  ;;  %2546 = vadd.xlane.f32.xlu0 %v2545_v48  ;;  %v2493_v19 = vsub.f32 %v2429_v31, %v2469_v17  ;;  %v6118_v48 = vstv %s6255_s17  ;;  %s4573_s17 = smov 8  }
 0x921   :  { %4414 = vpow2.f32 %v2516_v46  ;;  %v1209_v46 = vadd.f32 %v5119_v37, %v6118_v48  ;;  %v1204_v0 = vadd.f32 %v5121_v42, %v6118_v48  ;;  %v1224_v42 = vadd.f32 %v5244_v24, %v6118_v48 }
 0x922   :  { %v6055_v38 = vpop.eup %4406  ;;  %v2518_v40 = vmul.f32 1.442695, %v2492_v22  ;;  %v2520_v18 = vmul.f32 1.442695, %v2493_v19  ;;  %v1219_v19 = vadd.f32 %v5123_v41, %v6118_v48  ;;  %v1239_v41 = vadd.f32 %v5249_v20, %v6118_v48 }
 0x923   :  { %v2472_v9 = vpop.xlane.xlu1 %2471  ;;  %v2542_v8 = vsel %vm77_vm0, %v6055_v38, 0.0  ;;  %v2475_v62 = vpop.xlane.xlu0 %2474  ;;  %v3515_v22 = vmul.f32 -1.442695, %v1209_v46  ;;  %v3514_v17 = vmul.f32 -1.442695, %v1204_v0  ;;  %v1249_v24 = vadd.f32 %v5256_v61, %v6118_v48 }
 0x924   :  { %4416 = vpow2.f32 %v2518_v40  ;;  %v2494_v12 = vsub.f32 %v2430_v2, %v2472_v9  ;;  %2543 = vadd.xlane.f32.xlu1 %v2542_v8  ;;  %v2495_v10 = vsub.f32 %v2431_v35, %v2475_v62  ;;  %v3517_v40 = vmul.f32 -1.442695, %v1219_v19 }
 0x925   :  { %4418 = vpow2.f32 %v2520_v18  ;;  %v1229_v9 = vadd.f32 %v5239_v11, %v6118_v48  ;;  %v1259_v61 = vadd.f32 %v5263_v33, %v6118_v48  ;;  %v1254_v46 = vadd.f32 %v5265_v56, %v6118_v48 }
 0x926   :  { %v6063_v60 = vpop.eup %4408  ;;  %v2522_v31 = vmul.f32 1.442695, %v2494_v12  ;;  %v2524_v57 = vmul.f32 1.442695, %v2495_v10  ;;  %v3518_v10 = vmul.f32 -1.442695, %v1224_v42 }
 0x927   :  { %v6065_v53 = vpop.eup %4410  ;;  %v2478_v6 = vpop.xlane.xlu1 %2477  ;;  %v2548_v7 = vsel %vm77_vm0, %v6063_v60, 0.0  ;;  %v3519_v8 = vmul.f32 -1.442695, %v1229_v9 }
 0x928   :  { %4420 = vpow2.f32 %v2522_v31  ;;  %v2496_v50 = vsub.f32 %v2432_v27, %v2478_v6  ;;  %v2481_v2 = vpop.xlane.xlu0 %2480  ;;  %2549 = vadd.xlane.f32.xlu1 %v2548_v7  ;;  %v2551_v30 = vsel %vm77_vm0, %v6065_v53, 0.0 }
 0x929   :  { %4422 = vpow2.f32 %v2524_v57  ;;  %v2497_v35 = vsub.f32 %v2433_v15, %v2481_v2  ;;  %2552 = vadd.xlane.f32.xlu0 %v2551_v30  ;;  %v3521_v57 = vmul.f32 -1.442695, %v1239_v41  ;;  %v3523_v2 = vmul.f32 -1.442695, %v1249_v24 }
 0x92a   :  { %v6075_v63 = vpop.eup %4412  ;;  %v2526_v58 = vmul.f32 1.442695, %v2496_v50 }
 0x92b   :  { %v6077_v5 = vpop.eup %4414  ;;  %v2528_v54 = vmul.f32 1.442695, %v2497_v35  ;;  %v2554_v4 = vsel %vm77_vm0, %v6075_v63, 0.0  ;;  %v1244_v35 = vadd.f32 %v5258_v26, %v6118_v48 }
 0x92c   :  { %4424 = vpow2.f32 %v2526_v58  ;;  %2555 = vadd.xlane.f32.xlu1 %v2554_v4  ;;  %v2557_v27 = vsel %vm77_vm0, %v6077_v5, 0.0 }
 0x92d   :  { %4426 = vpow2.f32 %v2528_v54  ;;  %2558 = vadd.xlane.f32.xlu0 %v2557_v27  ;;  %v3522_v4 = vmul.f32 -1.442695, %v1244_v35 }
 0x92e   :  { %v6083_v1 = vpop.eup %4416  ;;  %4428 = vpow2.f32 %v3515_v22 }
 0x92f   :  { %v6085_v36 = vpop.eup %4418  ;;  %v2560_v15 = vsel %vm77_vm0, %v6083_v1, 0.0  ;;  %4430 = vpow2.f32 %v3514_v17 }
 0x930   :  { %2561 = vadd.xlane.f32.xlu1 %v2560_v15  ;;  %v2563_v39 = vsel %vm77_vm0, %v6085_v36, 0.0  ;;  %4432 = vpow2.f32 %v3517_v40 }
 0x931   :  { %2564 = vadd.xlane.f32.xlu0 %v2563_v39 }
 0x932   :  { %v6091_v49 = vpop.eup %4420 }
 0x933   :  { %v6093_v29 = vpop.eup %4422  ;;  %v2566_v25 = vsel %vm77_vm0, %v6091_v49, 0.0 }
 0x934   :  { %2567 = vadd.xlane.f32.xlu1 %v2566_v25  ;;  %v2569_v34 = vsel %vm77_vm0, %v6093_v29, 0.0  ;;  %v1269_v25 = vadd.f32 %v5270_v32, %v6118_v48  ;;  %v1264_v32 = vadd.f32 %v5272_v47, %v6118_v48 }
 0x935   :  { %2570 = vadd.xlane.f32.xlu0 %v2569_v34 }
 0x936   :  { %v6099_v3 = vpop.eup %4424  ;;  %v3527_v17 = vmul.f32 -1.442695, %v1269_v25 }
 0x937   :  { %v6101_v14 = vpop.eup %4426  ;;  %v2572_v51 = vsel %vm77_vm0, %v6099_v3, 0.0 }
 0x938   :  { %2573 = vadd.xlane.f32.xlu1 %v2572_v51  ;;  %v2575_v23 = vsel %vm77_vm0, %v6101_v14, 0.0  ;;  %v4429_v37 = vpop.eup %4428 }
 0x939   :  { %2576 = vadd.xlane.f32.xlu0 %v2575_v23  ;;  %v4431_v12 = vpop.eup %4430  ;;  %v2627_v62 = vadd.f32 1.0, %v4429_v37  ;;  %v3525_v23 = vmul.f32 -1.442695, %v1259_v61 }
 0x93a   :  { %v2626_v31 = vadd.f32 1.0, %v4431_v12  ;;  %v4433_v6 = vpop.eup %4432 }
 0x93b   :  { %v2629_v50 = vadd.f32 1.0, %v4433_v6 }
 0x949   :  { %4303 = vrot.lane.b32.xlu1 %v4821_v13, %s4568_s26 }
 0x94d   :  { %4313 = vrot.lane.b32.xlu1 %v4821_v13, %s4571_s14 }
 0x94f   :  { %4308 = vrot.lane.b32.xlu0 %v4825_v21, %s4568_s26 }
 0x951   :  { %4323 = vrot.lane.b32.xlu1 %v4825_v21, %s4571_s14 }
 0x953   :  { %4318 = vrot.lane.b32.xlu0 %v4821_v13, %s4572_s6  ;;  %v1214_v13 = vadd.f32 %v5125_v43, %v6118_v48  ;;  %v1234_v43 = vadd.f32 %v5251_v45, %v6118_v48 }
 0x955   :  { %v3516_v18 = vmul.f32 -1.442695, %v1214_v13  ;;  %v3520_v11 = vmul.f32 -1.442695, %v1234_v43  ;;  %v1274_v43 = vadd.f32 %v5279_v59, %v6118_v48 }
 0x957   :  { %4434 = vpow2.f32 %v3516_v18  ;;  %v3524_v18 = vmul.f32 -1.442695, %v1254_v46 }
 0x958   :  { %4436 = vpow2.f32 %v3519_v8 }
 0x959   :  { %4438 = vrcp.f32 %v2627_v62  ;;  %v3526_v62 = vmul.f32 -1.442695, %v1264_v32 }
 0x95a   :  { %4440 = vpow2.f32 %v3518_v10 }
 0x95b   :  { %4442 = vrcp.f32 %v2626_v31 }
 0x95c   :  { %4444 = vpow2.f32 %v3521_v57 }
 0x95d   :  { %4446 = vpow2.f32 %v3520_v11 }
 0x961   :  { %v4435_v7 = vpop.eup %4434 }
 0x962   :  { %v2628_v30 = vadd.f32 1.0, %v4435_v7  ;;  %v4437_v58 = vpop.eup %4436  ;;  %v6297_v7 = vld [vmem:[#allocation6_spill] sm:$0xff] }
 0x963   :  { %v4439_v54 = vpop.eup %4438  ;;  %v2631_v39 = vadd.f32 1.0, %v4437_v58 }
 0x964   :  { %v4441_v15 = vpop.eup %4440 }
 0x965   :  { %v4443_v51 = vpop.eup %4442  ;;  %v2630_v33 = vadd.f32 1.0, %v4441_v15 }
 0x966   :  { %v4445_v26 = vpop.eup %4444 }
 0x967   :  { %v4447_v0 = vpop.eup %4446  ;;  %v2633_v42 = vadd.f32 1.0, %v4445_v26 }
 0x968   :  { %v2632_v8 = vadd.f32 1.0, %v4447_v0 }
 0x9a2   :  { %v2535_v20 = vpop.xlane.xlu0 %2534 }
 0x9a3   :  { %4448 = vrcp.f32 %v2535_v20  ;;  %v2532_v45 = vpop.xlane.xlu1 %2531  ;;  %v3528_v20 = vmul.f32 -1.442695, %v1274_v43 }
 0x9a4   :  { %4450 = vrcp.f32 %v2532_v45 }
 0x9a5   :  { %4452 = vrcp.f32 %v2629_v50  ;;  %v1279_v50 = vadd.f32 %v6297_v7, %v6118_v48 }
 0x9a6   :  { %4454 = vpow2.f32 %v3523_v2 }
 0x9a7   :  { %4456 = vrcp.f32 %v2628_v30 }
 0x9a8   :  { %v2538_v27 = vpop.xlane.xlu1 %2537 }
 0x9a9   :  { %4458 = vrcp.f32 %v2538_v27  ;;  %v2541_v34 = vpop.xlane.xlu0 %2540 }
 0x9aa   :  { %4460 = vrcp.f32 %v2541_v34 }
 0x9ab   :  { %4462 = vpow2.f32 %v3522_v4 }
 0x9ac   :  { %4464 = vrcp.f32 %v2631_v39 }
 0x9ad   :  { %v4449_v22 = vpop.eup %4448  ;;  %v2547_v19 = vpop.xlane.xlu0 %2546 }
 0x9ae   :  { %v4451_v13 = vpop.eup %4450  ;;  %4466 = vrcp.f32 %v2547_v19  ;;  %v2677_v40 = vmul.f32 %v4449_v22, %v4439_v54  ;;  %v3529_v54 = vmul.f32 -1.442695, %v1279_v50 }
 0x9af   :  { %4468 = vpow2.f32 %v3525_v23  ;;  %v2675_v9 = vmul.f32 %v4451_v13, %v4443_v51  ;;  %v4453_v37 = vpop.eup %4452 }
 0x9b0   :  { %4470 = vrcp.f32 %v2630_v33  ;;  %2713 = vperm.xlu0 %4301, %v2677_v40   ;;  %v4455_v56 = vpop.eup %4454 }
 0x9b1   :  { %4472 = vpow2.f32 %v3527_v17  ;;  %v2544_v12 = vpop.xlane.xlu1 %2543  ;;  %2708 = vperm.xlu1 %4300, %v2675_v9   ;;  %v4457_v41 = vpop.eup %4456  ;;  %v2635_v31 = vadd.f32 1.0, %v4455_v56 }
 0x9b2   :  { %4474 = vrcp.f32 %v2544_v12 }
 0x9b3   :  { %v4459_v47 = vpop.eup %4458  ;;  %4476 = vpow2.f32 %v3524_v18 }
 0x9b4   :  { %v4461_v10 = vpop.eup %4460  ;;  %4478 = vrcp.f32 %v2633_v42  ;;  %v2679_v57 = vmul.f32 %v4459_v47, %v4457_v41 }
 0x9b5   :  { %4480 = vrcp.f32 %v2632_v8  ;;  %v2550_v11 = vpop.xlane.xlu1 %2549  ;;  %v2681_v6 = vmul.f32 %v4461_v10, %v4453_v37  ;;  %v4463_v24 = vpop.eup %4462 }
 0x9b6   :  { %4482 = vpow2.f32 %v3526_v62  ;;  %v2553_v2 = vpop.xlane.xlu0 %2552  ;;  %2718 = vperm.xlu1 %4300, %v2679_v57   ;;  %v4465_v45 = vpop.eup %4464  ;;  %v2634_v15 = vadd.f32 1.0, %v4463_v24 }
 0x9b7   :  { %4484 = vrcp.f32 %v2553_v2  ;;  %2723 = vperm.xlu0 %4301, %v2681_v6  }
 0x9b8   :  { %v4467_v59 = vpop.eup %4466  ;;  %4486 = vrcp.f32 %v2635_v31 }
 0x9b9   :  { %v4469_v30 = vpop.eup %4468  ;;  %4488 = vrcp.f32 %v2550_v11  ;;  %v2556_v35 = vpop.xlane.xlu1 %2555  ;;  %v2685_v58 = vmul.f32 %v4467_v59, %v4465_v45 }
 0x9ba   :  { %v4471_v61 = vpop.eup %4470  ;;  %4490 = vpow2.f32 %v3528_v20  ;;  %v2559_v4 = vpop.xlane.xlu0 %2558  ;;  %v2637_v39 = vadd.f32 1.0, %v4469_v30 }
 0x9bb   :  { %v4473_v27 = vpop.eup %4472  ;;  %4492 = vrcp.f32 %v2559_v4  ;;  %2733 = vperm.xlu0 %4301, %v2685_v58  }
 0x9bc   :  { %v4475_v48 = vpop.eup %4474  ;;  %4494 = vrcp.f32 %v2556_v35  ;;  %v2639_v23 = vadd.f32 1.0, %v4473_v27 }
 0x9bd   :  { %v4477_v25 = vpop.eup %4476  ;;  %v2562_v34 = vpop.xlane.xlu1 %2561  ;;  %v2683_v51 = vmul.f32 %v4475_v48, %v4471_v61  ;;  %4496 = vpow2.f32 %v3529_v54 }
 0x9be   :  { %v4479_v26 = vpop.eup %4478  ;;  %v2565_v46 = vpop.xlane.xlu0 %2564  ;;  %4498 = vrcp.f32 %v2634_v15  ;;  %v2636_v13 = vadd.f32 1.0, %v4477_v25 }
 0x9bf   :  { %v4481_v0 = vpop.eup %4480  ;;  %2728 = vperm.xlu1 %4300, %v2683_v51   ;;  %4500 = vrcp.f32 %v2637_v39 }
 0x9c0   :  { %v4483_v33 = vpop.eup %4482  ;;  %4502 = vrcp.f32 %v2565_v46 }
 0x9c1   :  { %v4485_v22 = vpop.eup %4484  ;;  %v2568_v17 = vpop.xlane.xlu1 %2567  ;;  %4504 = vrcp.f32 %v2639_v23  ;;  %v2638_v9 = vadd.f32 1.0, %v4483_v33 }
 0x9c2   :  { %v4487_v19 = vpop.eup %4486  ;;  %v2571_v32 = vpop.xlane.xlu0 %2570  ;;  %v2689_v40 = vmul.f32 %v4485_v22, %v4479_v26 }
 0x9c3   :  { %v4489_v18 = vpop.eup %4488  ;;  %4506 = vrcp.f32 %v2571_v32 }
 0x9c4   :  { %v4491_v37 = vpop.eup %4490  ;;  %4508 = vrcp.f32 %v2562_v34  ;;  %2743 = vperm.xlu1 %4300, %v2689_v40   ;;  %v2687_v41 = vmul.f32 %v4489_v18, %v4481_v0 }
 0x9c5   :  { %v4493_v42 = vpop.eup %4492  ;;  %4510 = vrcp.f32 %v2568_v17  ;;  %v2574_v56 = vpop.xlane.xlu1 %2573  ;;  %v2640_v43 = vadd.f32 1.0, %v4491_v37 }
 0x9c6   :  { %4512 = vrcp.f32 %v2636_v13  ;;  %v2577_v8 = vpop.xlane.xlu0 %2576  ;;  %v2693_v12 = vmul.f32 %v4493_v42, %v4487_v19  ;;  %v4495_v62 = vpop.eup %4494 }
 0x9c7   :  { %4514 = vrcp.f32 %v2638_v9  ;;  %v4497_v47 = vpop.eup %4496 }
 0x9c8   :  { %2753 = vperm.xlu0 %4301, %v2693_v12   ;;  %2738 = vperm.xlu1 %4300, %v2687_v41   ;;  %v4499_v10 = vpop.eup %4498  ;;  %4516 = vrcp.f32 %v2574_v56  ;;  %v2641_v20 = vadd.f32 1.0, %v4497_v47 }
 0x9c9   :  { %v4304_v31 = vpop.permute.xlu1 %4303  ;;  %v4501_v57 = vpop.eup %4500  ;;  %v2691_v7 = vmul.f32 %v4499_v10, %v4495_v62  ;;  %4518 = vrcp.f32 %v2640_v43 }
 0x9ca   :  { %v4306_v11 = vunpack.i.h.bf16 %v4304_v31  ;;  %v4305_v6 = vunpack.i.l.bf16 %v4304_v31  ;;  %v4309_v24 = vpop.permute.xlu0 %4308  ;;  %v4503_v50 = vpop.eup %4502  ;;  %4520 = vrcp.f32 %v2577_v8 }
 0x9cb   :  { %v4311_v2 = vunpack.i.h.bf16 %v4309_v24  ;;  %v4310_v45 = vunpack.i.l.bf16 %v4309_v24  ;;  %v4505_v59 = vpop.eup %4504  ;;  %v2697_v15 = vmul.f32 %v4503_v50, %v4501_v57  ;;  %4522 = vrcp.f32 %v2641_v20 }
 0x9cc   :  { %v4224_v30 = vpack.c.bf16 %v4306_v11, %v4305_v6  ;;  %2748 = vperm.xlu0 %4301, %v2691_v7  }
 0x9cd   :  { %v4507_v35 = vpop.eup %4506  ;;  %v4314_v58 = vpop.permute.xlu1 %4313  ;;  %v4228_v25 = vpack.c.bf16 %v4311_v2, %v4310_v45 }
 0x9ce   :  { %v4509_v61 = vpop.eup %4508  ;;  %v4316_v54 = vunpack.i.h.bf16 %v4314_v58  ;;  %v4315_v4 = vunpack.i.l.bf16 %v4314_v58  ;;  %v4319_v27 = vpop.permute.xlu0 %4318  ;;  %4225 = vmatprep.subr.bf16.mxu0 %v4224_v30  ;;  %v2701_v48 = vmul.f32 %v4507_v35, %v4505_v59 }
 0x9cf   :  { %v4511_v39 = vpop.eup %4510  ;;  %v4321_v34 = vunpack.i.h.bf16 %v4319_v27  ;;  %v4320_v51 = vunpack.i.l.bf16 %v4319_v27  ;;  %4227 = vmatpush3.bf16.msra.mxu0 %v4224_v30 }
 0x9d0   :  { %v4513_v26 = vpop.eup %4512  ;;  %v4232_v23 = vpack.c.bf16 %v4316_v54, %v4315_v4  ;;  %2763 = vperm.xlu0 %4301, %v2697_v15   ;;  %2773 = vperm.xlu1 %4300, %v2701_v48  }
 0x9d1   :  { %v4515_v46 = vpop.eup %4514  ;;  %4229 = vmatprep.subr.bf16.mxu0 %v4228_v25  ;;  %v2695_v0 = vmul.f32 %v4513_v26, %v4509_v61  ;;  %v4240_v17 = vpack.c.bf16 %v4321_v34, %v4320_v51  ;;  %v4324_v9 = vpop.permute.xlu1 %4323  ;;  %v3295_v34 = vld [vmem:[%s6241_s3 + $0x10] sm:$0xff]  ;;  %v3296_v26 = vld [vmem:[%s6241_s3 + $0x18] sm:$0xff] }
 0x9d2   :  { %4233 = vmatprep.subr.bf16.mxu1 %v4232_v23  ;;  %v2699_v33 = vmul.f32 %v4515_v46, %v4511_v39  ;;  %v4517_v22 = vpop.eup %4516  ;;  %v4326_v42 = vunpack.i.h.bf16 %v4324_v9  ;;  %v4325_v56 = vunpack.i.l.bf16 %v4324_v9 }
 0x9d3   :  { %4231 = vmatpush3.bf16.msra.mxu0 %v4228_v25  ;;  %v4519_v19 = vpop.eup %4518  ;;  %v3294_v25 = vld [vmem:[%s6241_s3 + $0x8] sm:$0xff] }
 0x9d4   :  { %2758 = vperm.xlu0 %4301, %v2695_v0   ;;  %2768 = vperm.xlu1 %4300, %v2699_v33   ;;  %v2703_v13 = vmul.f32 %v4519_v19, %v4517_v22  ;;  %v4521_v32 = vpop.eup %4520  ;;  %v4236_v62 = vpack.c.bf16 %v4326_v42, %v4325_v56 }
 0x9d5   :  { %4241 = vmatprep.subr.bf16.mxu0 %v4240_v17  ;;  %v4523_v40 = vpop.eup %4522 }
 0x9d6   :  { %v2705_v18 = vmul.f32 %v4523_v40, %v4521_v32 }
 0x9d8   :  { %4328 = vrot.lane.b32.xlu0 %v4825_v21, %s4572_s6  ;;  %2778 = vperm.xlu1 %4300, %v2703_v13  }
 0x9dc   :  { %2783 = vperm.xlu1 %4300, %v2705_v18  }
 0xa2f   :  { %v2714_v37 = vpop.permute.xlu0 %2713 }
 0xa30   :  { %v2709_v8 = vpop.permute.xlu1 %2708  ;;  %v2787_v41 = vmul.f32 %v6021_v28, %v2714_v37 }
 0xa31   :  { %v2786_v12 = vmul.f32 %v6023_v44, %v2709_v8 }
 0xa33   :  { %4002 = vmatprep.mubr.msk.f32.mxu1 %vm77_vm0, %v2786_v12 }
 0xa34   :  { %4003 = vmatmul.mubr.msk.f32.vlgmr.msra.gmra.mrb[32].mxu1 %vm77_vm0, %v2787_v41 }
 0xa35   :  { %4235 = vmatpush3.bf16.msra.mxu1 %v4232_v23  ;;  %v2719_v21 = vpop.permute.xlu1 %2718  ;;  %v4252_v23 = vpack.c.bf16 %v3296_v26, %v3295_v34 }
 0xa36   :  { %v2724_v43 = vpop.permute.xlu0 %2723  ;;  %v2788_v47 = vmul.f32 %v6033_v55, %v2719_v21  ;;  %4237 = vmatprep.subr.bf16.mxu1 %v4236_v62 }
 0xa37   :  { %v2789_v10 = vmul.f32 %v6037_v52, %v2724_v43 }
 0xa38   :  { %4005 = vmatprep.mubr.msk.f32.mxu1 %vm77_vm0, %v2788_v47 }
 0xa39   :  { %4239 = vmatpush3.bf16.msra.mxu1 %v4236_v62 }
 0xa3a   :  { %4006 = vmatmul.mubr.msk.f32.gmra.mrb[34].mxu1 %vm77_vm0, %v2789_v10  ;;  %v2734_v44 = vpop.permute.xlu0 %2733 }
 0xa3b   :  { %v2791_v57 = vmul.f32 %v6045_v16, %v2734_v44 }
 0xa3e   :  { %v2729_v28 = vpop.permute.xlu1 %2728 }
 0xa3f   :  { %v2790_v31 = vmul.f32 %v6055_v38, %v2729_v28 }
 0xa41   :  { %4016 = vmatprep.mubr.msk.f32.mxu0 %vm77_vm0, %v2790_v31 }
 0xa42   :  { %4017 = vmatmul.mubr.msk.f32.vlgmr.msra.gmra.mrb[48].mxu0 %vm77_vm0, %v2791_v57 }
 0xa43   :  { %4243 = vmatpush3.bf16.msra.mxu0 %v4240_v17  ;;  %v2744_v55 = vpop.permute.xlu1 %2743 }
 0xa44   :  { %v2793_v24 = vmul.f32 %v6065_v53, %v2744_v55 }
 0xa47   :  { %v2754_v11 = vpop.permute.xlu0 %2753  ;;  %v2739_v6 = vpop.permute.xlu1 %2738 }
 0xa48   :  { %v2792_v52 = vmul.f32 %v6063_v60, %v2739_v6  ;;  %v2795_v16 = vmul.f32 %v6077_v5, %v2754_v11 }
 0xa4a   :  { %4019 = vmatprep.mubr.msk.f32.mxu0 %vm77_vm0, %v2792_v52 }
 0xa4b   :  { %v2749_v7 = vpop.permute.xlu0 %2748  ;;  %4020 = vmatmul.mubr.msk.f32.gmra.mrb[50].mxu0 %vm77_vm0, %v2793_v24 }
 0xa4c   :  { %v2794_v38 = vmul.f32 %v6075_v63, %v2749_v7 }
 0xa4e   :  { %4030 = vmatprep.mubr.msk.f32.mxu1 %vm77_vm0, %v2794_v38 }
 0xa4f   :  { %v2764_v50 = vpop.permute.xlu0 %2763  ;;  %4031 = vmatmul.mubr.msk.f32.vlgmr.msra.gmra.mrb[36].mxu1 %vm77_vm0, %v2795_v16  ;;  %v2774_v20 = vpop.permute.xlu1 %2773 }
 0xa50   :  { %v2797_v59 = vmul.f32 %v6085_v36, %v2764_v50  ;;  %v2799_v61 = vmul.f32 %v6093_v29, %v2774_v20 }
 0xa53   :  { %v2759_v2 = vpop.permute.xlu0 %2758  ;;  %v2769_v45 = vpop.permute.xlu1 %2768 }
 0xa54   :  { %v2796_v60 = vmul.f32 %v6083_v1, %v2759_v2  ;;  %v2798_v53 = vmul.f32 %v6091_v49, %v2769_v45 }
 0xa56   :  { %4033 = vmatprep.mubr.msk.f32.mxu1 %vm77_vm0, %v2796_v60  ;;  %4044 = vmatprep.mubr.msk.f32.mxu0 %vm77_vm0, %v2798_v53 }
 0xa57   :  { %v4329_v63 = vpop.permute.xlu0 %4328  ;;  %4034 = vmatmul.mubr.msk.f32.gmra.mrb[38].mxu1 %vm77_vm0, %v2797_v59  ;;  %v2779_v35 = vpop.permute.xlu1 %2778 }
 0xa58   :  { %v4331_v5 = vunpack.i.h.bf16 %v4329_v63  ;;  %v4330_v30 = vunpack.i.l.bf16 %v4329_v63  ;;  %v2800_v1 = vmul.f32 %v6099_v3, %v2779_v35 }
 0xa5a   :  { %v4244_v58 = vpack.c.bf16 %v4331_v5, %v4330_v30 }
 0xa5b   :  { %v2784_v49 = vpop.permute.xlu1 %2783 }
 0xa5c   :  { %4245 = vmatprep.subr.bf16.mxu0 %v4244_v58  ;;  %v2801_v36 = vmul.f32 %v6101_v14, %v2784_v49  ;;  %v3293_v14 = vld [vmem:[%s6241_s3] sm:$0xff]  ;;  %s4576_s3 = smov [#allocation3]  }
 0xa5d   :  { %4247 = vmatpush3.bf16.msra.mxu0 %v4244_v58  ;;  %v4248_v51 = vpack.c.bf16 %v3294_v25, %v3293_v14  ;;  %s3403_s16 = sshll.u32 %s4576_s3, 4  ;;  %s3404_s16 = int_to_ptr.vmem [resolvable:$true] %s3403_s16 }
 0xa5e   :  { %s4540_s21 = scalar_lea.vmem %s3404_s16, 512  ;;  %p4545_p1 = scmp.lt.s32.totalorder %s3404_s16, %s3404_s16 }
 0xa5f   :  { %4249 = vmatprep.subr.bf16.mxu1 %v4248_v51  ;;  %p4541_p0 = scmp.ne.s32.totalorder %s3404_s16, %s4540_s21  ;;  %p4546_p2 = scmp.lt.s32.totalorder %s4540_s21, %s4540_s21 }
 0xa60   :  { %4045 = vmatmul.mubr.msk.f32.vlgmr.msra.gmra.mrb[52].mxu0 %vm77_vm0, %v2799_v61  ;;  %4251 = vmatpush3.bf16.msra.mxu1 %v4248_v51 }
 0xa61   :  { %4047 = vmatprep.mubr.msk.f32.mxu0 %vm77_vm0, %v2800_v1  ;;  %4253 = vmatprep.subr.bf16.mxu1 %v4252_v23  ;;  %p4547_p3 = por %p4546_p2, %p4545_p1 }
 0xa63   :  { %p4548_p4 = pnand %p4547_p3, %p4541_p0 }
 0xa64   :  { %4048 = vmatmul.mubr.msk.f32.gmra.mrb[54].mxu0 %vm77_vm0, %v2801_v36  ;;  %4255 = vmatpush3.bf16.msra.mxu1 %v4252_v23 }
 0xb07   :  { %v4004_v54 = vpop.f32.mrb[32].mxu1 }
 0xb08   :  { %v2880_v4 = vpop.f32.mrb[33].mxu1 }
 0xb0d   :  { %v6186_v27 = vpop.f32.mrb[34].mxu1 }
 0xb0e   :  { %v2890_v15 = vpop.f32.mrb[35].mxu1 }
 0xb15   :  { %v4018_v48 = vpop.f32.mrb[48].mxu0 }
 0xb16   :  { %3236 = vrot.lane.b32.xlu1 %v4018_v48, %s4573_s17  ;;  %v2993_v29 = vpop.f32.mrb[49].mxu0 }
 0xb17   :  { %3234 = vrot.lane.b32.xlu0 %v2993_v29, %s4573_s17 }
 0xb1e   :  { %v4021_v3 = vpop.f32.mrb[50].mxu0 }
 0xb1f   :  { %3240 = vrot.lane.b32.xlu1 %v4021_v3, %s4573_s17  ;;  %v3003_v39 = vpop.f32.mrb[51].mxu0 }
 0xb20   :  { %3238 = vrot.lane.b32.xlu0 %v3003_v39, %s4573_s17 }
 0xb22   :  { %v4032_v46 = vpop.f32.mrb[36].mxu1 }
 0xb23   :  { %v3102_v0 = vpop.f32.mrb[37].mxu1  ;;  %3252 = vrot.lane.b32.xlu1 %v4032_v46, %s4574_s9 }
 0xb24   :  { %3250 = vrot.lane.b32.xlu0 %v3102_v0, %s4574_s9 }
 0xb2a   :  { %v4035_v33 = vpop.f32.mrb[38].mxu1 }
 0xb2b   :  { %v3112_v22 = vpop.f32.mrb[39].mxu1  ;;  %3256 = vrot.lane.b32.xlu1 %v4035_v33, %s4574_s9 }
 0xb2c   :  { %3254 = vrot.lane.b32.xlu0 %v3112_v22, %s4574_s9 }
 0xb33   :  { %v4046_v17 = vpop.f32.mrb[52].mxu0 }
 0xb34   :  { %3268 = vrot.lane.b32.xlu1 %v4046_v17, %s4575_s20  ;;  %v3211_v19 = vpop.f32.mrb[53].mxu0 }
 0xb35   :  { %3266 = vrot.lane.b32.xlu0 %v3211_v19, %s4575_s20 }
 0xb37   :  { %v4049_v13 = vpop.f32.mrb[54].mxu0 }
 0xb38   :  { %3272 = vrot.lane.b32.xlu1 %v4049_v13, %s4575_s20  ;;  %v3221_v32 = vpop.f32.mrb[55].mxu0 }
 0xb39   :  { %3270 = vrot.lane.b32.xlu0 %v3221_v32, %s4575_s20 }
 0xb88   :  { %v3237_v40 = vpop.permute.xlu1 %3236 }
 0xb89   :  { %v3235_v18 = vpop.permute.xlu0 %3234  ;;  %v3280_v21 = vsel %vm3278_vm3, %v4004_v54, %v3237_v40 }
 0xb8a   :  { %v3279_v41 = vsel %vm3278_vm3, %v2880_v4, %v3235_v18 }
 0xb91   :  { %v3241_v9 = vpop.permute.xlu1 %3240 }
 0xb92   :  { %v3239_v37 = vpop.permute.xlu0 %3238  ;;  %v3282_v55 = vsel %vm3278_vm3, %v6186_v27, %v3241_v9 }
 0xb93   :  { %v3281_v31 = vsel %vm3278_vm3, %v2890_v15, %v3239_v37 }
 0xb95   :  { %v3253_v42 = vpop.permute.xlu1 %3252 }
 0xb96   :  { %v3251_v56 = vpop.permute.xlu0 %3250  ;;  %v3285_v10 = vsel %vm3283_vm4, %v3280_v21, %v3253_v42 }
 0xb97   :  { %v3284_v43 = vsel %vm3283_vm4, %v3279_v41, %v3251_v56 }
 0xb9d   :  { %v3257_v8 = vpop.permute.xlu1 %3256 }
 0xb9e   :  { %v3255_v12 = vpop.permute.xlu0 %3254  ;;  %v3287_v52 = vsel %vm3283_vm4, %v3282_v55, %v3257_v8 }
 0xb9f   :  { %v3286_v11 = vsel %vm3283_vm4, %v3281_v31, %v3255_v12 }
 0xba6   :  { %v3269_v62 = vpop.permute.xlu1 %3268 }
 0xba7   :  { %v3267_v47 = vpop.permute.xlu0 %3266  ;;  %v3290_v28 = vsel %vm3288_vm5, %v3285_v10, %v3269_v62 }
 0xba8   :  { %v3289_v44 = vsel %vm3288_vm5, %v3284_v43, %v3267_v47 }
 0xba9   :  { %4058 = vmatprep.mubr.msk.f32.mxu1 %vm77_vm0, %v3289_v44 }
 0xbaa   :  { %4059 = vmatmul.mubr.msk.f32.vlgmr.msra.gmra.mrb[40].mxu1 %vm77_vm0, %v3290_v28  ;;  %v3273_v57 = vpop.permute.xlu1 %3272 }
 0xbab   :  { %v3271_v6 = vpop.permute.xlu0 %3270  ;;  %v3292_v7 = vsel %vm3288_vm5, %v3287_v52, %v3273_v57 }
 0xbac   :  { %v3291_v24 = vsel %vm3288_vm5, %v3286_v11, %v3271_v6 }
 0xbad   :  { %4061 = vmatprep.mubr.msk.f32.mxu1 %vm77_vm0, %v3291_v24 }
 0xbae   :  { %4062 = vmatmul.mubr.msk.f32.gmra.mrb[42].mxu1 %vm77_vm0, %v3292_v7 }
 0xc7d   :  { %v4060_v38 = vpop.f32.mrb[40].mxu1 }
 0xc7e   :  { %3395 = vst.msk [vmem:[#allocation3 + $0x8] sm:$0xff] %vm77_vm0, %v4060_v38  ;;  %v3375_v16 = vpop.f32.mrb[41].mxu1 }
 0xc7f   :  { %3394 = vst.msk [vmem:[#allocation3] sm:$0xff] %vm77_vm0, %v3375_v16 }
 0xc81   :  { %v4063_v50 = vpop.f32.mrb[42].mxu1 }
 0xc82   :  { %3397 = vst.msk [vmem:[#allocation3 + $0x18] sm:$0xff] %vm77_vm0, %v4063_v50  ;;  %v3385_v20 = vpop.f32.mrb[43].mxu1 }
 0xc83   :  { %3396 = vst.msk [vmem:[#allocation3 + $0x10] sm:$0xff] %vm77_vm0, %v3385_v20 }
 0xc84   :  { %4551 = shalt.err (!%p4548_p4)
}
 0xc85   :  { %s4552_s13 = scalar_lea.hbm %s6256_s18, 512 }
 0xc86   :  { %p4553_p5 = scmp.ne.s32.totalorder %s6256_s18, %s4552_s13  ;;  %p4556_p6 = scmp.lt.u32.totalorder %s4552_s13, %s6256_s18 }
 0xc88   :  { %p4558_p7 = pnand %p4556_p6, %p4553_p5 }
 0xc8a   :  { %4561 = shalt.err (!%p4558_p7)
}
 0xc8b   :  { %s4577_s24 = smov 128  }
 0xc8c   :  { %3409 = dma.vmem_to_hbm [thread:$0]  %s3404_s16, 512, %s6256_s18, [#allocation4], %s4577_s24, %s4577_s24, %s4573_s17  }
 0xc8d   :  { %4562 = dma.done.wait [#allocation4], 512  }
 0xc8e   :  { %4563 = vsyncadd [#allocation4], 4294966784 }
 0xc8f   :  { %3413 = vsyncpa [#allocation4], 1 }

</bundles_post_ra>
